<compile_context>
chip_gen: v7x
topology: tpu7x:2x2x1
jax: 0.10.0
libtpu: 0.0.40
codegen_flags: <defaults>
</compile_context>

<pallas_src>
import numpy as np
import jax
import jax.numpy as jnp
from jax.experimental import pallas as pl
from jax.experimental.pallas import tpu as pltpu

# ----------------------------- static config (small, module-consistent) ------
SR = 16000
HOP = 16                          # hop length
KERNEL_LEN = 64                   # CQT kernel length (KERNEL_LEN//2 % HOP == 0)
N_BINS = 64                       # number of CQT bins kept (synthetic, small)
Q = 1
MIDI_MIN = 21
N_PER_MIDI = 4
BINS_PER_OCTAVE = N_PER_MIDI * 12

TIME_TILE = 2048                  # frames per grid step (lane dim of the output)
                                  # v5e/v6e sweet spot; tune to 4096-8192 on v7x
HALO = 128                        # halo columns fetched from the next hop block
N_HOPS_PER_FRAME = KERNEL_LEN // HOP          # 4
COMPUTE_DTYPE = jnp.bfloat16      # hop/weight DMA + MXU dtype (f32 also works)

assert (KERNEL_LEN // 2) % HOP == 0, "unpad is not possible with this kernel_len"
assert TIME_TILE % 128 == 0 and TIME_TILE % HALO == 0
assert N_HOPS_PER_FRAME - 1 <= HALO


# ----------------------------- deterministic synthetic parameters ------------
def _make_cqt_kernels():
    """Synthetic stand-in for nnAudio.utils.create_cqt_kernels (deterministic)."""
    midi_width = 1.0 / N_PER_MIDI
    midi_start = MIDI_MIN - (N_PER_MIDI // 2 - 0.5) * midi_width   # n_per_midi even
    freq_start = 440.0 * 2.0 ** ((midi_start - 69.0) / 12.0)
    freqs = freq_start * 2.0 ** (np.arange(N_BINS) / BINS_PER_OCTAVE)
    lengths = np.ceil(Q * SR / freqs)
    # TODO(synk): real nnAudio kernels span ceil(Q*fs/fmin) samples; truncated
    # to KERNEL_LEN here so the synthetic demo stays small.
    lengths = np.minimum(lengths, KERNEL_LEN)

    kr = np.zeros((N_BINS, KERNEL_LEN), np.float64)
    ki = np.zeros((N_BINS, KERNEL_LEN), np.float64)
    for b in range(N_BINS):
        l = int(lengths[b])
        start = (KERNEL_LEN - l) // 2
        n = np.arange(l)
        win = 0.5 - 0.5 * np.cos(2.0 * np.pi * n / l)          # hann window
        phase = 2.0 * np.pi * freqs[b] * (n - l / 2.0) / SR
        sig = win * np.exp(1j * phase)
        norm = np.abs(sig).sum()
        sig = sig / (norm if norm > 0 else 1.0)                # l1 normalize
        kr[b, start:start + l] = sig.real
        ki[b, start:start + l] = sig.imag
    return (kr.astype(np.float32), ki.astype(np.float32),
            freqs.astype(np.float32), lengths.astype(np.float32))


def _a_weighting(freqs, min_db=-80.0):
    """librosa.convert.frequency_weighting(freqs, kind='A') (dB)."""
    c = np.array([12194.217, 20.598997, 107.65265, 737.86223]) ** 2
    f2 = freqs.astype(np.float64) ** 2
    w = 2.0 + 20.0 * (np.log10(c[0]) + 2.0 * np.log10(f2)
                      - np.log10(f2 + c[0]) - np.log10(f2 + c[1])
                      - 0.5 * np.log10(f2 + c[2]) - 0.5 * np.log10(f2 + c[3]))
    if min_db is not None:
        w = np.maximum(w, min_db)
    return w.astype(np.float32)


# ----------------------------- Pallas kernel ---------------------------------
def _cqt_log_kernel(cur_ref, halo_ref, w_ref, bias_ref, out_ref, hops_ref):
    # cur_ref  : (HOP, TIME_TILE)          bf16 hop-major audio block (lane = time)
    # halo_ref : (HOP, HALO)               first HALO columns of the next block
    # w_ref    : (N_HOPS, 2*N_BINS, HOP)   bf16 [Kr;Ki] per hop phase, sqrt(len) folded
    # bias_ref : (N_BINS, 1)               f32  7 + perceptual_offset
    # out_ref  : (N_BINS, TIME_TILE)       f32  lane-dense, already (bins, time)
    # hops_ref : (HOP, TIME_TILE + HALO)   VMEM scratch: contiguous hop window
    hops_ref[:, :TIME_TILE] = cur_ref[...]          # aligned stores
    hops_ref[:, TIME_TILE:] = halo_ref[...]

    acc = jnp.zeros((2 * N_BINS, TIME_TILE), jnp.float32)
    for j in range(N_HOPS_PER_FRAME):               # static unroll: 4 MXU matmuls
        # frame column c, hop phase j uses hop column c + j (1..3-lane shifted load)
        blk = hops_ref[:, j:j + TIME_TILE]          # (HOP, TIME_TILE) bf16
        acc = acc + jnp.dot(w_ref[j], blk, preferred_element_type=jnp.float32)

    re = acc[:N_BINS, :]
    im = acc[N_BINS:, :]
    mag = jnp.sqrt(re * re + im * im)               # CQT magnitude (sqrt(len) in W)
    # NOTE: epilogue = 2 EUP transcendentals/elem (sqrt + log); after the DMA
    # fixes this is the expected post-bandwidth floor (see perf review).
    out_ref[...] = jnp.log(jnp.maximum(mag, 1e-6) + bias_ref[...])


def make_cqt_forward(perceptual_weighting=True):
    kr, ki, freqs, lengths = _make_cqt_kernels()
    scale = np.sqrt(lengths)[:, None].astype(np.float32)        # (N_BINS, 1)
    # Fold librosa sqrt(len) normalization into the conv weights (exact:
    # sqrt((a*s)^2 + (b*s)^2) = s * sqrt(a^2 + b^2)).
    w_flat = np.concatenate([kr * scale, ki * scale], axis=0)   # (2*N_BINS, K) f32
    w_bf = jnp.asarray(w_flat, COMPUTE_DTYPE)                   # rounded once
    # Phase-major (N_HOPS, 2*N_BINS, HOP): the kernel indexes the leading axis.
    w_phase = jnp.transpose(
        w_bf.reshape(2 * N_BINS, N_HOPS_PER_FRAME, HOP), (1, 0, 2))

    if perceptual_weighting:
        # forward() uses the module-level `perceptual_offset` (no /20)
        off = _a_weighting(freqs)[:, None]                      # (N_BINS, 1)
    else:
        off = np.zeros((N_BINS, 1), np.float32)
    bias = jnp.asarray(7.0 + off, jnp.float32)                  # (N_BINS, 1)

    unpad_n = KERNEL_LEN // 2 // HOP

    def _pallas_cqt(hops):
        # hops: (B, HOP, T_pad + TIME_TILE) bf16, zero-padded past the audio.
        B, _, t_total = hops.shape
        t_pad = t_total - TIME_TILE
        n_t = t_pad // TIME_TILE
        return pl.pallas_call(
            _cqt_log_kernel,
            out_shape=jax.ShapeDtypeStruct((B, N_BINS, t_pad), jnp.float32),
            grid_spec=pltpu.PrefetchScalarGridSpec(
                num_scalar_prefetch=0,
                grid=(B, n_t),
                in_specs=[
                    # current hop block (lane = time, lane-dense)
                    pl.BlockSpec((None, HOP, TIME_TILE),
                                 lambda b, t: (b, 0, t)),
                    # HALO columns from the start of the next hop block
                    pl.BlockSpec((None, HOP, HALO),
                                 lambda b, t: (b, 0, (t + 1) * (TIME_TILE // HALO))),
                    pl.BlockSpec((N_HOPS_PER_FRAME, 2 * N_BINS, HOP),
                                 lambda b, t: (0, 0, 0)),
                    pl.BlockSpec((N_BINS, 1), lambda b, t: (0, 0)),
                ],
                out_specs=pl.BlockSpec((None, N_BINS, TIME_TILE),
                                       lambda b, t: (b, 0, t)),
                scratch_shapes=[pltpu.VMEM((HOP, TIME_TILE + HALO), COMPUTE_DTYPE)],
            ),
            compiler_params=pltpu.CompilerParams(
                dimension_semantics=("parallel", "parallel")),
        )(hops, hops, w_phase, bias)

    def forward(audio, unpad_start, unpad_end):
        # ---- glue (reflect pad + non-redundant hop matrix), plain JAX ----
        x = audio.reshape(-1, audio.shape[-1])[:, :-1]          # drop last sample
        pad = KERNEL_LEN // 2
        x = jnp.pad(x, ((0, 0), (pad, pad)), mode="reflect").astype(jnp.float32)
        B, Lp = x.shape
        T = (Lp - KERNEL_LEN) // HOP + 1
        T_pad = ((T + TIME_TILE - 1) // TIME_TILE) * TIME_TILE
        # hops[b, r, c] = x[b, c*HOP + r]; frames up to T-1 need columns < T+3.
        n_hop_cols = T + N_HOPS_PER_FRAME - 1
        hops = jnp.swapaxes(
            x[:, :n_hop_cols * HOP].reshape(B, n_hop_cols, HOP), 1, 2)
        hops = hops.astype(COMPUTE_DTYPE)
        # Zero-pad time so the last tile AND its halo block both exist.
        hops = jnp.pad(hops, ((0, 0), (0, 0),
                              (0, T_pad + TIME_TILE - n_hop_cols)))

        # ---- hot path in Pallas (output already (B, n_bins, T)) ----
        out = _pallas_cqt(hops)
        cqt = out[:, :, :T]
        if unpad_start:
            cqt = cqt[:, :, unpad_n:]
        if unpad_end:
            cqt = cqt[:, :, :-unpad_n]
        return cqt

    w_ref_f32 = jnp.asarray(w_bf, jnp.float32)   # same bf16-rounded weights

    def reference(audio, unpad_start, unpad_end):
        x = audio.reshape(-1, audio.shape[-1])[:, :-1]
        pad = KERNEL_LEN // 2
        x = jnp.pad(x, ((0, 0), (pad, pad)), mode="reflect").astype(jnp.float32)
        T = (x.shape[-1] - KERNEL_LEN) // HOP + 1
        idx = HOP * jnp.arange(T)[:, None] + jnp.arange(KERNEL_LEN)[None, :]
        frames = x[:, idx]                                      # (B, T, K)
        # same input rounding as the kernel path (bf16 inputs, f32 accumulate)
        frames = frames.astype(COMPUTE_DTYPE).astype(jnp.float32)
        res = jnp.einsum("btk,nk->bnt", frames, w_ref_f32,
                         precision=jax.lax.Precision.HIGHEST)   # (B, 2N, T)
        mag = jnp.sqrt(res[:, :N_BINS] ** 2 + res[:, N_BINS:] ** 2)
        cqt = jnp.log(jnp.maximum(mag, 1e-6) + bias[None, :, :])
        if unpad_start:
            cqt = cqt[:, :, unpad_n:]
        if unpad_end:
            cqt = cqt[:, :, :-unpad_n]
        return cqt

    return (jax.jit(forward, static_argnums=(1, 2)),
            jax.jit(reference, static_argnums=(1, 2)))


# ----------------------------- demo -------------------------------------------
if __name__ == "__main__":
    key = jax.random.PRNGKey(0)
    B = 2
    n_frames = 2 * TIME_TILE + 37            # >1 full time tile + ragged tail
    L = HOP * (n_frames - 1) + 1             # samples (forward drops the last one)
    audio = jax.random.normal(key, (B, L), dtype=jnp.float32)

    unpad_n = KERNEL_LEN // 2 // HOP

    # Numeric validation path: without A-weighting the log argument is always
    # > 7, so outputs are finite and the framing/matmul/magnitude/log path is
    # checked end-to-end (including the halo handoff across the tile boundary).
    fwd_nw, ref_nw = make_cqt_forward(perceptual_weighting=False)
    out_nw = jax.block_until_ready(fwd_nw(audio, True, True))
    ref_nw_v = jax.block_until_ready(ref_nw(audio, True, True))
    assert out_nw.shape == (B, N_BINS, n_frames - 2 * unpad_n), out_nw.shape
    np.testing.assert_allclose(np.asarray(out_nw), np.asarray(ref_nw_v),
                               rtol=2e-3, atol=2e-3)

    # Module-default path with the perceptual offset (with these synthetic
    # low-frequency bins the A-weighted log argument is negative -> NaN,
    # identically in kernel and reference; matches the torch semantics and
    # assert_allclose treats matching NaNs as equal).
    fwd_pw, ref_pw = make_cqt_forward(perceptual_weighting=True)
    out_pw = jax.block_until_ready(fwd_pw(audio, True, False))
    ref_pw_v = jax.block_until_ready(ref_pw(audio, True, False))
    assert out_pw.shape == (B, N_BINS, n_frames - unpad_n), out_pw.shape
    np.testing.assert_allclose(np.asarray(out_pw), np.asarray(ref_pw_v),
                               rtol=2e-3, atol=2e-3)

    print("KERNEL_OK")
</pallas_src>

<mosaic_0001>
module attributes {stable_mosaic.version = 11 : i64} {
  func.func @_cqt_log_kernel(%arg0: i32, %arg1: i32, %arg2: memref<1x16x2048xbf16, #tpu.memory_space<vmem>>, %arg3: memref<1x16x128xbf16, #tpu.memory_space<vmem>>, %arg4: memref<4x128x16xbf16, #tpu.memory_space<vmem>>, %arg5: memref<64x1xf32, #tpu.memory_space<vmem>>, %arg6: memref<1x64x2048xf32, #tpu.memory_space<vmem>>, %arg7: memref<16x2176xbf16, #tpu.memory_space<vmem>>) attributes {dimension_semantics = [#tpu.dimension_semantics<parallel>, #tpu.dimension_semantics<parallel>], iteration_bounds = array<i64: 2, 3>, scalar_prefetch = 0 : i64, scratch_operands = 1 : i64, tpu.core_type = #tpu.core_type<tc>, window_params = [{transform_indices = @transform_0, window_bounds = array<i64: 1, 16, 2048>}, {transform_indices = @transform_1, window_bounds = array<i64: 1, 16, 128>}, {pipeline_mode = #tpu.pipeline_mode<synchronous>, transform_indices = @transform_2, window_bounds = array<i64: 4, 128, 16>}, {pipeline_mode = #tpu.pipeline_mode<synchronous>, transform_indices = @transform_3, window_bounds = array<i64: 64, 1>}, {transform_indices = @transform_4, window_bounds = array<i64: 1, 64, 2048>}]} {
    %c0 = arith.constant 0 : index
    %c0_0 = arith.constant 0 : index
    %c0_1 = arith.constant 0 : index
    %0 = vector.load %arg2[%c0, %c0_0, %c0_1] : memref<1x16x2048xbf16, #tpu.memory_space<vmem>>, vector<1x16x2048xbf16>
    %1 = vector.shape_cast %0 : vector<1x16x2048xbf16> to vector<16x2048xbf16>
    %c0_2 = arith.constant 0 : index
    %c0_3 = arith.constant 0 : index
    %2 = vector.load %arg7[%c0_2, %c0_3] : memref<16x2176xbf16, #tpu.memory_space<vmem>>, vector<16x2048xbf16>
    tpu.vector_store %arg7[%c0_2, %c0_3], %1 {strides = array<i32>} : memref<16x2176xbf16, #tpu.memory_space<vmem>>, vector<16x2048xbf16>,
    %c0_4 = arith.constant 0 : index
    %c0_5 = arith.constant 0 : index
    %c0_6 = arith.constant 0 : index
    %3 = vector.load %arg3[%c0_4, %c0_5, %c0_6] : memref<1x16x128xbf16, #tpu.memory_space<vmem>>, vector<1x16x128xbf16>
    %4 = vector.shape_cast %3 : vector<1x16x128xbf16> to vector<16x128xbf16>
    %c0_7 = arith.constant 0 : index
    %c2048 = arith.constant 2048 : index
    %5 = vector.load %arg7[%c0_7, %c2048] : memref<16x2176xbf16, #tpu.memory_space<vmem>>, vector<16x128xbf16>
    tpu.vector_store %arg7[%c0_7, %c2048], %4 {strides = array<i32>} : memref<16x2176xbf16, #tpu.memory_space<vmem>>, vector<16x128xbf16>,
    %cst = arith.constant 0.000000e+00 : f32
    %6 = vector.broadcast %cst : f32 to vector<128x2048xf32>
    %c0_8 = arith.constant 0 : index
    %c0_9 = arith.constant 0 : index
    %7 = vector.load %arg7[%c0_8, %c0_9] : memref<16x2176xbf16, #tpu.memory_space<vmem>>, vector<16x2048xbf16>
    %c0_10 = arith.constant 0 : index
    %c0_11 = arith.constant 0 : index
    %c0_12 = arith.constant 0 : index
    %8 = vector.load %arg4[%c0_10, %c0_11, %c0_12] : memref<4x128x16xbf16, #tpu.memory_space<vmem>>, vector<1x128x16xbf16>
    %9 = vector.shape_cast %8 : vector<1x128x16xbf16> to vector<128x16xbf16>
    %cst_13 = arith.constant dense<0.000000e+00> : vector<128x2048xf32>
    %10 = tpu.matmul %9, %7, %cst_13 {dimension_numbers = #tpu.dot_dimension_numbers<[1], [0], [0], [1], [0, 0, 1, 1], [], []>} : vector<128x16xbf16>, vector<16x2048xbf16>, vector<128x2048xf32> -> vector<128x2048xf32>
    %11 = arith.addf %6, %10 : vector<128x2048xf32>
    %c0_14 = arith.constant 0 : index
    %c1 = arith.constant 1 : index
    %12 = vector.load %arg7[%c0_14, %c1] : memref<16x2176xbf16, #tpu.memory_space<vmem>>, vector<16x2048xbf16>
    %c1_15 = arith.constant 1 : index
    %c0_16 = arith.constant 0 : index
    %c0_17 = arith.constant 0 : index
    %13 = vector.load %arg4[%c1_15, %c0_16, %c0_17] : memref<4x128x16xbf16, #tpu.memory_space<vmem>>, vector<1x128x16xbf16>
    %14 = vector.shape_cast %13 : vector<1x128x16xbf16> to vector<128x16xbf16>
    %cst_18 = arith.constant dense<0.000000e+00> : vector<128x2048xf32>
    %15 = tpu.matmul %14, %12, %cst_18 {dimension_numbers = #tpu.dot_dimension_numbers<[1], [0], [0], [1], [0, 0, 1, 1], [], []>} : vector<128x16xbf16>, vector<16x2048xbf16>, vector<128x2048xf32> -> vector<128x2048xf32>
    %16 = arith.addf %11, %15 : vector<128x2048xf32>
    %c0_19 = arith.constant 0 : index
    %c2 = arith.constant 2 : index
    %17 = vector.load %arg7[%c0_19, %c2] : memref<16x2176xbf16, #tpu.memory_space<vmem>>, vector<16x2048xbf16>
    %c2_20 = arith.constant 2 : index
    %c0_21 = arith.constant 0 : index
    %c0_22 = arith.constant 0 : index
    %18 = vector.load %arg4[%c2_20, %c0_21, %c0_22] : memref<4x128x16xbf16, #tpu.memory_space<vmem>>, vector<1x128x16xbf16>
    %19 = vector.shape_cast %18 : vector<1x128x16xbf16> to vector<128x16xbf16>
    %cst_23 = arith.constant dense<0.000000e+00> : vector<128x2048xf32>
    %20 = tpu.matmul %19, %17, %cst_23 {dimension_numbers = #tpu.dot_dimension_numbers<[1], [0], [0], [1], [0, 0, 1, 1], [], []>} : vector<128x16xbf16>, vector<16x2048xbf16>, vector<128x2048xf32> -> vector<128x2048xf32>
    %21 = arith.addf %16, %20 : vector<128x2048xf32>
    %c0_24 = arith.constant 0 : index
    %c3 = arith.constant 3 : index
    %22 = vector.load %arg7[%c0_24, %c3] : memref<16x2176xbf16, #tpu.memory_space<vmem>>, vector<16x2048xbf16>
    %c3_25 = arith.constant 3 : index
    %c0_26 = arith.constant 0 : index
    %c0_27 = arith.constant 0 : index
    %23 = vector.load %arg4[%c3_25, %c0_26, %c0_27] : memref<4x128x16xbf16, #tpu.memory_space<vmem>>, vector<1x128x16xbf16>
    %24 = vector.shape_cast %23 : vector<1x128x16xbf16> to vector<128x16xbf16>
    %cst_28 = arith.constant dense<0.000000e+00> : vector<128x2048xf32>
    %25 = tpu.matmul %24, %22, %cst_28 {dimension_numbers = #tpu.dot_dimension_numbers<[1], [0], [0], [1], [0, 0, 1, 1], [], []>} : vector<128x16xbf16>, vector<16x2048xbf16>, vector<128x2048xf32> -> vector<128x2048xf32>
    %26 = arith.addf %21, %25 : vector<128x2048xf32>
    %27 = vector.extract_strided_slice %26 {offsets = [0, 0], sizes = [64, 2048], strides = [1, 1]} : vector<128x2048xf32> to vector<64x2048xf32>
    %28 = vector.extract_strided_slice %26 {offsets = [64, 0], sizes = [64, 2048], strides = [1, 1]} : vector<128x2048xf32> to vector<64x2048xf32>
    %29 = arith.mulf %27, %27 : vector<64x2048xf32>
    %30 = arith.mulf %28, %28 : vector<64x2048xf32>
    %31 = arith.addf %29, %30 : vector<64x2048xf32>
    %32 = math.sqrt %31 : vector<64x2048xf32>
    %cst_29 = arith.constant 9.99999997E-7 : f32
    %33 = vector.broadcast %cst_29 : f32 to vector<64x2048xf32>
    %34 = arith.maximumf %32, %33 : vector<64x2048xf32>
    %c0_30 = arith.constant 0 : index
    %c0_31 = arith.constant 0 : index
    %35 = vector.load %arg5[%c0_30, %c0_31] : memref<64x1xf32, #tpu.memory_space<vmem>>, vector<64x1xf32>
    %36 = vector.broadcast %35 : vector<64x1xf32> to vector<64x2048xf32>
    %37 = arith.addf %34, %36 : vector<64x2048xf32>
    %38 = math.log %37 : vector<64x2048xf32>
    %c0_32 = arith.constant 0 : index
    %c0_33 = arith.constant 0 : index
    %c0_34 = arith.constant 0 : index
    %39 = vector.load %arg6[%c0_32, %c0_33, %c0_34] : memref<1x64x2048xf32, #tpu.memory_space<vmem>>, vector<1x64x2048xf32>
    %40 = vector.shape_cast %39 : vector<1x64x2048xf32> to vector<64x2048xf32>
    %41 = vector.shape_cast %38 : vector<64x2048xf32> to vector<1x64x2048xf32>
    tpu.vector_store %arg6[%c0_32, %c0_33, %c0_34], %41 {strides = array<i32>} : memref<1x64x2048xf32, #tpu.memory_space<vmem>>, vector<1x64x2048xf32>,
    return
  }
  func.func @transform_0(%arg0: i32, %arg1: i32) -> (i32, i32, i32) {
    %c0_i32 = arith.constant 0 : i32
    %c0_i32_0 = arith.constant 0 : i32
    return %arg0, %c0_i32, %arg1 : i32, i32, i32
  }
  func.func @transform_1(%arg0: i32, %arg1: i32) -> (i32, i32, i32) {
    %c1_i32 = arith.constant 1 : i32
    %0 = arith.addi %arg1, %c1_i32 : i32
    %c16_i32 = arith.constant 16 : i32
    %1 = arith.muli %0, %c16_i32 : i32
    %c0_i32 = arith.constant 0 : i32
    %c0_i32_0 = arith.constant 0 : i32
    return %arg0, %c0_i32, %1 : i32, i32, i32
  }
  func.func @transform_2(%arg0: i32, %arg1: i32) -> (i32, i32, i32) {
    %c0_i32 = arith.constant 0 : i32
    %c0_i32_0 = arith.constant 0 : i32
    %c0_i32_1 = arith.constant 0 : i32
    %c0_i32_2 = arith.constant 0 : i32
    return %c0_i32, %c0_i32_0, %c0_i32_1 : i32, i32, i32
  }
  func.func @transform_3(%arg0: i32, %arg1: i32) -> (i32, i32) {
    %c0_i32 = arith.constant 0 : i32
    %c0_i32_0 = arith.constant 0 : i32
    %c0_i32_1 = arith.constant 0 : i32
    return %c0_i32, %c0_i32_0 : i32, i32
  }
  func.func @transform_4(%arg0: i32, %arg1: i32) -> (i32, i32, i32) {
    %c0_i32 = arith.constant 0 : i32
    %c0_i32_0 = arith.constant 0 : i32
    return %arg0, %c0_i32, %arg1 : i32, i32, i32
  }
}

</mosaic_0001>

<bundles_post_ra>
// kernel: custom-call
= control target key start
LH: loop header
LB: loop body
LE: loop exit
PB: predicated region body
PF: predicated region fallthrough
CT: control target
= control target key end

     0   :  { %s6_s0 = inlined_call_operand.vmem [shape: bf16[2,66176], index: 0, kind: output, shape index: {}]  }

// kernel: forward.1
= control target key start
LH: loop header
LB: loop body
LE: loop exit
PB: predicated region body
PF: predicated region fallthrough
CT: control target
= control target key end

     0   :  { %s9386_s15 = smov 0   ;;  %s9388_s16 = smov 0   ;;  %s14132_s0 = inlined_call_operand.vmem [shape: bf16[2,16,8192], index: 0, kind: input, shape index: {}, may-alias: {0,1}]   ;;  %s14133_s1 = inlined_call_operand.vmem [shape: bf16[2,16,8192], index: 1, kind: input, shape index: {}, may-alias: {0,1}]   ;;  %s14134_s2 = inlined_call_operand.vmem [shape: bf16[4,128,16], index: 2, kind: input, shape index: {}]   ;;  %s14135_s3 = inlined_call_operand.vmem [shape: f32[64,1], index: 3, kind: input, shape index: {}]   ;;  %s14136_s4 = inlined_call_operand.vmem [shape: f32[2,64,6144], index: 4, kind: output, shape index: {}]  }
   0x1   :  { %s9390_s17 = smov 0   ;;  %s9392_s18 = smov 0  }
   0x2   :  { %s9394_s19 = smov 0   ;;  %s9396_s20 = smov 0  }
   0x3   :  { %s9398_s21 = smov 0   ;;  %s9400_s22 = smov 0  }
   0x4   :  { %s9402_s23 = smov 0  }
   0x5 LB: > { %14150 = sst [smem:[#allocation6_spill]] %s9347_s21  ;;  %s7511_s24 = sadd.s32 4294967295, %s9355_s23   ;;  %s9355_s23 = sphi %s9402_s23, %s14_s23   ;;  %s9351_s22 = sphi %s9400_s22, %s14456_s22   ;;  %s9347_s21 = sphi %s9398_s21, %s14455_s21   ;;  %s9343_s20 = sphi %s9396_s20, %s14454_s20   ;;  %s9339_s19 = sphi %s9394_s19, %s14448_s19   ;;  %s9335_s18 = sphi %s9392_s18, %s14453_s18   ;;  %s9331_s17 = sphi %s9390_s17, %s14452_s17   ;;  %s9327_s16 = sphi %s9388_s16, %s14451_s16   ;;  %s9323_s15 = sphi %s9386_s15, %s14450_s15  }
   0x6   : > { %s23_s25 = sadd.s32 1, %s9347_s21  ;;  %s26_s26 = sadd.s32 1, %s9351_s22 }
   0x7   : > { %p24_p0 = scmp.ge.s32.totalorder %s23_s25, 3  ;;  %s35_s27 = sadd.s32 1, %s9335_s18 }
   0x8   : > { %p42_p1 = scmp.ne.s32.totalorder %s9335_s18, %s9331_s17  ;;  %p43_p2 = scmp.eq.s32.totalorder %s9355_s23, 0 }
   0x9   : > { %s14458_s25 = smov (%p24_p0, %s23_s25), 0  ;;  %s14460_s26 = smov (!%p24_p0, %s26_s26), %s9351_s22 }
   0xa   : > { %s31_s28 = ssub.s32 %s9347_s21, %s14458_s25  ;;  %p28_p3 = scmp.ge.s32.totalorder %s14460_s26, 2 }
   0xb   : > { %s9444_s29 = sshll.u32 %s9347_s21, 4  ;;  %p9451_p4 = por %p43_p2, %p42_p1 }
   0xc   : > { %s7890_s5 = sadd.s32 16, %s9444_s29  ;;  %s14462_s26 = smov (%p28_p3, %s14460_s26), 0 }
   0xd   : > { %14152 = sst [smem:[#allocation7_spill]] %s14462_s26  ;;  %s7891_s6 = sshll.u32 %s14458_s25, 4 }
   0xe   : > { %s67_s7 = sadd.s32 1, %s9327_s16  ;;  %s30_s8 = ssub.s32 %s9351_s22, %s14462_s26 }
   0xf   : > { %s7892_s9 = sadd.s32 16, %s7891_s6  ;;  %s32_s10 = sor.u32 %s31_s28, %s30_s8 }
  0x10   : > { %s63_s11 = ssub.s32 %s7890_s5, %s7892_s9  ;;  %p33_p5 = scmp.eq.s32.totalorder %s32_s10, 0 }
  0x11   : > { %s64_s12 = sor.u32 %s63_s11, %s30_s8  ;;  %p74_p7 = scmp.ne.s32.totalorder %s9327_s16, %s9323_s15 }
  0x12   : > { %p65_p6 = scmp.eq.s32.totalorder %s64_s12, 0  ;;  %p148_p9 = scmp.eq.s32.totalorder %s7511_s24, 5 }
  0x13   : > { %s9465_s13 = scalar_select %p33_p5, %s9335_s18, %s35_s27  }
  0x14   : > { %s9468_s14 = scalar_select %p65_p6, %s9327_s16, %s67_s7  }
  0x15   : > { %p9472_p8 = por %p74_p7, %p43_p2  ;;  %p9479_p10 = por %p148_p9, %p42_p1 }
  0x16   : > { %p7516_p11 = scmp.ge.s32.totalorder %s9355_s23, 6 }
  0x18   : > { %176 = sbr.rel (%p7516_p11) target bundleno = 53 (0x35), region = 24 }
  0x1f   : > { %179 = sbr.rel (!%p9451_p4) target bundleno = 45 (0x2d), region = 28  ;;  %s181_s27 = sand.u32 (%p9451_p4), 1, %s9335_s18  }
  0x20   : > { %s7519_s28 = sshll.u32 (%p9451_p4), %s9351_s22, 7  ;;  %s7517_s5 = sshll.u32 (%p9451_p4), %s181_s27, 7 }
  0x21   : > { %s186_s6 = sadd.s32 (%p9451_p4), %s9444_s29, %s7519_s28  ;;  %s183_s30 = scalar_lea.vmem (%p9451_p4), [#allocation3], %s7517_s5 }
  0x22   : > { %s7520_s7 = sshll.u32 (%p9451_p4), %s186_s6, 2 }
  0x23   : > { %s9492_s9 = scalar_lea.vmem (%p9451_p4), %s14132_s0, %s7520_s7 }
  0x24   : > { %v201_v0 = vld [vmem:[%s9492_s9] sm:$0xff] (%p9451_p4)  ;;  %v203_v1 = vld [vmem:[%s9492_s9 + $0x8] sm:$0xff] (%p9451_p4)  ;;  %v205_v2 = vld [vmem:[%s9492_s9 + $0x10] sm:$0xff] (%p9451_p4) }
  0x25   : > { %202 = vst [vmem:[%s183_s30] sm:$0xff] (%p9451_p4), %v201_v0  ;;  %204 = vst [vmem:[%s183_s30 + $0x8] sm:$0xff] (%p9451_p4), %v203_v1  ;;  %v207_v3 = vld [vmem:[%s9492_s9 + $0x18] sm:$0xff] (%p9451_p4)  ;;  %v209_v4 = vld [vmem:[%s9492_s9 + $0x20] sm:$0xff] (%p9451_p4) }
  0x26   : > { %206 = vst [vmem:[%s183_s30 + $0x10] sm:$0xff] %v205_v2  ;;  %v211_v5 = vld [vmem:[%s9492_s9 + $0x28] sm:$0xff]  ;;  %208 = vst [vmem:[%s183_s30 + $0x18] sm:$0xff] %v207_v3  ;;  %v213_v6 = vld [vmem:[%s9492_s9 + $0x30] sm:$0xff] }
  0x27   : > { %210 = vst [vmem:[%s183_s30 + $0x20] sm:$0xff] %v209_v4  ;;  %212 = vst [vmem:[%s183_s30 + $0x28] sm:$0xff] %v211_v5  ;;  %v215_v7 = vld [vmem:[%s9492_s9 + $0x38] sm:$0xff]  ;;  %v217_v8 = vld [vmem:[%s9492_s9 + $0x100] sm:$0xff] }
  0x28   : > { %214 = vst [vmem:[%s183_s30 + $0x30] sm:$0xff] %v213_v6  ;;  %216 = vst [vmem:[%s183_s30 + $0x38] sm:$0xff] %v215_v7  ;;  %v219_v9 = vld [vmem:[%s9492_s9 + $0x108] sm:$0xff]  ;;  %v221_v10 = vld [vmem:[%s9492_s9 + $0x110] sm:$0xff] }
  0x29   : > { %218 = vst [vmem:[%s183_s30 + $0x40] sm:$0xff] %v217_v8  ;;  %v223_v11 = vld [vmem:[%s9492_s9 + $0x118] sm:$0xff]  ;;  %220 = vst [vmem:[%s183_s30 + $0x48] sm:$0xff] %v219_v9  ;;  %v225_v12 = vld [vmem:[%s9492_s9 + $0x120] sm:$0xff] }
  0x2a   : > { %222 = vst [vmem:[%s183_s30 + $0x50] sm:$0xff] %v221_v10  ;;  %224 = vst [vmem:[%s183_s30 + $0x58] sm:$0xff] %v223_v11  ;;  %v227_v13 = vld [vmem:[%s9492_s9 + $0x128] sm:$0xff]  ;;  %v229_v14 = vld [vmem:[%s9492_s9 + $0x130] sm:$0xff] }
  0x2b   : > { %226 = vst [vmem:[%s183_s30 + $0x60] sm:$0xff] %v225_v12  ;;  %228 = vst [vmem:[%s183_s30 + $0x68] sm:$0xff] %v227_v13  ;;  %v231_v15 = vld [vmem:[%s9492_s9 + $0x138] sm:$0xff] }
  0x2c   : > { %230 = vst [vmem:[%s183_s30 + $0x70] sm:$0xff] %v229_v14  ;;  %232 = vst [vmem:[%s183_s30 + $0x78] sm:$0xff] %v231_v15 }
  0x2d PF: > { %238 = sbr.rel (!%p9472_p8) target bundleno = 53 (0x35), region = 51  ;;  %s240_s10 = sand.u32 (%p9472_p8), 1, %s9327_s16  }
  0x2e   : > { %s7523_s11 = sshll.u32 (%p9472_p8), %s9351_s22, 7  ;;  %s7521_s12 = sshll.u32 (%p9472_p8), %s240_s10, 3 }
  0x2f   : > { %s7438_s27 = sadd.s32 (%p9472_p8), %s9444_s29, %s7523_s11  ;;  %s242_s24 = scalar_lea.vmem (%p9472_p8), [#allocation4], %s7521_s12 }
  0x30   : > { %s7524_s28 = sshll.u32 (%p9472_p8), %s7438_s27, 2 }
  0x31   : > { %s7440_s7 = scalar_lea.vmem (%p9472_p8), %s14133_s1, %s7524_s28 }
  0x32   : > { %v7525_v16 = vld [vmem:[%s7440_s7 + $0x40] sm:$0xf] (%p9472_p8) }
  0x33   : > { %v7526_v17 = vld [vmem:[%s7440_s7 + $0x140] sm:$0xf] (%p9472_p8)  ;;  %265 = vst [vmem:[%s242_s24] sm:$0xf] (%p9472_p8), %v7525_v16 }
  0x34   : > { %267 = vst [vmem:[%s242_s24 + $0x4] sm:$0xf] %v7526_v17 }
  0x35 PF: > { %p7527_p12 = scmp.ge.s32.totalorder %s9355_s23, 1  ;;  %p293_p13 = scmp.lt.s32.totalorder %s9355_s23, 7 }
  0x37   : > { %p294_p0 = pnand %p7527_p12, %p293_p13 }
  0x39   : > { %297 = sbr.rel (%p294_p0) target bundleno = 1717 (0x6b5), region = 92 }
  0x40   : > { %s300_s21 = sand.u32 1, %s9331_s17   ;;  %v9357_v18 = vmov 0   ;;  %s9358_s9 = smov 127   ;;  %vm618_vm0 = vcmask 1039360   ;;  %v9620_v59 = vld [vmem:[%s14134_s2 + $0x40] sm:$0xff]   ;;  %vm651_vm1 = vcmask 130048  }
  0x41   : > { %s7528_s29 = sshll.u32 %s300_s21, 7  ;;  %821 = vmatprep.mubr.bf16.mxu1 %v9357_v18  ;;  %708 = vmatprep.mubr.bf16.mxu0 %v9357_v18  ;;  %s307_s30 = sand.u32 1, %s9323_s15   ;;  %v9632_v2 = vld [vmem:[%s14134_s2 + $0x48] sm:$0xff]   ;;  %v9646_v10 = vld [vmem:[%s14134_s2 + $0x50] sm:$0xff]   ;;  %vm2639_vm2 = vcmask 1031168   ;;  %vm3947_vm3 = vcmask 1022976  }
  0x42   : > { %s9525_s8 = scalar_lea.vmem [#allocation3], %s7528_s29  ;;  %8738 = vset.pattern.permute.xlu1 %v9357_v18  ;;  %8739 = vset.pattern.permute.xlu0 %v9357_v18  ;;  %s7529_s10 = sshll.u32 %s307_s30, 3 }
  0x43   : > { %v341_v19 = vld [vmem:[%s9525_s8 + $0x8] sm:$0xff]  ;;  %v340_v21 = vld [vmem:[%s9525_s8] sm:$0xff]  ;;  %v342_v24 = vld [vmem:[%s9525_s8 + $0x10] sm:$0xff]  ;;  %s309_s11 = scalar_lea.vmem [#allocation4], %s7529_s10  ;;  %s9359_s27 = smov 126  }
  0x44   : > { %v349_v20 = vld [vmem:[%s9525_s8 + $0x48] sm:$0xff]  ;;  %v348_v23 = vld [vmem:[%s9525_s8 + $0x40] sm:$0xff]  ;;  %v350_v25 = vld [vmem:[%s9525_s8 + $0x50] sm:$0xff]  ;;  %s9360_s6 = smov 125   ;;  %s7530_s10 = sshll.u32 %s300_s21, 10 }
  0x45   : > { %v9532_v22 = vcombine.high %v341_v19, %v349_v20  ;;  %v9537_v26 = vcombine.high %v340_v21, %v348_v23  ;;  %v9541_v27 = vcombine.low %v342_v24, %v350_v25  ;;  %v9545_v28 = vcombine.low %v341_v19, %v349_v20  ;;  %v343_v31 = vld [vmem:[%s9525_s8 + $0x18] sm:$0xff]  ;;  %v344_v35 = vld [vmem:[%s9525_s8 + $0x20] sm:$0xff]  ;;  %v345_v38 = vld [vmem:[%s9525_s8 + $0x28] sm:$0xff]  ;;  %s11433_s17 = scalar_lea.vmem [#allocation5], %s7530_s10  ;;  %s7885_s21 = sshll.u32 (%p9479_p10), %s9339_s19, 4 }
  0x46   : > { %v9549_v29 = vcombine.high %v342_v24, %v350_v25  ;;  %v9553_v30 = vcombine.low %v340_v21, %v348_v23  ;;  %v351_v32 = vld [vmem:[%s9525_s8 + $0x58] sm:$0xff]  ;;  %v352_v36 = vld [vmem:[%s9525_s8 + $0x60] sm:$0xff]  ;;  %v353_v39 = vld [vmem:[%s9525_s8 + $0x68] sm:$0xff] }
  0x47   : > { %590 = vrot.lane.b32.xlu1 %v9532_v22, %s9358_s9  ;;  %586 = vrot.lane.b32.xlu0 %v9537_v26, %s9358_s9  ;;  %v9559_v33 = vcombine.high %v343_v31, %v351_v32  ;;  %v9564_v34 = vcombine.low %v343_v31, %v351_v32  ;;  %v9570_v37 = vcombine.high %v344_v35, %v352_v36  ;;  %v346_v42 = vld [vmem:[%s9525_s8 + $0x30] sm:$0xff]  ;;  %v347_v46 = vld [vmem:[%s9525_s8 + $0x38] sm:$0xff] }
  0x48   : > { %v9576_v40 = vcombine.low %v344_v35, %v352_v36  ;;  %v9580_v41 = vcombine.high %v345_v38, %v353_v39  ;;  %v354_v43 = vld [vmem:[%s9525_s8 + $0x70] sm:$0xff]  ;;  %v9586_v44 = vcombine.low %v345_v38, %v353_v39  ;;  %v355_v47 = vld [vmem:[%s9525_s8 + $0x78] sm:$0xff]  ;;  %v9610_v51 = vld [vmem:[%s309_s11] sm:$0xff]   ;;  %s8661_s11 = smul.u32 (%p9479_p10), 384, %s9343_s20 }
  0x49   : > { %v9590_v45 = vcombine.high %v346_v42, %v354_v43  ;;  %v9596_v48 = vcombine.low %v346_v42, %v354_v43  ;;  %v9600_v49 = vcombine.high %v347_v46, %v355_v47  ;;  %v9604_v50 = vcombine.low %v347_v46, %v355_v47  ;;  %v9662_v19 = vld [vmem:[%s14134_s2 + $0x58] sm:$0xff]   ;;  %v9676_v21 = vld [vmem:[%s14134_s2 + $0x60] sm:$0xff]   ;;  %v9687_v23 = vld [vmem:[%s14134_s2 + $0x68] sm:$0xff]  }
  0x4a   : > { %v9698_v24 = vld [vmem:[%s14134_s2 + $0x70] sm:$0xff]   ;;  %v9709_v25 = vld [vmem:[%s14134_s2 + $0x78] sm:$0xff]   ;;  %v9910_v39 = vld [vmem:[%s14134_s2] sm:$0xff]   ;;  %s7141_s26 = sadd.s32 (%p9479_p10), %s8661_s11, %s7885_s21 }
  0x4b   : > { %592 = vrot.lane.b32.xlu1 %v9541_v27, %s9358_s9  ;;  %588 = vrot.lane.b32.xlu0 %v9545_v28, %s9358_s9  ;;  %v9923_v42 = vld [vmem:[%s14134_s2 + $0x8] sm:$0xff]   ;;  %v9936_v43 = vld [vmem:[%s14134_s2 + $0x10] sm:$0xff]   ;;  %s7886_s15 = sshll.u32 (%p9479_p10), %s7141_s26, 3 }
  0x4c   : > { %v9947_v46 = vld [vmem:[%s14134_s2 + $0x18] sm:$0xff]   ;;  %v9958_v47 = vld [vmem:[%s14134_s2 + $0x20] sm:$0xff]   ;;  %s13859_s20 = scalar_lea.vmem (%p9479_p10), %s14136_s4, %s7886_s15 }
  0x4f   : > { %594 = vrot.lane.b32.xlu1 %v9549_v29, %s9358_s9  ;;  %584 = vrot.lane.b32.xlu0 %v9553_v30, %s9358_s9 }
  0x53   : > { %598 = vrot.lane.b32.xlu1 %v9559_v33, %s9358_s9  ;;  %596 = vrot.lane.b32.xlu0 %v9564_v34, %s9358_s9 }
  0x57   : > { %602 = vrot.lane.b32.xlu1 %v9570_v37, %s9358_s9  ;;  %600 = vrot.lane.b32.xlu0 %v9576_v40, %s9358_s9 }
  0x5b   : > { %606 = vrot.lane.b32.xlu1 %v9580_v41, %s9358_s9  ;;  %604 = vrot.lane.b32.xlu0 %v9586_v44, %s9358_s9 }
  0x5f   : > { %610 = vrot.lane.b32.xlu1 %v9590_v45, %s9358_s9  ;;  %608 = vrot.lane.b32.xlu0 %v9596_v48, %s9358_s9 }
  0x63   : > { %614 = vrot.lane.b32.xlu1 %v9600_v49, %s9358_s9  ;;  %612 = vrot.lane.b32.xlu0 %v9604_v50, %s9358_s9 }
  0x67   : > { %616 = vrot.lane.b32.xlu0 %v9610_v51, %s9358_s9  ;;  %2607 = vrot.lane.b32.xlu1 %v9537_v26, %s9359_s27 }
  0x6b   : > { %2609 = vrot.lane.b32.xlu0 %v9545_v28, %s9359_s27  ;;  %2611 = vrot.lane.b32.xlu1 %v9532_v22, %s9359_s27 }
  0x6f   : > { %2613 = vrot.lane.b32.xlu0 %v9541_v27, %s9359_s27  ;;  %2605 = vrot.lane.b32.xlu1 %v9553_v30, %s9359_s27 }
  0x73   : > { %2615 = vrot.lane.b32.xlu0 %v9549_v29, %s9359_s27  ;;  %2617 = vrot.lane.b32.xlu1 %v9564_v34, %s9359_s27 }
  0x77   : > { %2619 = vrot.lane.b32.xlu0 %v9559_v33, %s9359_s27  ;;  %2621 = vrot.lane.b32.xlu1 %v9576_v40, %s9359_s27 }
  0x7b   : > { %2623 = vrot.lane.b32.xlu0 %v9570_v37, %s9359_s27  ;;  %2625 = vrot.lane.b32.xlu1 %v9586_v44, %s9359_s27 }
  0x7f   : > { %2627 = vrot.lane.b32.xlu0 %v9580_v41, %s9359_s27  ;;  %2629 = vrot.lane.b32.xlu1 %v9596_v48, %s9359_s27 }
  0x83   : > { %2631 = vrot.lane.b32.xlu0 %v9590_v45, %s9359_s27  ;;  %2633 = vrot.lane.b32.xlu1 %v9604_v50, %s9359_s27 }
  0x87   : > { %2635 = vrot.lane.b32.xlu0 %v9600_v49, %s9359_s27  ;;  %2637 = vrot.lane.b32.xlu1 %v9610_v51, %s9359_s27 }
  0x8b   : > { %3915 = vrot.lane.b32.xlu0 %v9537_v26, %s9360_s6  ;;  %3917 = vrot.lane.b32.xlu1 %v9545_v28, %s9360_s6 }
  0x8f   : > { %3919 = vrot.lane.b32.xlu0 %v9532_v22, %s9360_s6  ;;  %3921 = vrot.lane.b32.xlu1 %v9541_v27, %s9360_s6 }
  0x93   : > { %3913 = vrot.lane.b32.xlu0 %v9553_v30, %s9360_s6  ;;  %3923 = vrot.lane.b32.xlu1 %v9549_v29, %s9360_s6 }
  0x97   : > { %3925 = vrot.lane.b32.xlu0 %v9564_v34, %s9360_s6  ;;  %3927 = vrot.lane.b32.xlu1 %v9559_v33, %s9360_s6 }
  0x9b   : > { %3929 = vrot.lane.b32.xlu0 %v9576_v40, %s9360_s6  ;;  %3931 = vrot.lane.b32.xlu1 %v9570_v37, %s9360_s6 }
  0x9f   : > { %3933 = vrot.lane.b32.xlu0 %v9586_v44, %s9360_s6  ;;  %3935 = vrot.lane.b32.xlu1 %v9580_v41, %s9360_s6 }
  0xa3   : > { %3937 = vrot.lane.b32.xlu0 %v9596_v48, %s9360_s6  ;;  %3939 = vrot.lane.b32.xlu1 %v9590_v45, %s9360_s6 }
  0xa7   : > { %3941 = vrot.lane.b32.xlu0 %v9604_v50, %s9360_s6  ;;  %3943 = vrot.lane.b32.xlu1 %v9600_v49, %s9360_s6 }
  0xab   : > { %3945 = vrot.lane.b32.xlu0 %v9610_v51, %s9360_s6 }
  0xb9   : > { %v591_v52 = vpop.permute.xlu1 %590  ;;  %v587_v53 = vpop.permute.xlu0 %586 }
  0xbd   : > { %v593_v54 = vpop.permute.xlu1 %592  ;;  %v589_v55 = vpop.permute.xlu0 %588 }
  0xbe   : > { %v622_v56 = vsel %vm618_vm0, %v591_v52, %v593_v54  ;;  %v620_v57 = vsel %vm618_vm0, %v587_v53, %v589_v55  ;;  %v621_v58 = vsel %vm618_vm0, %v589_v55, %v591_v52  ;;  %v9969_v52 = vld [vmem:[%s14134_s2 + $0x28] sm:$0xff]  }
  0xbf   : > { %789 = vmatprep.subr.bf16.mxu1 %v622_v56  ;;  %676 = vmatprep.subr.bf16.mxu0 %v620_v57 }
  0xc0   : > { %790 = vmatpush1.bf16.msra.mxu1 %v621_v58 }
  0xc1   : > { %v595_v60 = vpop.permute.xlu1 %594  ;;  %v585_v61 = vpop.permute.xlu0 %584 }
  0xc2   : > { %v619_v62 = vsel %vm618_vm0, %v585_v61, %v587_v53  ;;  %v623_v3 = vsel %vm618_vm0, %v593_v54, %v595_v60  ;;  %v9980_v53 = vld [vmem:[%s14134_s2 + $0x30] sm:$0xff]   ;;  %v9991_v54 = vld [vmem:[%s14134_s2 + $0x38] sm:$0xff]  }
  0xc3   : > { %7580 = vmatmul.mubr.msk.bf16.vlgmr.msra.gmra.mrb[0].mxu1 %vm651_vm1, %v9620_v59  ;;  %677 = vmatpush1.bf16.msra.mxu0 %v619_v62 }
  0xc4   : > { %831 = vmatprep.mubr.bf16.mxu1 %v9357_v18 }
  0xc5   : > { %v599_v63 = vpop.permute.xlu1 %598  ;;  %v597_v0 = vpop.permute.xlu0 %596 }
  0xc6   : > { %7572 = vmatmul.mubr.msk.bf16.vlgmr.msra.gmra.mrb[0].mxu0 %vm651_vm1, %v9620_v59  ;;  %v624_v1 = vsel %vm618_vm0, %v595_v60, %v597_v0  ;;  %v625_v5 = vsel %vm618_vm0, %v597_v0, %v599_v63 }
  0xc7   : > { %902 = vmatprep.subr.bf16.mxu0 %v624_v1  ;;  %718 = vmatprep.mubr.bf16.mxu0 %v9357_v18 }
  0xc8   : > { %903 = vmatpush1.bf16.msra.mxu0 %v623_v3 }
  0xc9   : > { %v603_v4 = vpop.permute.xlu1 %602  ;;  %v601_v6 = vpop.permute.xlu0 %600 }
  0xca   : > { %v626_v7 = vsel %vm618_vm0, %v599_v63, %v601_v6  ;;  %v627_v38 = vsel %vm618_vm0, %v601_v6, %v603_v4 }
  0xcb   : > { %7581 = vmatmul.mubr.msk.bf16.gmra.mrb[4].mxu1 %vm651_vm1, %v9632_v2  ;;  %1015 = vmatprep.subr.bf16.mxu1 %v626_v7 }
  0xcc   : > { %841 = vmatprep.mubr.bf16.mxu1 %v9357_v18  ;;  %1016 = vmatpush1.bf16.msra.mxu1 %v625_v5 }
  0xcd   : > { %v607_v8 = vpop.permute.xlu1 %606  ;;  %v605_v9 = vpop.permute.xlu0 %604 }
  0xce   : > { %7573 = vmatmul.mubr.msk.bf16.gmra.mrb[4].mxu0 %vm651_vm1, %v9632_v2  ;;  %v628_v11 = vsel %vm618_vm0, %v603_v4, %v605_v9  ;;  %v629_v32 = vsel %vm618_vm0, %v605_v9, %v607_v8 }
  0xcf   : > { %728 = vmatprep.mubr.bf16.mxu0 %v9357_v18  ;;  %1128 = vmatprep.subr.bf16.mxu0 %v628_v11 }
  0xd1   : > { %v611_v12 = vpop.permute.xlu1 %610  ;;  %v609_v13 = vpop.permute.xlu0 %608 }
  0xd2   : > { %v630_v14 = vsel %vm618_vm0, %v607_v8, %v609_v13  ;;  %v9654_v15 = vsel %vm618_vm0, %v609_v13, %v611_v12 }
  0xd3   : > { %7582 = vmatmul.mubr.msk.bf16.gmra.mrb[8].mxu1 %vm651_vm1, %v9646_v10  ;;  %1241 = vmatprep.subr.bf16.mxu1 %v630_v14 }
  0xd4   : > { %851 = vmatprep.mubr.bf16.mxu1 %v9357_v18 }
  0xd5   : > { %v615_v16 = vpop.permute.xlu1 %614  ;;  %v613_v17 = vpop.permute.xlu0 %612 }
  0xd6   : > { %7574 = vmatmul.mubr.msk.bf16.gmra.mrb[8].mxu0 %vm651_vm1, %v9646_v10  ;;  %v9665_v20 = vsel %vm618_vm0, %v613_v17, %v615_v16  ;;  %v632_v36 = vsel %vm618_vm0, %v611_v12, %v613_v17 }
  0xd7   : > { %738 = vmatprep.mubr.bf16.mxu0 %v9357_v18 }
  0xd9   : > { %v617_v31 = vpop.permute.xlu0 %616 }
  0xda   : > { %v634_v35 = vsel %vm618_vm0, %v615_v16, %v617_v31 }
  0xdb   : > { %7583 = vmatmul.mubr.msk.bf16.gmra.mrb[12].mxu1 %vm651_vm1, %v9662_v19 }
  0xdc   : > { %861 = vmatprep.mubr.bf16.mxu1 %v9357_v18 }
  0xdd   : > { %v9999_v55 = vpop.permute.xlu0 %2609 }
  0xde   : > { %7575 = vmatmul.mubr.msk.bf16.gmra.mrb[12].mxu0 %vm651_vm1, %v9662_v19 }
  0xdf   : > { %748 = vmatprep.mubr.bf16.mxu0 %v9357_v18 }
  0xe1   : > { %v2614_v56 = vpop.permute.xlu0 %2613 }
  0xe3   : > { %7584 = vmatmul.mubr.msk.bf16.gmra.mrb[16].mxu1 %vm651_vm1, %v9676_v21 }
  0xe4   : > { %871 = vmatprep.mubr.bf16.mxu1 %v9357_v18 }
  0xe5   : > { %v10011_v57 = vpop.permute.xlu0 %2615 }
  0xe6   : > { %7576 = vmatmul.mubr.msk.bf16.gmra.mrb[16].mxu0 %vm651_vm1, %v9676_v21  ;;  %v10016_v58 = vsel %vm2639_vm2, %v2614_v56, %v10011_v57 }
  0xe7   : > { %758 = vmatprep.mubr.bf16.mxu0 %v9357_v18 }
  0xe9   : > { %v10063_v63 = vpop.permute.xlu0 %2619 }
  0xeb   : > { %7585 = vmatmul.mubr.msk.bf16.gmra.mrb[20].mxu1 %vm651_vm1, %v9687_v23 }
  0xec   : > { %881 = vmatprep.mubr.bf16.mxu1 %v9357_v18 }
  0xed   : > { %v10075_v3 = vpop.permute.xlu0 %2623 }
  0xee   : > { %7577 = vmatmul.mubr.msk.bf16.gmra.mrb[20].mxu0 %vm651_vm1, %v9687_v23 }
  0xef   : > { %768 = vmatprep.mubr.bf16.mxu0 %v9357_v18 }
  0xf1   : > { %v10129_v7 = vpop.permute.xlu0 %2627 }
  0xf3   : > { %7586 = vmatmul.mubr.msk.bf16.gmra.mrb[24].mxu1 %vm651_vm1, %v9698_v24 }
  0xf4   : > { %891 = vmatprep.mubr.bf16.mxu1 %v9357_v18 }
  0xf5   : > { %v10141_v12 = vpop.permute.xlu0 %2631 }
  0xf6   : > { %7578 = vmatmul.mubr.msk.bf16.gmra.mrb[24].mxu0 %vm651_vm1, %v9698_v24 }
  0xf7   : > { %778 = vmatprep.mubr.bf16.mxu0 %v9357_v18 }
  0xfb   : > { %7587 = vmatmul.mubr.msk.bf16.gmra.mrb[28].mxu1 %vm651_vm1, %v9709_v25 }
  0xfc   : > { %1047 = vmatprep.mubr.bf16.mxu1 %v9357_v18 }
  0xfe   : > { %7579 = vmatmul.mubr.msk.bf16.gmra.mrb[28].mxu0 %vm651_vm1, %v9709_v25 }
  0xff   : > { %934 = vmatprep.mubr.bf16.mxu0 %v9357_v18 }
 0x103   : > { %7596 = vmatmul.mubr.msk.bf16.vlgmr.msra.gmra.mrb[32].mxu1 %vm651_vm1, %v9620_v59 }
 0x104   : > { %1242 = vmatpush1.bf16.msra.mxu1 %v629_v32  ;;  %1057 = vmatprep.mubr.bf16.mxu1 %v9357_v18 }
 0x105   : > { %1467 = vmatprep.subr.bf16.mxu1 %v634_v35 }
 0x106   : > { %7588 = vmatmul.mubr.msk.bf16.vlgmr.msra.gmra.mrb[32].mxu0 %vm651_vm1, %v9620_v59 }
 0x107   : > { %1129 = vmatpush1.bf16.msra.mxu0 %v627_v38  ;;  %944 = vmatprep.mubr.bf16.mxu0 %v9357_v18 }
 0x108   : > { %1354 = vmatprep.subr.bf16.mxu0 %v632_v36 }
 0x10b   : > { %7597 = vmatmul.mubr.msk.bf16.gmra.mrb[36].mxu1 %vm651_vm1, %v9632_v2 }
 0x10c   : > { %1067 = vmatprep.mubr.bf16.mxu1 %v9357_v18 }
 0x10e   : > { %7589 = vmatmul.mubr.msk.bf16.gmra.mrb[36].mxu0 %vm651_vm1, %v9632_v2 }
 0x10f   : > { %954 = vmatprep.mubr.bf16.mxu0 %v9357_v18 }
 0x113   : > { %7598 = vmatmul.mubr.msk.bf16.gmra.mrb[40].mxu1 %vm651_vm1, %v9646_v10 }
 0x114   : > { %1077 = vmatprep.mubr.bf16.mxu1 %v9357_v18 }
 0x116   : > { %7590 = vmatmul.mubr.msk.bf16.gmra.mrb[40].mxu0 %vm651_vm1, %v9646_v10 }
 0x117   : > { %964 = vmatprep.mubr.bf16.mxu0 %v9357_v18 }
 0x11b   : > { %7599 = vmatmul.mubr.msk.bf16.gmra.mrb[44].mxu1 %vm651_vm1, %v9662_v19 }
 0x11c   : > { %1087 = vmatprep.mubr.bf16.mxu1 %v9357_v18 }
 0x11e   : > { %7591 = vmatmul.mubr.msk.bf16.gmra.mrb[44].mxu0 %vm651_vm1, %v9662_v19 }
 0x11f   : > { %974 = vmatprep.mubr.bf16.mxu0 %v9357_v18 }
 0x123   : > { %7600 = vmatmul.mubr.msk.bf16.gmra.mrb[48].mxu1 %vm651_vm1, %v9676_v21 }
 0x124   : > { %1097 = vmatprep.mubr.bf16.mxu1 %v9357_v18 }
 0x126   : > { %7592 = vmatmul.mubr.msk.bf16.gmra.mrb[48].mxu0 %vm651_vm1, %v9676_v21 }
 0x127   : > { %984 = vmatprep.mubr.bf16.mxu0 %v9357_v18 }
 0x12b   : > { %7601 = vmatmul.mubr.msk.bf16.gmra.mrb[52].mxu1 %vm651_vm1, %v9687_v23 }
 0x12c   : > { %1107 = vmatprep.mubr.bf16.mxu1 %v9357_v18 }
 0x12e   : > { %7593 = vmatmul.mubr.msk.bf16.gmra.mrb[52].mxu0 %vm651_vm1, %v9687_v23 }
 0x12f   : > { %994 = vmatprep.mubr.bf16.mxu0 %v9357_v18 }
 0x133   : > { %7602 = vmatmul.mubr.msk.bf16.gmra.mrb[56].mxu1 %vm651_vm1, %v9698_v24 }
 0x134   : > { %1117 = vmatprep.mubr.bf16.mxu1 %v9357_v18 }
 0x136   : > { %7594 = vmatmul.mubr.msk.bf16.gmra.mrb[56].mxu0 %vm651_vm1, %v9698_v24 }
 0x137   : > { %1004 = vmatprep.mubr.bf16.mxu0 %v9357_v18 }
 0x13b   : > { %7603 = vmatmul.mubr.msk.bf16.gmra.mrb[60].mxu1 %vm651_vm1, %v9709_v25 }
 0x13c   : > { %1273 = vmatprep.mubr.bf16.mxu1 %v9357_v18 }
 0x13e   : > { %7595 = vmatmul.mubr.msk.bf16.gmra.mrb[60].mxu0 %vm651_vm1, %v9709_v25 }
 0x13f   : > { %1160 = vmatprep.mubr.bf16.mxu0 %v9357_v18 }
 0x143   : > { %7612 = vmatmul.mubr.msk.bf16.vlgmr.msra.gmra.mrb[64].mxu1 %vm651_vm1, %v9620_v59 }
 0x144   : > { %1468 = vmatpush1.bf16.msra.mxu1 %v9665_v20  ;;  %1283 = vmatprep.mubr.bf16.mxu1 %v9357_v18 }
 0x145   : > { %1757 = vmatprep.subr.bf16.mxu1 %v9532_v22  ;;  %v10225_v22 = vld [vmem:[%s14134_s2 + $0x80] sm:$0xff]  }
 0x146   : > { %7604 = vmatmul.mubr.msk.bf16.vlgmr.msra.gmra.mrb[64].mxu0 %vm651_vm1, %v9620_v59 }
 0x147   : > { %1355 = vmatpush1.bf16.msra.mxu0 %v9654_v15  ;;  %1170 = vmatprep.mubr.bf16.mxu0 %v9357_v18 }
 0x148   : > { %1644 = vmatprep.subr.bf16.mxu0 %v9537_v26 }
 0x14b   : > { %7613 = vmatmul.mubr.msk.bf16.gmra.mrb[68].mxu1 %vm651_vm1, %v9632_v2 }
 0x14c   : > { %1293 = vmatprep.mubr.bf16.mxu1 %v9357_v18 }
 0x14e   : > { %7605 = vmatmul.mubr.msk.bf16.gmra.mrb[68].mxu0 %vm651_vm1, %v9632_v2 }
 0x14f   : > { %1180 = vmatprep.mubr.bf16.mxu0 %v9357_v18 }
 0x153   : > { %7614 = vmatmul.mubr.msk.bf16.gmra.mrb[72].mxu1 %vm651_vm1, %v9646_v10 }
 0x154   : > { %1303 = vmatprep.mubr.bf16.mxu1 %v9357_v18 }
 0x156   : > { %7606 = vmatmul.mubr.msk.bf16.gmra.mrb[72].mxu0 %vm651_vm1, %v9646_v10 }
 0x157   : > { %1190 = vmatprep.mubr.bf16.mxu0 %v9357_v18 }
 0x15b   : > { %7615 = vmatmul.mubr.msk.bf16.gmra.mrb[76].mxu1 %vm651_vm1, %v9662_v19 }
 0x15c   : > { %1313 = vmatprep.mubr.bf16.mxu1 %v9357_v18 }
 0x15e   : > { %7607 = vmatmul.mubr.msk.bf16.gmra.mrb[76].mxu0 %vm651_vm1, %v9662_v19 }
 0x15f   : > { %1200 = vmatprep.mubr.bf16.mxu0 %v9357_v18 }
 0x163   : > { %7616 = vmatmul.mubr.msk.bf16.gmra.mrb[80].mxu1 %vm651_vm1, %v9676_v21 }
 0x164   : > { %1323 = vmatprep.mubr.bf16.mxu1 %v9357_v18 }
 0x166   : > { %7608 = vmatmul.mubr.msk.bf16.gmra.mrb[80].mxu0 %vm651_vm1, %v9676_v21 }
 0x167   : > { %1210 = vmatprep.mubr.bf16.mxu0 %v9357_v18 }
 0x16b   : > { %7617 = vmatmul.mubr.msk.bf16.gmra.mrb[84].mxu1 %vm651_vm1, %v9687_v23 }
 0x16c   : > { %1333 = vmatprep.mubr.bf16.mxu1 %v9357_v18 }
 0x16e   : > { %7609 = vmatmul.mubr.msk.bf16.gmra.mrb[84].mxu0 %vm651_vm1, %v9687_v23 }
 0x16f   : > { %1220 = vmatprep.mubr.bf16.mxu0 %v9357_v18 }
 0x173   : > { %7618 = vmatmul.mubr.msk.bf16.gmra.mrb[88].mxu1 %vm651_vm1, %v9698_v24 }
 0x174   : > { %1343 = vmatprep.mubr.bf16.mxu1 %v9357_v18 }
 0x176   : > { %7610 = vmatmul.mubr.msk.bf16.gmra.mrb[88].mxu0 %vm651_vm1, %v9698_v24 }
 0x177   : > { %1230 = vmatprep.mubr.bf16.mxu0 %v9357_v18 }
 0x17b   : > { %7619 = vmatmul.mubr.msk.bf16.gmra.mrb[92].mxu1 %vm651_vm1, %v9709_v25 }
 0x17c   : > { %1499 = vmatprep.mubr.bf16.mxu1 %v9357_v18 }
 0x17e   : > { %7611 = vmatmul.mubr.msk.bf16.gmra.mrb[92].mxu0 %vm651_vm1, %v9709_v25 }
 0x17f   : > { %1386 = vmatprep.mubr.bf16.mxu0 %v9357_v18 }
 0x183   : > { %7628 = vmatmul.mubr.msk.bf16.vlgmr.msra.gmra.mrb[96].mxu1 %vm651_vm1, %v9620_v59 }
 0x184   : > { %1509 = vmatprep.mubr.bf16.mxu1 %v9357_v18  ;;  %1758 = vmatpush1.bf16.msra.mxu1 %v9545_v28 }
 0x185   : > { %1983 = vmatprep.subr.bf16.mxu1 %v9559_v33  ;;  %v10267_v33 = vld [vmem:[%s14134_s2 + $0x98] sm:$0xff]  }
 0x186   : > { %7620 = vmatmul.mubr.msk.bf16.vlgmr.msra.gmra.mrb[96].mxu0 %vm651_vm1, %v9620_v59  ;;  %v2608_v59 = vpop.permute.xlu1 %2607 }
 0x187   : > { %1645 = vmatpush1.bf16.msra.mxu0 %v9553_v30  ;;  %1396 = vmatprep.mubr.bf16.mxu0 %v9357_v18  ;;  %v2641_v1 = vsel %vm2639_vm2, %v2608_v59, %v9999_v55  ;;  %v10256_v30 = vld [vmem:[%s14134_s2 + $0x90] sm:$0xff]  }
 0x188   : > { %1870 = vmatprep.subr.bf16.mxu0 %v9549_v29  ;;  %v10244_v29 = vld [vmem:[%s14134_s2 + $0x88] sm:$0xff]  }
 0x18a   : > { %v2612_v60 = vpop.permute.xlu1 %2611 }
 0x18b   : > { %7629 = vmatmul.mubr.msk.bf16.gmra.mrb[100].mxu1 %vm651_vm1, %v9632_v2  ;;  %v2643_v62 = vsel %vm2639_vm2, %v2612_v60, %v2614_v56  ;;  %v2642_v5 = vsel %vm2639_vm2, %v9999_v55, %v2612_v60  ;;  %v10514_v56 = vld [vmem:[%s14134_s2 + $0xc0] sm:$0xff]   ;;  %v10533_v60 = vld [vmem:[%s14134_s2 + $0xc8] sm:$0xff]  }
 0x18c   : > { %1519 = vmatprep.mubr.bf16.mxu1 %v9357_v18 }
 0x18e   : > { %7621 = vmatmul.mubr.msk.bf16.gmra.mrb[100].mxu0 %vm651_vm1, %v9632_v2  ;;  %v2606_v61 = vpop.permute.xlu1 %2605 }
 0x18f   : > { %1406 = vmatprep.mubr.bf16.mxu0 %v9357_v18  ;;  %v2640_v9 = vsel %vm2639_vm2, %v2606_v61, %v2608_v59  ;;  %v6572_v61 = vld [vmem:[%s14135_s3] sm:$0xff] }
 0x190   : > { %6582 = vperm.xlu1 %8738, %v6572_v61  }
 0x192   : > { %v10067_v0 = vpop.permute.xlu1 %2617 }
 0x193   : > { %7630 = vmatmul.mubr.msk.bf16.gmra.mrb[104].mxu1 %vm651_vm1, %v9646_v10  ;;  %v2646_v26 = vsel %vm2639_vm2, %v10067_v0, %v10063_v63 }
 0x194   : > { %1529 = vmatprep.mubr.bf16.mxu1 %v9357_v18 }
 0x196   : > { %7622 = vmatmul.mubr.msk.bf16.gmra.mrb[104].mxu0 %vm651_vm1, %v9646_v10  ;;  %v2622_v2 = vpop.permute.xlu1 %2621  ;;  %v2645_v10 = vsel %vm2639_vm2, %v10011_v57, %v10067_v0  ;;  %v6574_v0 = vld [vmem:[%s14135_s3 + $0x10] sm:$0xff] }
 0x197   : > { %1416 = vmatprep.mubr.bf16.mxu0 %v9357_v18  ;;  %v10079_v4 = vsel %vm2639_vm2, %v2622_v2, %v10075_v3  ;;  %v2647_v6 = vsel %vm2639_vm2, %v10063_v63, %v2622_v2  ;;  %v10551_v63 = vld [vmem:[%s14134_s2 + $0xd0] sm:$0xff]   ;;  %6592 = vperm.xlu1 %8738, %v6574_v0   ;;  %v10568_v2 = vld [vmem:[%s14134_s2 + $0xd8] sm:$0xff]  }
 0x19a   : > { %v10132_v8 = vpop.permute.xlu1 %2625 }
 0x19b   : > { %7631 = vmatmul.mubr.msk.bf16.gmra.mrb[108].mxu1 %vm651_vm1, %v9662_v19  ;;  %v2649_v28 = vsel %vm2639_vm2, %v10075_v3, %v10132_v8  ;;  %v6576_v3 = vld [vmem:[%s14135_s3 + $0x20] sm:$0xff] }
 0x19c   : > { %1539 = vmatprep.mubr.bf16.mxu1 %v9357_v18 }
 0x19e   : > { %7623 = vmatmul.mubr.msk.bf16.gmra.mrb[108].mxu0 %vm651_vm1, %v9662_v19  ;;  %v2630_v11 = vpop.permute.xlu1 %2629 }
 0x19f   : > { %1426 = vmatprep.mubr.bf16.mxu0 %v9357_v18  ;;  %v10147_v13 = vsel %vm2639_vm2, %v2630_v11, %v10141_v12 }
 0x1a3   : > { %7632 = vmatmul.mubr.msk.bf16.gmra.mrb[112].mxu1 %vm651_vm1, %v9676_v21 }
 0x1a4   : > { %1549 = vmatprep.mubr.bf16.mxu1 %v9357_v18 }
 0x1a6   : > { %7624 = vmatmul.mubr.msk.bf16.gmra.mrb[112].mxu0 %vm651_vm1, %v9676_v21 }
 0x1a7   : > { %1436 = vmatprep.mubr.bf16.mxu0 %v9357_v18 }
 0x1ab   : > { %7633 = vmatmul.mubr.msk.bf16.gmra.mrb[116].mxu1 %vm651_vm1, %v9687_v23 }
 0x1ac   : > { %1559 = vmatprep.mubr.bf16.mxu1 %v9357_v18 }
 0x1ae   : > { %7625 = vmatmul.mubr.msk.bf16.gmra.mrb[116].mxu0 %vm651_vm1, %v9687_v23 }
 0x1af   : > { %1446 = vmatprep.mubr.bf16.mxu0 %v9357_v18 }
 0x1b3   : > { %7634 = vmatmul.mubr.msk.bf16.gmra.mrb[120].mxu1 %vm651_vm1, %v9698_v24 }
 0x1b4   : > { %1569 = vmatprep.mubr.bf16.mxu1 %v9357_v18 }
 0x1b6   : > { %7626 = vmatmul.mubr.msk.bf16.gmra.mrb[120].mxu0 %vm651_vm1, %v9698_v24 }
 0x1b7   : > { %1456 = vmatprep.mubr.bf16.mxu0 %v9357_v18 }
 0x1bb   : > { %7635 = vmatmul.mubr.msk.bf16.gmra.mrb[124].mxu1 %vm651_vm1, %v9709_v25 }
 0x1bc   : > { %1789 = vmatprep.mubr.bf16.mxu1 %v9357_v18 }
 0x1be   : > { %7627 = vmatmul.mubr.msk.bf16.gmra.mrb[124].mxu0 %vm651_vm1, %v9709_v25 }
 0x1bf   : > { %1676 = vmatprep.mubr.bf16.mxu0 %v9357_v18 }
 0x1c3   : > { %7652 = vmatmul.mubr.msk.bf16.vlgmr.msra.gmra.mrb[0].mxu1 %vm651_vm1, %v9910_v39 }
 0x1c4   : > { %1799 = vmatprep.mubr.bf16.mxu1 %v9357_v18  ;;  %1984 = vmatpush1.bf16.msra.mxu1 %v9564_v34  ;;  %v10278_v34 = vld [vmem:[%s14134_s2 + $0xa0] sm:$0xff]  }
 0x1c5   : > { %2209 = vmatprep.subr.bf16.mxu1 %v9580_v41  ;;  %v10311_v41 = vld [vmem:[%s14134_s2 + $0xb8] sm:$0xff]  }
 0x1c6   : > { %7644 = vmatmul.mubr.msk.bf16.vlgmr.msra.gmra.mrb[0].mxu0 %vm651_vm1, %v9910_v39 }
 0x1c7   : > { %1871 = vmatpush1.bf16.msra.mxu0 %v9541_v27  ;;  %1686 = vmatprep.mubr.bf16.mxu0 %v9357_v18  ;;  %v2651_v27 = vsel %vm2639_vm2, %v10129_v7, %v2630_v11 }
 0x1c8   : > { %2096 = vmatprep.subr.bf16.mxu0 %v9570_v37  ;;  %v10289_v37 = vld [vmem:[%s14134_s2 + $0xa8] sm:$0xff]  }
 0x1cb   : > { %7653 = vmatmul.mubr.msk.bf16.gmra.mrb[4].mxu1 %vm651_vm1, %v9923_v42 }
 0x1cc   : > { %1809 = vmatprep.mubr.bf16.mxu1 %v9357_v18 }
 0x1ce   : > { %7645 = vmatmul.mubr.msk.bf16.gmra.mrb[4].mxu0 %vm651_vm1, %v9923_v42 }
 0x1cf   : > { %1696 = vmatprep.mubr.bf16.mxu0 %v9357_v18 }
 0x1d3   : > { %7654 = vmatmul.mubr.msk.bf16.gmra.mrb[8].mxu1 %vm651_vm1, %v9936_v43 }
 0x1d4   : > { %1819 = vmatprep.mubr.bf16.mxu1 %v9357_v18 }
 0x1d6   : > { %7646 = vmatmul.mubr.msk.bf16.gmra.mrb[8].mxu0 %vm651_vm1, %v9936_v43 }
 0x1d7   : > { %1706 = vmatprep.mubr.bf16.mxu0 %v9357_v18 }
 0x1db   : > { %7655 = vmatmul.mubr.msk.bf16.gmra.mrb[12].mxu1 %vm651_vm1, %v9947_v46 }
 0x1dc   : > { %1829 = vmatprep.mubr.bf16.mxu1 %v9357_v18 }
 0x1de   : > { %7647 = vmatmul.mubr.msk.bf16.gmra.mrb[12].mxu0 %vm651_vm1, %v9947_v46 }
 0x1df   : > { %1716 = vmatprep.mubr.bf16.mxu0 %v9357_v18 }
 0x1e3   : > { %7656 = vmatmul.mubr.msk.bf16.gmra.mrb[16].mxu1 %vm651_vm1, %v9958_v47 }
 0x1e4   : > { %1839 = vmatprep.mubr.bf16.mxu1 %v9357_v18 }
 0x1e6   : > { %7648 = vmatmul.mubr.msk.bf16.gmra.mrb[16].mxu0 %vm651_vm1, %v9958_v47 }
 0x1e7   : > { %1726 = vmatprep.mubr.bf16.mxu0 %v9357_v18 }
 0x1eb   : > { %7657 = vmatmul.mubr.msk.bf16.gmra.mrb[20].mxu1 %vm651_vm1, %v9969_v52 }
 0x1ec   : > { %1849 = vmatprep.mubr.bf16.mxu1 %v9357_v18 }
 0x1ee   : > { %7649 = vmatmul.mubr.msk.bf16.gmra.mrb[20].mxu0 %vm651_vm1, %v9969_v52 }
 0x1ef   : > { %1736 = vmatprep.mubr.bf16.mxu0 %v9357_v18 }
 0x1f3   : > { %7658 = vmatmul.mubr.msk.bf16.gmra.mrb[24].mxu1 %vm651_vm1, %v9980_v53 }
 0x1f4   : > { %1859 = vmatprep.mubr.bf16.mxu1 %v9357_v18 }
 0x1f6   : > { %7650 = vmatmul.mubr.msk.bf16.gmra.mrb[24].mxu0 %vm651_vm1, %v9980_v53 }
 0x1f7   : > { %1746 = vmatprep.mubr.bf16.mxu0 %v9357_v18 }
 0x1fb   : > { %7659 = vmatmul.mubr.msk.bf16.gmra.mrb[28].mxu1 %vm651_vm1, %v9991_v54 }
 0x1fc   : > { %2015 = vmatprep.mubr.bf16.mxu1 %v9357_v18 }
 0x1fe   : > { %7651 = vmatmul.mubr.msk.bf16.gmra.mrb[28].mxu0 %vm651_vm1, %v9991_v54 }
 0x1ff   : > { %1902 = vmatprep.mubr.bf16.mxu0 %v9357_v18 }
 0x203   : > { %7668 = vmatmul.mubr.msk.bf16.vlgmr.msra.gmra.mrb[32].mxu1 %vm651_vm1, %v9910_v39 }
 0x204   : > { %2025 = vmatprep.mubr.bf16.mxu1 %v9357_v18  ;;  %2210 = vmatpush1.bf16.msra.mxu1 %v9586_v44  ;;  %v2634_v44 = vpop.permute.xlu1 %2633 }
 0x205   : > { %2435 = vmatprep.subr.bf16.mxu1 %v9600_v49  ;;  %v2653_v15 = vsel %vm2639_vm2, %v10141_v12, %v2634_v44 }
 0x206   : > { %7660 = vmatmul.mubr.msk.bf16.vlgmr.msra.gmra.mrb[32].mxu0 %vm651_vm1, %v9910_v39 }
 0x207   : > { %2097 = vmatpush1.bf16.msra.mxu0 %v9576_v40  ;;  %1912 = vmatprep.mubr.bf16.mxu0 %v9357_v18  ;;  %v10300_v40 = vld [vmem:[%s14134_s2 + $0xb0] sm:$0xff]  }
 0x208   : > { %2322 = vmatprep.subr.bf16.mxu0 %v9590_v45  ;;  %v2638_v45 = vpop.permute.xlu1 %2637 }
 0x20b   : > { %7669 = vmatmul.mubr.msk.bf16.gmra.mrb[36].mxu1 %vm651_vm1, %v9923_v42 }
 0x20c   : > { %2035 = vmatprep.mubr.bf16.mxu1 %v9357_v18  ;;  %v10319_v49 = vpop.permute.xlu1 %3917 }
 0x20e   : > { %7661 = vmatmul.mubr.msk.bf16.gmra.mrb[36].mxu0 %vm651_vm1, %v9923_v42 }
 0x20f   : > { %1922 = vmatprep.mubr.bf16.mxu0 %v9357_v18 }
 0x210   : > { %v3922_v14 = vpop.permute.xlu1 %3921 }
 0x213   : > { %7670 = vmatmul.mubr.msk.bf16.gmra.mrb[40].mxu1 %vm651_vm1, %v9936_v43 }
 0x214   : > { %2045 = vmatprep.mubr.bf16.mxu1 %v9357_v18  ;;  %v10335_v16 = vpop.permute.xlu1 %3923 }
 0x215   : > { %v10339_v17 = vsel %vm3947_vm3, %v3922_v14, %v10335_v16 }
 0x216   : > { %7662 = vmatmul.mubr.msk.bf16.gmra.mrb[40].mxu0 %vm651_vm1, %v9936_v43 }
 0x217   : > { %1932 = vmatprep.mubr.bf16.mxu0 %v9357_v18 }
 0x218   : > { %v10387_v25 = vpop.permute.xlu1 %3927 }
 0x21b   : > { %7671 = vmatmul.mubr.msk.bf16.gmra.mrb[44].mxu1 %vm651_vm1, %v9947_v46 }
 0x21c   : > { %2055 = vmatprep.mubr.bf16.mxu1 %v9357_v18  ;;  %v10398_v36 = vpop.permute.xlu1 %3931 }
 0x21e   : > { %7663 = vmatmul.mubr.msk.bf16.gmra.mrb[44].mxu0 %vm651_vm1, %v9947_v46 }
 0x21f   : > { %1942 = vmatprep.mubr.bf16.mxu0 %v9357_v18 }
 0x223   : > { %7672 = vmatmul.mubr.msk.bf16.gmra.mrb[48].mxu1 %vm651_vm1, %v9958_v47 }
 0x224   : > { %2065 = vmatprep.mubr.bf16.mxu1 %v9357_v18 }
 0x226   : > { %7664 = vmatmul.mubr.msk.bf16.gmra.mrb[48].mxu0 %vm651_vm1, %v9958_v47 }
 0x227   : > { %1952 = vmatprep.mubr.bf16.mxu0 %v9357_v18 }
 0x22b   : > { %7673 = vmatmul.mubr.msk.bf16.gmra.mrb[52].mxu1 %vm651_vm1, %v9969_v52 }
 0x22c   : > { %2075 = vmatprep.mubr.bf16.mxu1 %v9357_v18 }
 0x22e   : > { %7665 = vmatmul.mubr.msk.bf16.gmra.mrb[52].mxu0 %vm651_vm1, %v9969_v52 }
 0x22f   : > { %1962 = vmatprep.mubr.bf16.mxu0 %v9357_v18 }
 0x233   : > { %7674 = vmatmul.mubr.msk.bf16.gmra.mrb[56].mxu1 %vm651_vm1, %v9980_v53 }
 0x234   : > { %2085 = vmatprep.mubr.bf16.mxu1 %v9357_v18 }
 0x236   : > { %7666 = vmatmul.mubr.msk.bf16.gmra.mrb[56].mxu0 %vm651_vm1, %v9980_v53 }
 0x237   : > { %1972 = vmatprep.mubr.bf16.mxu0 %v9357_v18 }
 0x23b   : > { %7675 = vmatmul.mubr.msk.bf16.gmra.mrb[60].mxu1 %vm651_vm1, %v9991_v54 }
 0x23c   : > { %2241 = vmatprep.mubr.bf16.mxu1 %v9357_v18 }
 0x23e   : > { %7667 = vmatmul.mubr.msk.bf16.gmra.mrb[60].mxu0 %vm651_vm1, %v9991_v54 }
 0x23f   : > { %2128 = vmatprep.mubr.bf16.mxu0 %v9357_v18 }
 0x243   : > { %7684 = vmatmul.mubr.msk.bf16.vlgmr.msra.gmra.mrb[64].mxu1 %vm651_vm1, %v9910_v39 }
 0x244   : > { %2251 = vmatprep.mubr.bf16.mxu1 %v9357_v18  ;;  %2436 = vmatpush1.bf16.msra.mxu1 %v9604_v50  ;;  %v2650_v50 = vsel %vm2639_vm2, %v10132_v8, %v10129_v7  ;;  %v6579_v7 = vld [vmem:[%s14135_s3 + $0x38] sm:$0xff]  ;;  %v10602_v8 = vld [vmem:[%s14134_s2 + $0xe8] sm:$0xff]  }
 0x245   : > { %2809 = vmatprep.subr.bf16.mxu1 %v2643_v62  ;;  %v6573_v62 = vld [vmem:[%s14135_s3 + $0x8] sm:$0xff] }
 0x246   : > { %7676 = vmatmul.mubr.msk.bf16.vlgmr.msra.gmra.mrb[64].mxu0 %vm651_vm1, %v9910_v39  ;;  %6587 = vperm.xlu0 %8739, %v6573_v62  }
 0x247   : > { %2323 = vmatpush1.bf16.msra.mxu0 %v9596_v48  ;;  %2138 = vmatprep.mubr.bf16.mxu0 %v9357_v18  ;;  %v2636_v48 = vpop.permute.xlu0 %2635 }
 0x248   : > { %2696 = vmatprep.subr.bf16.mxu0 %v2641_v1  ;;  %v2655_v51 = vsel %vm2639_vm2, %v2636_v48, %v2638_v45  ;;  %v2654_v23 = vsel %vm2639_vm2, %v2634_v44, %v2636_v48  ;;  %v6575_v1 = vld [vmem:[%s14135_s3 + $0x18] sm:$0xff] }
 0x249   : > { %6597 = vperm.xlu1 %8738, %v6575_v1  }
 0x24a   : > { %6602 = vperm.xlu0 %8739, %v6576_v3  }
 0x24b   : > { %7685 = vmatmul.mubr.msk.bf16.gmra.mrb[68].mxu1 %vm651_vm1, %v9923_v42  ;;  %v3916_v19 = vpop.permute.xlu0 %3915 }
 0x24c   : > { %2261 = vmatprep.mubr.bf16.mxu1 %v9357_v18  ;;  %v3949_v32 = vsel %vm3947_vm3, %v3916_v19, %v10319_v49 }
 0x24e   : > { %7677 = vmatmul.mubr.msk.bf16.gmra.mrb[68].mxu0 %vm651_vm1, %v9923_v42 }
 0x24f   : > { %2148 = vmatprep.mubr.bf16.mxu0 %v9357_v18  ;;  %v3920_v20 = vpop.permute.xlu0 %3919 }
 0x250   : > { %v3951_v24 = vsel %vm3947_vm3, %v3920_v20, %v3922_v14 }
 0x253   : > { %7686 = vmatmul.mubr.msk.bf16.gmra.mrb[72].mxu1 %vm651_vm1, %v9936_v43  ;;  %v3914_v21 = vpop.permute.xlu0 %3913 }
 0x254   : > { %2271 = vmatprep.mubr.bf16.mxu1 %v9357_v18 }
 0x256   : > { %7678 = vmatmul.mubr.msk.bf16.gmra.mrb[72].mxu0 %vm651_vm1, %v9936_v43 }
 0x257   : > { %2158 = vmatprep.mubr.bf16.mxu0 %v9357_v18  ;;  %v10390_v31 = vpop.permute.xlu0 %3925 }
 0x258   : > { %v3954_v57 = vsel %vm3947_vm3, %v10390_v31, %v10387_v25 }
 0x25b   : > { %7687 = vmatmul.mubr.msk.bf16.gmra.mrb[76].mxu1 %vm651_vm1, %v9947_v46  ;;  %v3930_v35 = vpop.permute.xlu0 %3929 }
 0x25c   : > { %2281 = vmatprep.mubr.bf16.mxu1 %v9357_v18  ;;  %v10402_v38 = vsel %vm3947_vm3, %v3930_v35, %v10398_v36 }
 0x25e   : > { %7679 = vmatmul.mubr.msk.bf16.gmra.mrb[76].mxu0 %vm651_vm1, %v9947_v46 }
 0x25f   : > { %2168 = vmatprep.mubr.bf16.mxu0 %v9357_v18 }
 0x263   : > { %7688 = vmatmul.mubr.msk.bf16.gmra.mrb[80].mxu1 %vm651_vm1, %v9958_v47 }
 0x264   : > { %2291 = vmatprep.mubr.bf16.mxu1 %v9357_v18 }
 0x266   : > { %7680 = vmatmul.mubr.msk.bf16.gmra.mrb[80].mxu0 %vm651_vm1, %v9958_v47 }
 0x267   : > { %2178 = vmatprep.mubr.bf16.mxu0 %v9357_v18 }
 0x26b   : > { %7689 = vmatmul.mubr.msk.bf16.gmra.mrb[84].mxu1 %vm651_vm1, %v9969_v52 }
 0x26c   : > { %2301 = vmatprep.mubr.bf16.mxu1 %v9357_v18 }
 0x26e   : > { %7681 = vmatmul.mubr.msk.bf16.gmra.mrb[84].mxu0 %vm651_vm1, %v9969_v52 }
 0x26f   : > { %2188 = vmatprep.mubr.bf16.mxu0 %v9357_v18 }
 0x273   : > { %7690 = vmatmul.mubr.msk.bf16.gmra.mrb[88].mxu1 %vm651_vm1, %v9980_v53 }
 0x274   : > { %2311 = vmatprep.mubr.bf16.mxu1 %v9357_v18 }
 0x276   : > { %7682 = vmatmul.mubr.msk.bf16.gmra.mrb[88].mxu0 %vm651_vm1, %v9980_v53 }
 0x277   : > { %2198 = vmatprep.mubr.bf16.mxu0 %v9357_v18 }
 0x27b   : > { %7691 = vmatmul.mubr.msk.bf16.gmra.mrb[92].mxu1 %vm651_vm1, %v9991_v54 }
 0x27c   : > { %2467 = vmatprep.mubr.bf16.mxu1 %v9357_v18 }
 0x27e   : > { %7683 = vmatmul.mubr.msk.bf16.gmra.mrb[92].mxu0 %vm651_vm1, %v9991_v54 }
 0x27f   : > { %2354 = vmatprep.mubr.bf16.mxu0 %v9357_v18 }
 0x283   : > { %7700 = vmatmul.mubr.msk.bf16.vlgmr.msra.gmra.mrb[96].mxu1 %vm651_vm1, %v9910_v39 }
 0x284   : > { %2810 = vmatpush1.bf16.msra.mxu1 %v2642_v5  ;;  %2477 = vmatprep.mubr.bf16.mxu1 %v9357_v18  ;;  %v10585_v5 = vld [vmem:[%s14134_s2 + $0xe0] sm:$0xff]  }
 0x285   : > { %3035 = vmatprep.subr.bf16.mxu1 %v2647_v6  ;;  %v6578_v6 = vld [vmem:[%s14135_s3 + $0x30] sm:$0xff] }
 0x286   : > { %7692 = vmatmul.mubr.msk.bf16.vlgmr.msra.gmra.mrb[96].mxu0 %vm651_vm1, %v9910_v39  ;;  %v3950_v39 = vsel %vm3947_vm3, %v10319_v49, %v3920_v20  ;;  %6612 = vperm.xlu0 %8739, %v6578_v6  }
 0x287   : > { %2697 = vmatpush1.bf16.msra.mxu0 %v2640_v9  ;;  %2364 = vmatprep.mubr.bf16.mxu0 %v9357_v18  ;;  %v10613_v9 = vld [vmem:[%s14134_s2 + $0xf0] sm:$0xff]  }
 0x288   : > { %2922 = vmatprep.subr.bf16.mxu0 %v2645_v10  ;;  %v10624_v10 = vld [vmem:[%s14134_s2 + $0xf8] sm:$0xff]  }
 0x28b   : > { %7701 = vmatmul.mubr.msk.bf16.gmra.mrb[100].mxu1 %vm651_vm1, %v9923_v42 }
 0x28c   : > { %2487 = vmatprep.mubr.bf16.mxu1 %v9357_v18 }
 0x28e   : > { %7693 = vmatmul.mubr.msk.bf16.gmra.mrb[100].mxu0 %vm651_vm1, %v9923_v42  ;;  %v3955_v42 = vsel %vm3947_vm3, %v10387_v25, %v3930_v35 }
 0x28f   : > { %2374 = vmatprep.mubr.bf16.mxu0 %v9357_v18 }
 0x293   : > { %7702 = vmatmul.mubr.msk.bf16.gmra.mrb[104].mxu1 %vm651_vm1, %v9936_v43 }
 0x294   : > { %2497 = vmatprep.mubr.bf16.mxu1 %v9357_v18 }
 0x296   : > { %7694 = vmatmul.mubr.msk.bf16.gmra.mrb[104].mxu0 %vm651_vm1, %v9936_v43  ;;  %v10452_v43 = vpop.permute.xlu1 %3935 }
 0x297   : > { %2384 = vmatprep.mubr.bf16.mxu0 %v9357_v18 }
 0x29b   : > { %7703 = vmatmul.mubr.msk.bf16.gmra.mrb[108].mxu1 %vm651_vm1, %v9947_v46 }
 0x29c   : > { %2507 = vmatprep.mubr.bf16.mxu1 %v9357_v18 }
 0x29e   : > { %7695 = vmatmul.mubr.msk.bf16.gmra.mrb[108].mxu0 %vm651_vm1, %v9947_v46  ;;  %v10455_v46 = vpop.permute.xlu0 %3933 }
 0x29f   : > { %2394 = vmatprep.mubr.bf16.mxu0 %v9357_v18  ;;  %v3957_v59 = vsel %vm3947_vm3, %v10398_v36, %v10455_v46 }
 0x2a3   : > { %7704 = vmatmul.mubr.msk.bf16.gmra.mrb[112].mxu1 %vm651_vm1, %v9958_v47 }
 0x2a4   : > { %2517 = vmatprep.mubr.bf16.mxu1 %v9357_v18 }
 0x2a6   : > { %7696 = vmatmul.mubr.msk.bf16.gmra.mrb[112].mxu0 %vm651_vm1, %v9958_v47  ;;  %v3948_v47 = vsel %vm3947_vm3, %v3914_v21, %v3916_v19 }
 0x2a7   : > { %2404 = vmatprep.mubr.bf16.mxu0 %v9357_v18 }
 0x2ab   : > { %7705 = vmatmul.mubr.msk.bf16.gmra.mrb[116].mxu1 %vm651_vm1, %v9969_v52 }
 0x2ac   : > { %2527 = vmatprep.mubr.bf16.mxu1 %v9357_v18 }
 0x2ae   : > { %7697 = vmatmul.mubr.msk.bf16.gmra.mrb[116].mxu0 %vm651_vm1, %v9969_v52  ;;  %v3953_v52 = vsel %vm3947_vm3, %v10335_v16, %v10390_v31 }
 0x2af   : > { %2414 = vmatprep.mubr.bf16.mxu0 %v9357_v18 }
 0x2b3   : > { %7706 = vmatmul.mubr.msk.bf16.gmra.mrb[120].mxu1 %vm651_vm1, %v9980_v53 }
 0x2b4   : > { %2537 = vmatprep.mubr.bf16.mxu1 %v9357_v18 }
 0x2b6   : > { %7698 = vmatmul.mubr.msk.bf16.gmra.mrb[120].mxu0 %vm651_vm1, %v9980_v53  ;;  %v3938_v53 = vpop.permute.xlu0 %3937 }
 0x2b7   : > { %2424 = vmatprep.mubr.bf16.mxu0 %v9357_v18 }
 0x2ba   : > { %v3942_v11 = vpop.permute.xlu0 %3941 }
 0x2bb   : > { %7707 = vmatmul.mubr.msk.bf16.gmra.mrb[124].mxu1 %vm651_vm1, %v9991_v54 }
 0x2bc   : > { %2841 = vmatprep.mubr.bf16.mxu1 %v9357_v18 }
 0x2be   : > { %7699 = vmatmul.mubr.msk.bf16.gmra.mrb[124].mxu0 %vm651_vm1, %v9991_v54  ;;  %v10464_v54 = vpop.permute.xlu1 %3939 }
 0x2bf   : > { %2728 = vmatprep.mubr.bf16.mxu0 %v9357_v18  ;;  %v10468_v55 = vsel %vm3947_vm3, %v3938_v53, %v10464_v54 }
 0x2c2   : > { %v3944_v12 = vpop.permute.xlu1 %3943 }
 0x2c3   : > { %7740 = vmatmul.mubr.msk.bf16.vlgmr.msra.gmra.mrb[0].mxu1 %vm651_vm1, %v10225_v22 }
 0x2c4   : > { %3036 = vmatpush1.bf16.msra.mxu1 %v2646_v26  ;;  %2851 = vmatprep.mubr.bf16.mxu1 %v9357_v18 }
 0x2c5   : > { %3261 = vmatprep.subr.bf16.mxu1 %v2651_v27  ;;  %v3961_v27 = vsel %vm3947_vm3, %v10464_v54, %v3942_v11 }
 0x2c6   : > { %7732 = vmatmul.mubr.msk.bf16.vlgmr.msra.gmra.mrb[0].mxu0 %vm651_vm1, %v10225_v22 }
 0x2c7   : > { %2923 = vmatpush1.bf16.msra.mxu0 %v10016_v58  ;;  %2738 = vmatprep.mubr.bf16.mxu0 %v9357_v18  ;;  %v3959_v58 = vsel %vm3947_vm3, %v10452_v43, %v3938_v53 }
 0x2c8   : > { %3148 = vmatprep.subr.bf16.mxu0 %v2649_v28  ;;  %v3962_v28 = vsel %vm3947_vm3, %v3942_v11, %v3944_v12 }
 0x2cb   : > { %7741 = vmatmul.mubr.msk.bf16.gmra.mrb[4].mxu1 %vm651_vm1, %v10244_v29 }
 0x2cc   : > { %2861 = vmatprep.mubr.bf16.mxu1 %v9357_v18 }
 0x2ce   : > { %7733 = vmatmul.mubr.msk.bf16.gmra.mrb[4].mxu0 %vm651_vm1, %v10244_v29 }
 0x2cf   : > { %2748 = vmatprep.mubr.bf16.mxu0 %v9357_v18 }
 0x2d3   : > { %7742 = vmatmul.mubr.msk.bf16.gmra.mrb[8].mxu1 %vm651_vm1, %v10256_v30 }
 0x2d4   : > { %2871 = vmatprep.mubr.bf16.mxu1 %v9357_v18 }
 0x2d6   : > { %7734 = vmatmul.mubr.msk.bf16.gmra.mrb[8].mxu0 %vm651_vm1, %v10256_v30 }
 0x2d7   : > { %2758 = vmatprep.mubr.bf16.mxu0 %v9357_v18 }
 0x2db   : > { %7743 = vmatmul.mubr.msk.bf16.gmra.mrb[12].mxu1 %vm651_vm1, %v10267_v33 }
 0x2dc   : > { %2881 = vmatprep.mubr.bf16.mxu1 %v9357_v18 }
 0x2de   : > { %7735 = vmatmul.mubr.msk.bf16.gmra.mrb[12].mxu0 %vm651_vm1, %v10267_v33 }
 0x2df   : > { %2768 = vmatprep.mubr.bf16.mxu0 %v9357_v18 }
 0x2e3   : > { %7744 = vmatmul.mubr.msk.bf16.gmra.mrb[16].mxu1 %vm651_vm1, %v10278_v34 }
 0x2e4   : > { %2891 = vmatprep.mubr.bf16.mxu1 %v9357_v18 }
 0x2e6   : > { %7736 = vmatmul.mubr.msk.bf16.gmra.mrb[16].mxu0 %vm651_vm1, %v10278_v34 }
 0x2e7   : > { %2778 = vmatprep.mubr.bf16.mxu0 %v9357_v18 }
 0x2eb   : > { %7745 = vmatmul.mubr.msk.bf16.gmra.mrb[20].mxu1 %vm651_vm1, %v10289_v37 }
 0x2ec   : > { %2901 = vmatprep.mubr.bf16.mxu1 %v9357_v18 }
 0x2ee   : > { %7737 = vmatmul.mubr.msk.bf16.gmra.mrb[20].mxu0 %vm651_vm1, %v10289_v37 }
 0x2ef   : > { %2788 = vmatprep.mubr.bf16.mxu0 %v9357_v18 }
 0x2f3   : > { %7746 = vmatmul.mubr.msk.bf16.gmra.mrb[24].mxu1 %vm651_vm1, %v10300_v40 }
 0x2f4   : > { %2911 = vmatprep.mubr.bf16.mxu1 %v9357_v18 }
 0x2f6   : > { %7738 = vmatmul.mubr.msk.bf16.gmra.mrb[24].mxu0 %vm651_vm1, %v10300_v40 }
 0x2f7   : > { %2798 = vmatprep.mubr.bf16.mxu0 %v9357_v18 }
 0x2fb   : > { %7747 = vmatmul.mubr.msk.bf16.gmra.mrb[28].mxu1 %vm651_vm1, %v10311_v41 }
 0x2fc   : > { %3067 = vmatprep.mubr.bf16.mxu1 %v9357_v18 }
 0x2fe   : > { %7739 = vmatmul.mubr.msk.bf16.gmra.mrb[28].mxu0 %vm651_vm1, %v10311_v41 }
 0x2ff   : > { %2954 = vmatprep.mubr.bf16.mxu0 %v9357_v18 }
 0x303   : > { %7756 = vmatmul.mubr.msk.bf16.vlgmr.msra.gmra.mrb[32].mxu1 %vm651_vm1, %v10225_v22 }
 0x304   : > { %3262 = vmatpush1.bf16.msra.mxu1 %v2650_v50  ;;  %3077 = vmatprep.mubr.bf16.mxu1 %v9357_v18 }
 0x305   : > { %3487 = vmatprep.subr.bf16.mxu1 %v2655_v51 }
 0x306   : > { %7748 = vmatmul.mubr.msk.bf16.vlgmr.msra.gmra.mrb[32].mxu0 %vm651_vm1, %v10225_v22 }
 0x307   : > { %3149 = vmatpush1.bf16.msra.mxu0 %v10079_v4  ;;  %2964 = vmatprep.mubr.bf16.mxu0 %v9357_v18  ;;  %v6577_v4 = vld [vmem:[%s14135_s3 + $0x28] sm:$0xff] }
 0x308   : > { %3374 = vmatprep.subr.bf16.mxu0 %v2653_v15  ;;  %6607 = vperm.xlu1 %8738, %v6577_v4  }
 0x30b   : > { %7757 = vmatmul.mubr.msk.bf16.gmra.mrb[36].mxu1 %vm651_vm1, %v10244_v29 }
 0x30c   : > { %3087 = vmatprep.mubr.bf16.mxu1 %v9357_v18  ;;  %6617 = vperm.xlu1 %8738, %v6579_v7  }
 0x30e   : > { %7749 = vmatmul.mubr.msk.bf16.gmra.mrb[36].mxu0 %vm651_vm1, %v10244_v29 }
 0x30f   : > { %2974 = vmatprep.mubr.bf16.mxu0 %v9357_v18 }
 0x313   : > { %7758 = vmatmul.mubr.msk.bf16.gmra.mrb[40].mxu1 %vm651_vm1, %v10256_v30 }
 0x314   : > { %3097 = vmatprep.mubr.bf16.mxu1 %v9357_v18 }
 0x316   : > { %7750 = vmatmul.mubr.msk.bf16.gmra.mrb[40].mxu0 %vm651_vm1, %v10256_v30 }
 0x317   : > { %2984 = vmatprep.mubr.bf16.mxu0 %v9357_v18 }
 0x31b   : > { %7759 = vmatmul.mubr.msk.bf16.gmra.mrb[44].mxu1 %vm651_vm1, %v10267_v33 }
 0x31c   : > { %3107 = vmatprep.mubr.bf16.mxu1 %v9357_v18 }
 0x31e   : > { %7751 = vmatmul.mubr.msk.bf16.gmra.mrb[44].mxu0 %vm651_vm1, %v10267_v33 }
 0x31f   : > { %2994 = vmatprep.mubr.bf16.mxu0 %v9357_v18 }
 0x323   : > { %7760 = vmatmul.mubr.msk.bf16.gmra.mrb[48].mxu1 %vm651_vm1, %v10278_v34 }
 0x324   : > { %3117 = vmatprep.mubr.bf16.mxu1 %v9357_v18 }
 0x326   : > { %7752 = vmatmul.mubr.msk.bf16.gmra.mrb[48].mxu0 %vm651_vm1, %v10278_v34 }
 0x327   : > { %3004 = vmatprep.mubr.bf16.mxu0 %v9357_v18 }
 0x32b   : > { %7761 = vmatmul.mubr.msk.bf16.gmra.mrb[52].mxu1 %vm651_vm1, %v10289_v37 }
 0x32c   : > { %3127 = vmatprep.mubr.bf16.mxu1 %v9357_v18 }
 0x32e   : > { %7753 = vmatmul.mubr.msk.bf16.gmra.mrb[52].mxu0 %vm651_vm1, %v10289_v37 }
 0x32f   : > { %3014 = vmatprep.mubr.bf16.mxu0 %v9357_v18 }
 0x333   : > { %7762 = vmatmul.mubr.msk.bf16.gmra.mrb[56].mxu1 %vm651_vm1, %v10300_v40 }
 0x334   : > { %3137 = vmatprep.mubr.bf16.mxu1 %v9357_v18 }
 0x336   : > { %7754 = vmatmul.mubr.msk.bf16.gmra.mrb[56].mxu0 %vm651_vm1, %v10300_v40 }
 0x337   : > { %3024 = vmatprep.mubr.bf16.mxu0 %v9357_v18 }
 0x33b   : > { %7763 = vmatmul.mubr.msk.bf16.gmra.mrb[60].mxu1 %vm651_vm1, %v10311_v41 }
 0x33c   : > { %3293 = vmatprep.mubr.bf16.mxu1 %v9357_v18 }
 0x33e   : > { %7755 = vmatmul.mubr.msk.bf16.gmra.mrb[60].mxu0 %vm651_vm1, %v10311_v41 }
 0x33f   : > { %3180 = vmatprep.mubr.bf16.mxu0 %v9357_v18 }
 0x343   : > { %7772 = vmatmul.mubr.msk.bf16.vlgmr.msra.gmra.mrb[64].mxu1 %vm651_vm1, %v10225_v22 }
 0x344   : > { %3488 = vmatpush1.bf16.msra.mxu1 %v2654_v23  ;;  %3303 = vmatprep.mubr.bf16.mxu1 %v9357_v18 }
 0x345   : > { %4117 = vmatprep.subr.bf16.mxu1 %v3951_v24 }
 0x346   : > { %7764 = vmatmul.mubr.msk.bf16.vlgmr.msra.gmra.mrb[64].mxu0 %vm651_vm1, %v10225_v22 }
 0x347   : > { %3375 = vmatpush1.bf16.msra.mxu0 %v10147_v13  ;;  %3190 = vmatprep.mubr.bf16.mxu0 %v9357_v18  ;;  %v3946_v13 = vpop.permute.xlu0 %3945 }
 0x348   : > { %4004 = vmatprep.subr.bf16.mxu0 %v3949_v32  ;;  %v3963_v26 = vsel %vm3947_vm3, %v3944_v12, %v3946_v13 }
 0x34b   : > { %7773 = vmatmul.mubr.msk.bf16.gmra.mrb[68].mxu1 %vm651_vm1, %v10244_v29 }
 0x34c   : > { %3313 = vmatprep.mubr.bf16.mxu1 %v9357_v18 }
 0x34e   : > { %7765 = vmatmul.mubr.msk.bf16.gmra.mrb[68].mxu0 %vm651_vm1, %v10244_v29 }
 0x34f   : > { %3200 = vmatprep.mubr.bf16.mxu0 %v9357_v18 }
 0x353   : > { %7774 = vmatmul.mubr.msk.bf16.gmra.mrb[72].mxu1 %vm651_vm1, %v10256_v30 }
 0x354   : > { %3323 = vmatprep.mubr.bf16.mxu1 %v9357_v18 }
 0x356   : > { %7766 = vmatmul.mubr.msk.bf16.gmra.mrb[72].mxu0 %vm651_vm1, %v10256_v30 }
 0x357   : > { %3210 = vmatprep.mubr.bf16.mxu0 %v9357_v18 }
 0x35b   : > { %7775 = vmatmul.mubr.msk.bf16.gmra.mrb[76].mxu1 %vm651_vm1, %v10267_v33 }
 0x35c   : > { %3333 = vmatprep.mubr.bf16.mxu1 %v9357_v18 }
 0x35e   : > { %7767 = vmatmul.mubr.msk.bf16.gmra.mrb[76].mxu0 %vm651_vm1, %v10267_v33 }
 0x35f   : > { %3220 = vmatprep.mubr.bf16.mxu0 %v9357_v18 }
 0x363   : > { %7776 = vmatmul.mubr.msk.bf16.gmra.mrb[80].mxu1 %vm651_vm1, %v10278_v34 }
 0x364   : > { %3343 = vmatprep.mubr.bf16.mxu1 %v9357_v18 }
 0x366   : > { %7768 = vmatmul.mubr.msk.bf16.gmra.mrb[80].mxu0 %vm651_vm1, %v10278_v34 }
 0x367   : > { %3230 = vmatprep.mubr.bf16.mxu0 %v9357_v18 }
 0x36b   : > { %7777 = vmatmul.mubr.msk.bf16.gmra.mrb[84].mxu1 %vm651_vm1, %v10289_v37 }
 0x36c   : > { %3353 = vmatprep.mubr.bf16.mxu1 %v9357_v18 }
 0x36e   : > { %7769 = vmatmul.mubr.msk.bf16.gmra.mrb[84].mxu0 %vm651_vm1, %v10289_v37 }
 0x36f   : > { %3240 = vmatprep.mubr.bf16.mxu0 %v9357_v18 }
 0x373   : > { %7778 = vmatmul.mubr.msk.bf16.gmra.mrb[88].mxu1 %vm651_vm1, %v10300_v40 }
 0x374   : > { %3363 = vmatprep.mubr.bf16.mxu1 %v9357_v18 }
 0x376   : > { %7770 = vmatmul.mubr.msk.bf16.gmra.mrb[88].mxu0 %vm651_vm1, %v10300_v40 }
 0x377   : > { %3250 = vmatprep.mubr.bf16.mxu0 %v9357_v18 }
 0x37b   : > { %7779 = vmatmul.mubr.msk.bf16.gmra.mrb[92].mxu1 %vm651_vm1, %v10311_v41 }
 0x37c   : > { %3519 = vmatprep.mubr.bf16.mxu1 %v9357_v18 }
 0x37e   : > { %7771 = vmatmul.mubr.msk.bf16.gmra.mrb[92].mxu0 %vm651_vm1, %v10311_v41 }
 0x37f   : > { %3406 = vmatprep.mubr.bf16.mxu0 %v9357_v18 }
 0x383   : > { %7788 = vmatmul.mubr.msk.bf16.vlgmr.msra.gmra.mrb[96].mxu1 %vm651_vm1, %v10225_v22 }
 0x384   : > { %4118 = vmatpush1.bf16.msra.mxu1 %v3950_v39  ;;  %3529 = vmatprep.mubr.bf16.mxu1 %v9357_v18 }
 0x385   : > { %4343 = vmatprep.subr.bf16.mxu1 %v3955_v42 }
 0x386   : > { %7780 = vmatmul.mubr.msk.bf16.vlgmr.msra.gmra.mrb[96].mxu0 %vm651_vm1, %v10225_v22  ;;  %v3958_v22 = vsel %vm3947_vm3, %v10455_v46, %v10452_v43 }
 0x387   : > { %4005 = vmatpush1.bf16.msra.mxu0 %v3948_v47  ;;  %3416 = vmatprep.mubr.bf16.mxu0 %v9357_v18 }
 0x388   : > { %4230 = vmatprep.subr.bf16.mxu0 %v3953_v52 }
 0x38b   : > { %7789 = vmatmul.mubr.msk.bf16.gmra.mrb[100].mxu1 %vm651_vm1, %v10244_v29 }
 0x38c   : > { %3539 = vmatprep.mubr.bf16.mxu1 %v9357_v18 }
 0x38e   : > { %7781 = vmatmul.mubr.msk.bf16.gmra.mrb[100].mxu0 %vm651_vm1, %v10244_v29 }
 0x38f   : > { %3426 = vmatprep.mubr.bf16.mxu0 %v9357_v18 }
 0x393   : > { %7790 = vmatmul.mubr.msk.bf16.gmra.mrb[104].mxu1 %vm651_vm1, %v10256_v30 }
 0x394   : > { %3549 = vmatprep.mubr.bf16.mxu1 %v9357_v18 }
 0x396   : > { %7782 = vmatmul.mubr.msk.bf16.gmra.mrb[104].mxu0 %vm651_vm1, %v10256_v30 }
 0x397   : > { %3436 = vmatprep.mubr.bf16.mxu0 %v9357_v18 }
 0x39b   : > { %7791 = vmatmul.mubr.msk.bf16.gmra.mrb[108].mxu1 %vm651_vm1, %v10267_v33 }
 0x39c   : > { %3559 = vmatprep.mubr.bf16.mxu1 %v9357_v18 }
 0x39e   : > { %7783 = vmatmul.mubr.msk.bf16.gmra.mrb[108].mxu0 %vm651_vm1, %v10267_v33 }
 0x39f   : > { %3446 = vmatprep.mubr.bf16.mxu0 %v9357_v18 }
 0x3a3   : > { %7792 = vmatmul.mubr.msk.bf16.gmra.mrb[112].mxu1 %vm651_vm1, %v10278_v34 }
 0x3a4   : > { %3569 = vmatprep.mubr.bf16.mxu1 %v9357_v18 }
 0x3a6   : > { %7784 = vmatmul.mubr.msk.bf16.gmra.mrb[112].mxu0 %vm651_vm1, %v10278_v34 }
 0x3a7   : > { %3456 = vmatprep.mubr.bf16.mxu0 %v9357_v18 }
 0x3ab   : > { %7793 = vmatmul.mubr.msk.bf16.gmra.mrb[116].mxu1 %vm651_vm1, %v10289_v37 }
 0x3ac   : > { %3579 = vmatprep.mubr.bf16.mxu1 %v9357_v18 }
 0x3ae   : > { %7785 = vmatmul.mubr.msk.bf16.gmra.mrb[116].mxu0 %vm651_vm1, %v10289_v37 }
 0x3af   : > { %3466 = vmatprep.mubr.bf16.mxu0 %v9357_v18 }
 0x3b3   : > { %7794 = vmatmul.mubr.msk.bf16.gmra.mrb[120].mxu1 %vm651_vm1, %v10300_v40 }
 0x3b4   : > { %3589 = vmatprep.mubr.bf16.mxu1 %v9357_v18 }
 0x3b6   : > { %7786 = vmatmul.mubr.msk.bf16.gmra.mrb[120].mxu0 %vm651_vm1, %v10300_v40 }
 0x3b7   : > { %3476 = vmatprep.mubr.bf16.mxu0 %v9357_v18 }
 0x3bb   : > { %7795 = vmatmul.mubr.msk.bf16.gmra.mrb[124].mxu1 %vm651_vm1, %v10311_v41 }
 0x3bc   : > { %4149 = vmatprep.mubr.bf16.mxu1 %v9357_v18 }
 0x3be   : > { %7787 = vmatmul.mubr.msk.bf16.gmra.mrb[124].mxu0 %vm651_vm1, %v10311_v41 }
 0x3bf   : > { %4036 = vmatprep.mubr.bf16.mxu0 %v9357_v18 }
 0x3c3   : > { %7828 = vmatmul.mubr.msk.bf16.vlgmr.msra.gmra.mrb[0].mxu1 %vm651_vm1, %v10514_v56 }
 0x3c4   : > { %4344 = vmatpush1.bf16.msra.mxu1 %v3954_v57  ;;  %4159 = vmatprep.mubr.bf16.mxu1 %v9357_v18 }
 0x3c5   : > { %4569 = vmatprep.subr.bf16.mxu1 %v3959_v58 }
 0x3c6   : > { %7820 = vmatmul.mubr.msk.bf16.vlgmr.msra.gmra.mrb[0].mxu0 %vm651_vm1, %v10514_v56 }
 0x3c7   : > { %4231 = vmatpush1.bf16.msra.mxu0 %v10339_v17  ;;  %4046 = vmatprep.mubr.bf16.mxu0 %v9357_v18 }
 0x3c8   : > { %4456 = vmatprep.subr.bf16.mxu0 %v3957_v59 }
 0x3cb   : > { %7829 = vmatmul.mubr.msk.bf16.gmra.mrb[4].mxu1 %vm651_vm1, %v10533_v60 }
 0x3cc   : > { %4169 = vmatprep.mubr.bf16.mxu1 %v9357_v18 }
 0x3ce   : > { %7821 = vmatmul.mubr.msk.bf16.gmra.mrb[4].mxu0 %vm651_vm1, %v10533_v60 }
 0x3cf   : > { %4056 = vmatprep.mubr.bf16.mxu0 %v9357_v18 }
 0x3d3   : > { %7830 = vmatmul.mubr.msk.bf16.gmra.mrb[8].mxu1 %vm651_vm1, %v10551_v63 }
 0x3d4   : > { %4179 = vmatprep.mubr.bf16.mxu1 %v9357_v18 }
 0x3d6   : > { %7822 = vmatmul.mubr.msk.bf16.gmra.mrb[8].mxu0 %vm651_vm1, %v10551_v63 }
 0x3d7   : > { %4066 = vmatprep.mubr.bf16.mxu0 %v9357_v18 }
 0x3db   : > { %7831 = vmatmul.mubr.msk.bf16.gmra.mrb[12].mxu1 %vm651_vm1, %v10568_v2 }
 0x3dc   : > { %4189 = vmatprep.mubr.bf16.mxu1 %v9357_v18 }
 0x3de   : > { %7823 = vmatmul.mubr.msk.bf16.gmra.mrb[12].mxu0 %vm651_vm1, %v10568_v2 }
 0x3df   : > { %4076 = vmatprep.mubr.bf16.mxu0 %v9357_v18 }
 0x3e3   : > { %7832 = vmatmul.mubr.msk.bf16.gmra.mrb[16].mxu1 %vm651_vm1, %v10585_v5 }
 0x3e4   : > { %4199 = vmatprep.mubr.bf16.mxu1 %v9357_v18 }
 0x3e6   : > { %7824 = vmatmul.mubr.msk.bf16.gmra.mrb[16].mxu0 %vm651_vm1, %v10585_v5 }
 0x3e7   : > { %4086 = vmatprep.mubr.bf16.mxu0 %v9357_v18 }
 0x3eb   : > { %7833 = vmatmul.mubr.msk.bf16.gmra.mrb[20].mxu1 %vm651_vm1, %v10602_v8 }
 0x3ec   : > { %4209 = vmatprep.mubr.bf16.mxu1 %v9357_v18 }
 0x3ee   : > { %7825 = vmatmul.mubr.msk.bf16.gmra.mrb[20].mxu0 %vm651_vm1, %v10602_v8 }
 0x3ef   : > { %4096 = vmatprep.mubr.bf16.mxu0 %v9357_v18 }
 0x3f3   : > { %7834 = vmatmul.mubr.msk.bf16.gmra.mrb[24].mxu1 %vm651_vm1, %v10613_v9 }
 0x3f4   : > { %4219 = vmatprep.mubr.bf16.mxu1 %v9357_v18 }
 0x3f6   : > { %7826 = vmatmul.mubr.msk.bf16.gmra.mrb[24].mxu0 %vm651_vm1, %v10613_v9 }
 0x3f7   : > { %4106 = vmatprep.mubr.bf16.mxu0 %v9357_v18 }
 0x3fb   : > { %7835 = vmatmul.mubr.msk.bf16.gmra.mrb[28].mxu1 %vm651_vm1, %v10624_v10 }
 0x3fc   : > { %4375 = vmatprep.mubr.bf16.mxu1 %v9357_v18 }
 0x3fe   : > { %7827 = vmatmul.mubr.msk.bf16.gmra.mrb[28].mxu0 %vm651_vm1, %v10624_v10 }
 0x3ff   : > { %4262 = vmatprep.mubr.bf16.mxu0 %v9357_v18 }
 0x403   : > { %7844 = vmatmul.mubr.msk.bf16.vlgmr.msra.gmra.mrb[32].mxu1 %vm651_vm1, %v10514_v56 }
 0x404   : > { %4570 = vmatpush1.bf16.msra.mxu1 %v3958_v22  ;;  %4385 = vmatprep.mubr.bf16.mxu1 %v9357_v18 }
 0x405   : > { %4795 = vmatprep.subr.bf16.mxu1 %v3963_v26 }
 0x406   : > { %7836 = vmatmul.mubr.msk.bf16.vlgmr.msra.gmra.mrb[32].mxu0 %vm651_vm1, %v10514_v56 }
 0x407   : > { %4457 = vmatpush1.bf16.msra.mxu0 %v10402_v38  ;;  %4272 = vmatprep.mubr.bf16.mxu0 %v9357_v18 }
 0x408   : > { %4682 = vmatprep.subr.bf16.mxu0 %v3961_v27 }
 0x40b   : > { %7845 = vmatmul.mubr.msk.bf16.gmra.mrb[36].mxu1 %vm651_vm1, %v10533_v60 }
 0x40c   : > { %4395 = vmatprep.mubr.bf16.mxu1 %v9357_v18 }
 0x40e   : > { %7837 = vmatmul.mubr.msk.bf16.gmra.mrb[36].mxu0 %vm651_vm1, %v10533_v60 }
 0x40f   : > { %4282 = vmatprep.mubr.bf16.mxu0 %v9357_v18 }
 0x413   : > { %7846 = vmatmul.mubr.msk.bf16.gmra.mrb[40].mxu1 %vm651_vm1, %v10551_v63 }
 0x414   : > { %4405 = vmatprep.mubr.bf16.mxu1 %v9357_v18 }
 0x416   : > { %7838 = vmatmul.mubr.msk.bf16.gmra.mrb[40].mxu0 %vm651_vm1, %v10551_v63 }
 0x417   : > { %4292 = vmatprep.mubr.bf16.mxu0 %v9357_v18 }
 0x41b   : > { %7847 = vmatmul.mubr.msk.bf16.gmra.mrb[44].mxu1 %vm651_vm1, %v10568_v2 }
 0x41c   : > { %4415 = vmatprep.mubr.bf16.mxu1 %v9357_v18 }
 0x41e   : > { %7839 = vmatmul.mubr.msk.bf16.gmra.mrb[44].mxu0 %vm651_vm1, %v10568_v2 }
 0x41f   : > { %4302 = vmatprep.mubr.bf16.mxu0 %v9357_v18 }
 0x423   : > { %7848 = vmatmul.mubr.msk.bf16.gmra.mrb[48].mxu1 %vm651_vm1, %v10585_v5 }
 0x424   : > { %4425 = vmatprep.mubr.bf16.mxu1 %v9357_v18 }
 0x426   : > { %7840 = vmatmul.mubr.msk.bf16.gmra.mrb[48].mxu0 %vm651_vm1, %v10585_v5 }
 0x427   : > { %4312 = vmatprep.mubr.bf16.mxu0 %v9357_v18 }
 0x42b   : > { %7849 = vmatmul.mubr.msk.bf16.gmra.mrb[52].mxu1 %vm651_vm1, %v10602_v8 }
 0x42c   : > { %4435 = vmatprep.mubr.bf16.mxu1 %v9357_v18 }
 0x42e   : > { %7841 = vmatmul.mubr.msk.bf16.gmra.mrb[52].mxu0 %vm651_vm1, %v10602_v8 }
 0x42f   : > { %4322 = vmatprep.mubr.bf16.mxu0 %v9357_v18 }
 0x433   : > { %7850 = vmatmul.mubr.msk.bf16.gmra.mrb[56].mxu1 %vm651_vm1, %v10613_v9 }
 0x434   : > { %4445 = vmatprep.mubr.bf16.mxu1 %v9357_v18 }
 0x436   : > { %7842 = vmatmul.mubr.msk.bf16.gmra.mrb[56].mxu0 %vm651_vm1, %v10613_v9 }
 0x437   : > { %4332 = vmatprep.mubr.bf16.mxu0 %v9357_v18 }
 0x43b   : > { %7851 = vmatmul.mubr.msk.bf16.gmra.mrb[60].mxu1 %vm651_vm1, %v10624_v10 }
 0x43c   : > { %4601 = vmatprep.mubr.bf16.mxu1 %v9357_v18 }
 0x43e   : > { %7843 = vmatmul.mubr.msk.bf16.gmra.mrb[60].mxu0 %vm651_vm1, %v10624_v10 }
 0x43f   : > { %4488 = vmatprep.mubr.bf16.mxu0 %v9357_v18 }
 0x443   : > { %7860 = vmatmul.mubr.msk.bf16.vlgmr.msra.gmra.mrb[64].mxu1 %vm651_vm1, %v10514_v56 }
 0x444   : > { %4796 = vmatpush1.bf16.msra.mxu1 %v3962_v28  ;;  %4611 = vmatprep.mubr.bf16.mxu1 %v9357_v18 }
 0x446   : > { %7852 = vmatmul.mubr.msk.bf16.vlgmr.msra.gmra.mrb[64].mxu0 %vm651_vm1, %v10514_v56 }
 0x447   : > { %4683 = vmatpush1.bf16.msra.mxu0 %v10468_v55  ;;  %4498 = vmatprep.mubr.bf16.mxu0 %v9357_v18 }
 0x44b   : > { %7861 = vmatmul.mubr.msk.bf16.gmra.mrb[68].mxu1 %vm651_vm1, %v10533_v60 }
 0x44c   : > { %4621 = vmatprep.mubr.bf16.mxu1 %v9357_v18 }
 0x44e   : > { %7853 = vmatmul.mubr.msk.bf16.gmra.mrb[68].mxu0 %vm651_vm1, %v10533_v60 }
 0x44f   : > { %4508 = vmatprep.mubr.bf16.mxu0 %v9357_v18 }
 0x453   : > { %7862 = vmatmul.mubr.msk.bf16.gmra.mrb[72].mxu1 %vm651_vm1, %v10551_v63 }
 0x454   : > { %4631 = vmatprep.mubr.bf16.mxu1 %v9357_v18 }
 0x456   : > { %7854 = vmatmul.mubr.msk.bf16.gmra.mrb[72].mxu0 %vm651_vm1, %v10551_v63 }
 0x457   : > { %4518 = vmatprep.mubr.bf16.mxu0 %v9357_v18 }
 0x45b   : > { %7863 = vmatmul.mubr.msk.bf16.gmra.mrb[76].mxu1 %vm651_vm1, %v10568_v2 }
 0x45c   : > { %4641 = vmatprep.mubr.bf16.mxu1 %v9357_v18 }
 0x45e   : > { %7855 = vmatmul.mubr.msk.bf16.gmra.mrb[76].mxu0 %vm651_vm1, %v10568_v2 }
 0x45f   : > { %4528 = vmatprep.mubr.bf16.mxu0 %v9357_v18 }
 0x463   : > { %7864 = vmatmul.mubr.msk.bf16.gmra.mrb[80].mxu1 %vm651_vm1, %v10585_v5 }
 0x464   : > { %4651 = vmatprep.mubr.bf16.mxu1 %v9357_v18 }
 0x466   : > { %7856 = vmatmul.mubr.msk.bf16.gmra.mrb[80].mxu0 %vm651_vm1, %v10585_v5 }
 0x467   : > { %4538 = vmatprep.mubr.bf16.mxu0 %v9357_v18 }
 0x46b   : > { %7865 = vmatmul.mubr.msk.bf16.gmra.mrb[84].mxu1 %vm651_vm1, %v10602_v8 }
 0x46c   : > { %4661 = vmatprep.mubr.bf16.mxu1 %v9357_v18 }
 0x46e   : > { %7857 = vmatmul.mubr.msk.bf16.gmra.mrb[84].mxu0 %vm651_vm1, %v10602_v8 }
 0x46f   : > { %4548 = vmatprep.mubr.bf16.mxu0 %v9357_v18 }
 0x473   : > { %7866 = vmatmul.mubr.msk.bf16.gmra.mrb[88].mxu1 %vm651_vm1, %v10613_v9 }
 0x474   : > { %4671 = vmatprep.mubr.bf16.mxu1 %v9357_v18 }
 0x476   : > { %7858 = vmatmul.mubr.msk.bf16.gmra.mrb[88].mxu0 %vm651_vm1, %v10613_v9 }
 0x477   : > { %4558 = vmatprep.mubr.bf16.mxu0 %v9357_v18 }
 0x47b   : > { %7867 = vmatmul.mubr.msk.bf16.gmra.mrb[92].mxu1 %vm651_vm1, %v10624_v10 }
 0x47c   : > { %4827 = vmatprep.mubr.bf16.mxu1 %v9357_v18 }
 0x47e   : > { %7859 = vmatmul.mubr.msk.bf16.gmra.mrb[92].mxu0 %vm651_vm1, %v10624_v10 }
 0x47f   : > { %4714 = vmatprep.mubr.bf16.mxu0 %v9357_v18 }
 0x483   : > { %7876 = vmatmul.mubr.msk.bf16.vlgmr.msra.gmra.mrb[96].mxu1 %vm651_vm1, %v10514_v56 }
 0x484   : > { %4837 = vmatprep.mubr.bf16.mxu1 %v9357_v18 }
 0x486   : > { %7868 = vmatmul.mubr.msk.bf16.vlgmr.msra.gmra.mrb[96].mxu0 %vm651_vm1, %v10514_v56 }
 0x487   : > { %4724 = vmatprep.mubr.bf16.mxu0 %v9357_v18 }
 0x48b   : > { %7877 = vmatmul.mubr.msk.bf16.gmra.mrb[100].mxu1 %vm651_vm1, %v10533_v60 }
 0x48c   : > { %4847 = vmatprep.mubr.bf16.mxu1 %v9357_v18 }
 0x48e   : > { %7869 = vmatmul.mubr.msk.bf16.gmra.mrb[100].mxu0 %vm651_vm1, %v10533_v60 }
 0x48f   : > { %4734 = vmatprep.mubr.bf16.mxu0 %v9357_v18 }
 0x493   : > { %7878 = vmatmul.mubr.msk.bf16.gmra.mrb[104].mxu1 %vm651_vm1, %v10551_v63 }
 0x494   : > { %4857 = vmatprep.mubr.bf16.mxu1 %v9357_v18 }
 0x496   : > { %v4151_v29 = vpop.f32.mrb[0].mxu1  ;;  %7870 = vmatmul.mubr.msk.bf16.gmra.mrb[104].mxu0 %vm651_vm1, %v10551_v63 }
 0x497   : > { %v4153_v30 = vpop.f32.mrb[1].mxu1  ;;  %4744 = vmatprep.mubr.bf16.mxu0 %v9357_v18  ;;  %v5166_v52 = vmul.f32 %v4151_v29, %v4151_v29 }
 0x498   : > { %v4155_v33 = vpop.f32.mrb[2].mxu1  ;;  %v5167_v55 = vmul.f32 %v4153_v30, %v4153_v30 }
 0x499   : > { %v4157_v34 = vpop.f32.mrb[3].mxu1  ;;  %v4038_v37 = vpop.f32.mrb[0].mxu0  ;;  %v5182_v0 = vmul.f32 %v4155_v33, %v4155_v33 }
 0x49a   : > { %v4040_v40 = vpop.f32.mrb[1].mxu0  ;;  %v5183_v1 = vmul.f32 %v4157_v34, %v4157_v34  ;;  %v5164_v3 = vmul.f32 %v4038_v37, %v4038_v37 }
 0x49b   : > { %7879 = vmatmul.mubr.msk.bf16.gmra.mrb[108].mxu1 %vm651_vm1, %v10568_v2  ;;  %v4042_v41 = vpop.f32.mrb[2].mxu0  ;;  %v5165_v4 = vmul.f32 %v4040_v40, %v4040_v40 }
 0x49c   : > { %4867 = vmatprep.mubr.bf16.mxu1 %v9357_v18  ;;  %v10759_v44 = vpop.f32.mrb[3].mxu0 }
 0x49d   : > { %v5181_v12 = vmul.f32 %v10759_v44, %v10759_v44 }
 0x49e   : > { %v10761_v45 = vpop.f32.mrb[4].mxu1  ;;  %7871 = vmatmul.mubr.msk.bf16.gmra.mrb[108].mxu0 %vm651_vm1, %v10568_v2 }
 0x49f   : > { %v10765_v48 = vpop.f32.mrb[5].mxu1  ;;  %4754 = vmatprep.mubr.bf16.mxu0 %v9357_v18  ;;  %v5198_v13 = vmul.f32 %v10761_v45, %v10761_v45 }
 0x4a0   : > { %v10767_v49 = vpop.f32.mrb[6].mxu1  ;;  %v5199_v28 = vmul.f32 %v10765_v48, %v10765_v48 }
 0x4a1   : > { %v10770_v50 = vpop.f32.mrb[7].mxu1  ;;  %v10772_v51 = vpop.f32.mrb[4].mxu0  ;;  %v5214_v29 = vmul.f32 %v10767_v49, %v10767_v49 }
 0x4a2   : > { %v10774_v14 = vpop.f32.mrb[5].mxu0  ;;  %v5196_v30 = vmul.f32 %v10772_v51, %v10772_v51  ;;  %v5215_v33 = vmul.f32 %v10770_v50, %v10770_v50 }
 0x4a3   : > { %7880 = vmatmul.mubr.msk.bf16.gmra.mrb[112].mxu1 %vm651_vm1, %v10585_v5  ;;  %v10778_v15 = vpop.f32.mrb[6].mxu0  ;;  %v10858_v37 = vmul.f32 %v10774_v14, %v10774_v14 }
 0x4a4   : > { %4877 = vmatprep.mubr.bf16.mxu1 %v9357_v18  ;;  %v10781_v16 = vpop.f32.mrb[7].mxu0  ;;  %v10862_v40 = vmul.f32 %v10778_v15, %v10778_v15 }
 0x4a5   : > { %v10876_v50 = vmul.f32 %v10781_v16, %v10781_v16 }
 0x4a6   : > { %v10783_v17 = vpop.f32.mrb[8].mxu1  ;;  %7872 = vmatmul.mubr.msk.bf16.gmra.mrb[112].mxu0 %vm651_vm1, %v10585_v5  ;;  %v5180_v5 = vmul.f32 %v4042_v41, %v4042_v41 }
 0x4a7   : > { %v10787_v19 = vpop.f32.mrb[9].mxu1  ;;  %4764 = vmatprep.mubr.bf16.mxu0 %v9357_v18  ;;  %v10880_v51 = vmul.f32 %v10783_v17, %v10783_v17 }
 0x4a8   : > { %v10789_v20 = vpop.f32.mrb[10].mxu1  ;;  %v10884_v14 = vmul.f32 %v10787_v19, %v10787_v19 }
 0x4a9   : > { %v10792_v21 = vpop.f32.mrb[11].mxu1  ;;  %v10794_v23 = vpop.f32.mrb[8].mxu0 }
 0x4aa   : > { %v10796_v24 = vpop.f32.mrb[9].mxu0  ;;  %v10897_v16 = vmul.f32 %v10792_v21, %v10792_v21 }
 0x4ab   : > { %7881 = vmatmul.mubr.msk.bf16.gmra.mrb[116].mxu1 %vm651_vm1, %v10602_v8  ;;  %v10800_v25 = vpop.f32.mrb[10].mxu0  ;;  %v10901_v17 = vmul.f32 %v10796_v24, %v10796_v24 }
 0x4ac   : > { %4887 = vmatprep.mubr.bf16.mxu1 %v9357_v18  ;;  %v10803_v31 = vpop.f32.mrb[11].mxu0 }
 0x4ae   : > { %v10805_v32 = vpop.f32.mrb[12].mxu1  ;;  %7873 = vmatmul.mubr.msk.bf16.gmra.mrb[116].mxu0 %vm651_vm1, %v10602_v8 }
 0x4af   : > { %v10809_v35 = vpop.f32.mrb[13].mxu1  ;;  %4774 = vmatprep.mubr.bf16.mxu0 %v9357_v18 }
 0x4b0   : > { %v10811_v36 = vpop.f32.mrb[14].mxu1  ;;  %v10919_v21 = vmul.f32 %v10809_v35, %v10809_v35 }
 0x4b1   : > { %v10814_v38 = vpop.f32.mrb[15].mxu1  ;;  %v10816_v39 = vpop.f32.mrb[12].mxu0 }
 0x4b2   : > { %v10818_v42 = vpop.f32.mrb[13].mxu0 }
 0x4b3   : > { %7882 = vmatmul.mubr.msk.bf16.gmra.mrb[120].mxu1 %vm651_vm1, %v10613_v9  ;;  %v10822_v43 = vpop.f32.mrb[14].mxu0 }
 0x4b4   : > { %4897 = vmatprep.mubr.bf16.mxu1 %v9357_v18  ;;  %v10825_v46 = vpop.f32.mrb[15].mxu0 }
 0x4b6   : > { %v4191_v47 = vpop.f32.mrb[16].mxu1  ;;  %7874 = vmatmul.mubr.msk.bf16.gmra.mrb[120].mxu0 %vm651_vm1, %v10613_v9 }
 0x4b7   : > { %v5294_v53 = vmul.f32 %v4191_v47, %v4191_v47  ;;  %v4193_v54 = vpop.f32.mrb[17].mxu1  ;;  %4784 = vmatprep.mubr.bf16.mxu0 %v9357_v18  ;;  %v10889_v47 = vmul.f32 %v10789_v20, %v10789_v20  ;;  %v10911_v20 = vmul.f32 %v10803_v31, %v10803_v31  ;;  %v10933_v31 = vmul.f32 %v10814_v38, %v10814_v38 }
 0x4b8   : > { %v5295_v56 = vmul.f32 %v4193_v54, %v4193_v54  ;;  %v4195_v57 = vpop.f32.mrb[18].mxu1 }
 0x4b9   : > { %v10830_v58 = vadd.f32 %v5294_v53, %v5166_v52  ;;  %v5310_v59 = vmul.f32 %v4195_v57, %v4195_v57  ;;  %v4197_v60 = vpop.f32.mrb[19].mxu1  ;;  %v4078_v62 = vpop.f32.mrb[16].mxu0  ;;  %v10893_v52 = vmul.f32 %v10794_v23, %v10794_v23  ;;  %v10907_v53 = vmul.f32 %v10800_v25, %v10800_v25  ;;  %14155 = vst [vmem:[#allocation8_spill] sm:$0xff] %v10933_v31 }
 0x4ba   : > { %v10832_v61 = vadd.f32 %v5295_v56, %v5167_v55  ;;  %v5311_v63 = vmul.f32 %v4197_v60, %v4197_v60  ;;  %v4080_v2 = vpop.f32.mrb[17].mxu0  ;;  %v5292_v7 = vmul.f32 %v4078_v62, %v4078_v62  ;;  %v10915_v23 = vmul.f32 %v10805_v32, %v10805_v32 }
 0x4bb   : > { %8773 = vrsqrt.f32 %v10830_v58  ;;  %7883 = vmatmul.mubr.msk.bf16.gmra.mrb[124].mxu1 %vm651_vm1, %v10624_v10  ;;  %v4082_v18 = vpop.f32.mrb[18].mxu0  ;;  %v10838_v6 = vadd.f32 %v5310_v59, %v5182_v0  ;;  %v5293_v9 = vmul.f32 %v4080_v2, %v4080_v2  ;;  %v10925_v55 = vmul.f32 %v10811_v36, %v10811_v36 }
 0x4bc   : > { %8775 = vrsqrt.f32 %v10832_v61  ;;  %v10840_v8 = vadd.f32 %v5311_v63, %v5183_v1  ;;  %v4084_v11 = vpop.f32.mrb[19].mxu0  ;;  %v5308_v22 = vmul.f32 %v4082_v18, %v4082_v18  ;;  %v10865_v41 = vadd.f32 %v5292_v7, %v5164_v3 }
 0x4bd   : > { %v5309_v26 = vmul.f32 %v4084_v11, %v4084_v11  ;;  %8777 = vrsqrt.f32 %v10838_v6  ;;  %v10868_v45 = vadd.f32 %v5293_v9, %v5165_v4  ;;  %v10929_v25 = vmul.f32 %v10816_v39, %v10816_v39 }
 0x4be   : > { %v4201_v27 = vpop.f32.mrb[20].mxu1  ;;  %7875 = vmatmul.mubr.msk.bf16.gmra.mrb[124].mxu0 %vm651_vm1, %v10624_v10  ;;  %8779 = vrsqrt.f32 %v10840_v8  ;;  %v10870_v48 = vadd.f32 %v5308_v22, %v5180_v5  ;;  %v10943_v39 = vmul.f32 %v10818_v42, %v10818_v42  ;;  %v10950_v63 = vmul.f32 %v10822_v43, %v10822_v43 }
 0x4bf   : > { %v4203_v34 = vpop.f32.mrb[21].mxu1  ;;  %v10872_v10 = vadd.f32 %v5309_v26, %v5181_v12  ;;  %8781 = vrsqrt.f32 %v10865_v41  ;;  %v5326_v56 = vmul.f32 %v4201_v27, %v4201_v27  ;;  %v10962_v42 = vmul.f32 %v10825_v46, %v10825_v46 }
 0x4c0   : > { %v4205_v44 = vpop.f32.mrb[22].mxu1  ;;  %8783 = vrsqrt.f32 %v10868_v45  ;;  %v5327_v57 = vmul.f32 %v4203_v34, %v4203_v34  ;;  %14156 = vst [vmem:[#allocation9_spill] sm:$0xff] %v10943_v39  ;;  %14157 = vst [vmem:[#allocation10_spill] sm:$0xff] %v10950_v63  ;;  %vm5564_vm4 = vcmp.eq.f32.partialorder %v10830_v58, inf  ;;  %vm5566_vm5 = vcmp.eq.f32.partialorder %v10830_v58, 0.0 }
 0x4c1   : > { %v4207_v49 = vpop.f32.mrb[23].mxu1  ;;  %v4088_v15 = vpop.f32.mrb[20].mxu0  ;;  %8785 = vrsqrt.f32 %v10870_v48  ;;  %v5342_v59 = vmul.f32 %v4205_v44, %v4205_v44  ;;  %v10952_v0 = vadd.f32 %v5326_v56, %v5198_v13  ;;  %14158 = vst [vmem:[#allocation11_spill] sm:$0xff] %v10962_v42  ;;  %v5567_v9 = vand.u32 2147483648, %v10830_v58 }
 0x4c2   : > { %v10903_v19 = vpop.f32.mrb[21].mxu0  ;;  %8787 = vrsqrt.f32 %v10872_v10  ;;  %v5324_v38 = vmul.f32 %v4088_v15, %v4088_v15  ;;  %v5343_v60 = vmul.f32 %v4207_v49, %v4207_v49  ;;  %v10954_v1 = vadd.f32 %v5327_v57, %v5199_v28 }
 0x4c3   : > { %v10921_v24 = vpop.f32.mrb[22].mxu0  ;;  %v10956_v2 = vadd.f32 %v5342_v59, %v5214_v29  ;;  %vm5571_vm6 = vcmp.eq.f32.partialorder %v10832_v61, inf  ;;  %vm5573_vm7 = vcmp.eq.f32.partialorder %v10832_v61, 0.0  ;;  %v5574_v13 = vand.u32 2147483648, %v10832_v61 }
 0x4c4   : > { %v10936_v32 = vpop.f32.mrb[23].mxu0  ;;  %v10965_v5 = vadd.f32 %v5324_v38, %v5196_v30  ;;  %v10967_v18 = vadd.f32 %v5343_v60, %v5215_v33  ;;  %8789 = vrsqrt.f32 %v10952_v0  ;;  %vm5676_vm8 = vcmp.eq.f32.partialorder %v10838_v6, inf }
 0x4c5   : > { %v8774_v54 = vpop.eup %8773  ;;  %vm5678_vm9 = vcmp.eq.f32.partialorder %v10838_v6, 0.0  ;;  %v5679_v27 = vand.u32 2147483648, %v10838_v6  ;;  %vm5683_vm10 = vcmp.eq.f32.partialorder %v10840_v8, inf  ;;  %vm5685_vm11 = vcmp.eq.f32.partialorder %v10840_v8, 0.0 }
 0x4c6   : > { %v8776_v35 = vpop.eup %8775  ;;  %v10939_v36 = vpop.f32.mrb[24].mxu1  ;;  %v5563_v4 = vmul.f32 %v8774_v54, %v10830_v58  ;;  %v5686_v33 = vand.u32 2147483648, %v10840_v8  ;;  %vm5550_vm12 = vcmp.eq.f32.partialorder %v10865_v41, inf  ;;  %vm5552_vm13 = vcmp.eq.f32.partialorder %v10865_v41, 0.0 }
 0x4c7   : > { %v10946_v62 = vpop.f32.mrb[25].mxu1  ;;  %v8778_v7 = vpop.eup %8777  ;;  %v5570_v11 = vmul.f32 %v8776_v35, %v10832_v61  ;;  %v5553_v56 = vand.u32 2147483648, %v10865_v41  ;;  %vm5557_vm14 = vcmp.eq.f32.partialorder %v10868_v45, inf  ;;  %8791 = vrsqrt.f32 %v10954_v1 }
 0x4c8   : > { %v10958_v3 = vpop.f32.mrb[26].mxu1  ;;  %v8780_v46 = vpop.eup %8779  ;;  %v5565_v29 = vsel %vm5564_vm4, %v10830_v58, %v5563_v4  ;;  %v5675_v30 = vmul.f32 %v8778_v7, %v10838_v6  ;;  %v5560_v60 = vand.u32 2147483648, %v10868_v45  ;;  %vm5662_vm15 = vcmp.eq.f32.partialorder %v10870_v48, inf }
 0x4c9   : > { %v10969_v43 = vpop.f32.mrb[27].mxu1  ;;  %v10975_v12 = vpop.f32.mrb[24].mxu0  ;;  %v5572_v44 = vsel %vm5571_vm6, %v10832_v61, %v5570_v11  ;;  %v5682_v15 = vmul.f32 %v8780_v46, %v10840_v8  ;;  %v11013_v38 = vsel %vm5566_vm5, %v5567_v9, %v5565_v29  ;;  %8793 = vrsqrt.f32 %v10956_v2 }
 0x4ca   : > { %v10981_v22 = vpop.f32.mrb[25].mxu0  ;;  %v8782_v26 = vpop.eup %8781  ;;  %v11022_v11 = vsel %vm5573_vm7, %v5574_v13, %v5572_v44  ;;  %v5677_v46 = vsel %vm5676_vm8, %v10838_v6, %v5675_v30  ;;  %vm5559_vm0 = vcmp.eq.f32.partialorder %v10868_v45, 0.0  ;;  %vm5664_vm1 = vcmp.eq.f32.partialorder %v10870_v48, 0.0 }
 0x4cb   : > { %v10987_v28 = vpop.f32.mrb[26].mxu0  ;;  %v5549_v49 = vmul.f32 %v8782_v26, %v10865_v41  ;;  %v8784_v35 = vpop.eup %8783  ;;  %v5665_v58 = vand.u32 2147483648, %v10870_v48  ;;  %vm5669_vm2 = vcmp.eq.f32.partialorder %v10872_v10, inf  ;;  %v5684_v13 = vsel %vm5683_vm10, %v10840_v8, %v5682_v15 }
 0x4cc   : > { %v10995_v34 = vpop.f32.mrb[27].mxu0  ;;  %v8786_v59 = vpop.eup %8785  ;;  %vm5671_vm3 = vcmp.eq.f32.partialorder %v10872_v10, 0.0  ;;  %v5672_v26 = vand.u32 2147483648, %v10872_v10  ;;  %v5325_v29 = vmul.f32 %v10903_v19, %v10903_v19  ;;  %v5556_v42 = vmul.f32 %v8784_v35, %v10868_v45 }
 0x4cd   : > { %v8788_v7 = vpop.eup %8787  ;;  %v5551_v61 = vsel %vm5550_vm12, %v10865_v41, %v5549_v49  ;;  %v5661_v63 = vmul.f32 %v8786_v59, %v10870_v48  ;;  %8795 = vrsqrt.f32 %v10965_v5  ;;  %v11054_v39 = vsel %vm5678_vm9, %v5679_v27, %v5677_v46 }
 0x4ce   : > { %v11003_v54 = vpop.f32.mrb[28].mxu1  ;;  %v5668_v19 = vmul.f32 %v8788_v7, %v10872_v10  ;;  %8797 = vrsqrt.f32 %v10967_v18  ;;  %v8790_v44 = vpop.eup %8789  ;;  %v11062_v35 = vsel %vm5552_vm13, %v5553_v56, %v5551_v61  ;;  %v11066_v59 = vsel %vm5685_vm11, %v5686_v33, %v5684_v13 }
 0x4cf   : > { %v11009_v57 = vpop.f32.mrb[29].mxu1  ;;  %vm5788_vm4 = vcmp.eq.f32.partialorder %v10952_v0, inf  ;;  %v5791_v6 = vand.u32 2147483648, %v10952_v0  ;;  %vm5790_vm5 = vcmp.eq.f32.partialorder %v10952_v0, 0.0  ;;  %v11074_v7 = vadd.f32 %v5325_v29, %v10858_v37 }
 0x4d0   : > { %v11018_v4 = vpop.f32.mrb[30].mxu1  ;;  %v5340_v41 = vmul.f32 %v10921_v24, %v10921_v24  ;;  %v5341_v56 = vmul.f32 %v10936_v32, %v10936_v32  ;;  %v5358_v8 = vmul.f32 %v10939_v36, %v10939_v36  ;;  %v5558_v61 = vsel %vm5557_vm14, %v10868_v45, %v5556_v42 }
 0x4d1   : > { %v11031_v9 = vpop.f32.mrb[31].mxu1  ;;  %v11043_v30 = vpop.f32.mrb[28].mxu0  ;;  %v5663_v37 = vsel %vm5662_vm15, %v10870_v48, %v5661_v63  ;;  %vm5795_vm6 = vcmp.eq.f32.partialorder %v10954_v1, inf  ;;  %v5670_v32 = vsel %vm5669_vm2, %v10872_v10, %v5668_v19  ;;  %v5787_v36 = vmul.f32 %v8790_v44, %v10952_v0 }
 0x4d2   : > { %v11049_v49 = vpop.f32.mrb[29].mxu0  ;;  %v5798_v13 = vand.u32 2147483648, %v10954_v1  ;;  %8799 = vrsqrt.f32 %v11074_v7  ;;  %v8792_v42 = vpop.eup %8791  ;;  %vm5900_vm7 = vcmp.eq.f32.partialorder %v10956_v2, inf  ;;  %v11106_v15 = vadd.f32 %v5340_v41, %v10862_v40 }
 0x4d3   : > { %v11058_v31 = vpop.f32.mrb[30].mxu0  ;;  %v8794_v19 = vpop.eup %8793  ;;  %v11112_v44 = vsel %vm5559_vm0, %v5560_v60, %v5558_v61  ;;  %vm5797_vm8 = vcmp.eq.f32.partialorder %v10954_v1, 0.0  ;;  %v11120_v63 = vadd.f32 %v5341_v56, %v10876_v50  ;;  %v11123_v46 = vadd.f32 %v5358_v8, %v10880_v51 }
 0x4d4   : > { %v11070_v27 = vpop.f32.mrb[31].mxu0  ;;  %v11129_v41 = vsel %vm5671_vm3, %v5672_v26, %v5670_v32  ;;  %8801 = vrsqrt.f32 %v11106_v15  ;;  %v5359_v45 = vmul.f32 %v10946_v62, %v10946_v62  ;;  %v5374_v48 = vmul.f32 %v10958_v3, %v10958_v3 }
 0x4d5   : > { %v5789_v50 = vsel %vm5788_vm4, %v10952_v0, %v5787_v36  ;;  %v5794_v51 = vmul.f32 %v8792_v42, %v10954_v1  ;;  %vm5902_vm9 = vcmp.eq.f32.partialorder %v10956_v2, 0.0  ;;  %8803 = vrsqrt.f32 %v11120_v63 }
 0x4d6   : > { %v11082_v33 = vpop.f32.mrb[32].mxu1  ;;  %v5899_v3 = vmul.f32 %v8794_v19, %v10956_v2  ;;  %8805 = vrsqrt.f32 %v11123_v46  ;;  %vm5774_vm10 = vcmp.eq.f32.partialorder %v10965_v5, inf  ;;  %vm5776_vm11 = vcmp.eq.f32.partialorder %v10965_v5, 0.0 }
 0x4d7   : > { %v11092_v24 = vpop.f32.mrb[33].mxu1  ;;  %v11160_v36 = vsel %vm5790_vm5, %v5791_v6, %v5789_v50  ;;  %v5777_v42 = vand.u32 2147483648, %v10965_v5  ;;  %v11164_v19 = vadd.f32 %v5359_v45, %v10884_v14  ;;  %v11167_v26 = vadd.f32 %v5374_v48, %v10889_v47 }
 0x4d8   : > { %14159 = vst [vmem:[#allocation12_spill] sm:$0xff] %v11092_v24  ;;  %v11100_v29 = vpop.f32.mrb[34].mxu1  ;;  %v5796_v62 = vsel %vm5795_vm6, %v10954_v1, %v5794_v51  ;;  %v5356_v0 = vmul.f32 %v10975_v12, %v10975_v12  ;;  %v5375_v6 = vmul.f32 %v10969_v43, %v10969_v43  ;;  %v5901_v14 = vsel %vm5900_vm7, %v10956_v2, %v5899_v3 }
 0x4d9   : > { %14160 = vst [vmem:[#allocation13_spill] sm:$0xff] %v11100_v29  ;;  %v11108_v24 = vpop.f32.mrb[35].mxu1  ;;  %v11116_v29 = vsel %vm5664_vm1, %v5665_v58, %v5663_v37  ;;  %v11125_v40 = vpop.f32.mrb[32].mxu0  ;;  %v5903_v37 = vand.u32 2147483648, %v10956_v2  ;;  %vm5907_vm12 = vcmp.eq.f32.partialorder %v10967_v18, inf  ;;  %v5357_v45 = vmul.f32 %v10981_v22, %v10981_v22 }
 0x4da   : > { %v11136_v60 = vpop.f32.mrb[33].mxu0  ;;  %v8796_v58 = vpop.eup %8795  ;;  %vm5909_vm13 = vcmp.eq.f32.partialorder %v10967_v18, 0.0  ;;  %v5910_v43 = vand.u32 2147483648, %v10967_v18  ;;  %vm5781_vm14 = vcmp.eq.f32.partialorder %v11074_v7, inf  ;;  %8807 = vrsqrt.f32 %v11164_v19 }
 0x4db   : > { %v11144_v10 = vpop.f32.mrb[34].mxu0  ;;  %v8798_v8 = vpop.eup %8797  ;;  %v11199_v3 = vsel %vm5797_vm8, %v5798_v13, %v5796_v62  ;;  %vm5783_vm15 = vcmp.eq.f32.partialorder %v11074_v7, 0.0  ;;  %8809 = vrsqrt.f32 %v11167_v26  ;;  %v11216_v1 = vadd.f32 %v5375_v6, %v10897_v16 }
 0x4dc   : > { %v11150_v56 = vpop.f32.mrb[35].mxu0  ;;  %v5906_v47 = vmul.f32 %v8798_v8, %v10967_v18  ;;  %v8800_v51 = vpop.eup %8799  ;;  %v11207_v8 = vsel %vm5902_vm9, %v5903_v37, %v5901_v14  ;;  %v5784_v37 = vand.u32 2147483648, %v11074_v7  ;;  %v11226_v14 = vadd.f32 %v5357_v45, %v10901_v17 }
 0x4dd   : > { %v5780_v2 = vmul.f32 %v8800_v51, %v11074_v7  ;;  %vm5886_vm0 = vcmp.eq.f32.partialorder %v11106_v15, inf  ;;  %vm5888_vm1 = vcmp.eq.f32.partialorder %v11106_v15, 0.0  ;;  %vm5893_vm2 = vcmp.eq.f32.partialorder %v11120_v63, inf }
 0x4de   : > { %v11156_v32 = vpop.f32.mrb[36].mxu1  ;;  %v8802_v62 = vpop.eup %8801  ;;  %vm6012_vm3 = vcmp.eq.f32.partialorder %v11123_v46, inf  ;;  %vm5895_vm4 = vcmp.eq.f32.partialorder %v11120_v63, 0.0  ;;  %vm6014_vm5 = vcmp.eq.f32.partialorder %v11123_v46, 0.0  ;;  %vm6019_vm6 = vcmp.eq.f32.partialorder %v11164_v19, inf }
 0x4df   : > { %14161 = vst [vmem:[#allocation14_spill] sm:$0xff] %v11156_v32  ;;  %v11169_v61 = vpop.f32.mrb[37].mxu1  ;;  %v5773_v32 = vmul.f32 %v8796_v58, %v10965_v5  ;;  %v11213_v58 = vadd.f32 %v5356_v0, %v10893_v52  ;;  %v8804_v52 = vpop.eup %8803  ;;  %v5889_v0 = vand.u32 2147483648, %v11106_v15  ;;  %vm6124_vm7 = vcmp.eq.f32.partialorder %v11167_v26, inf }
 0x4e0   : > { %v11179_v50 = vpop.f32.mrb[38].mxu1  ;;  %v5892_v45 = vmul.f32 %v8804_v52, %v11120_v63  ;;  %vm6021_vm8 = vcmp.eq.f32.partialorder %v11164_v19, 0.0  ;;  %vm6126_vm9 = vcmp.eq.f32.partialorder %v11167_v26, 0.0 }
 0x4e1   : > { %v11188_v48 = vpop.f32.mrb[39].mxu1  ;;  %v11194_v12 = vpop.f32.mrb[36].mxu0  ;;  %8811 = vrsqrt.f32 %v11213_v58 }
 0x4e2   : > { %14162 = vst [vmem:[#allocation15_spill] sm:$0xff] %v11188_v48  ;;  %v11203_v22 = vpop.f32.mrb[37].mxu0  ;;  %v5775_v48 = vsel %vm5774_vm10, %v10965_v5, %v5773_v32  ;;  %8813 = vrsqrt.f32 %v11216_v1  ;;  %v11253_v5 = vpop.permute.xlu1 %6582  ;;  %vm5998_vm10 = vcmp.eq.f32.partialorder %v11213_v58, inf }
 0x4e3   : > { %14163 = vst [vmem:[#allocation16_spill] sm:$0xff] %v11203_v22  ;;  %v11218_v13 = vpop.f32.mrb[38].mxu0  ;;  %v5908_v22 = vsel %vm5907_vm12, %v10967_v18, %v5906_v47  ;;  %v8806_v47 = vpop.eup %8805  ;;  %v11239_v17 = vsel %vm5776_vm11, %v5777_v42, %v5775_v48  ;;  %14168 = vst [vmem:[#allocation21_spill] sm:$0xff] %v11253_v5  ;;  %v5782_v48 = vsel %vm5781_vm14, %v11074_v7, %v5780_v2  ;;  %v6015_v18 = vand.u32 2147483648, %v11123_v46 }
 0x4e4   : > { %14164 = vst [vmem:[#allocation17_spill] sm:$0xff] %v11218_v13  ;;  %v11228_v32 = vpop.f32.mrb[39].mxu0  ;;  %v14172_v2 = vmax.f32 %v11112_v44, 1e-06  ;;  %v8808_v52 = vpop.eup %8807  ;;  %8815 = vrsqrt.f32 %v11226_v14  ;;  %vm6131_vm11 = vcmp.eq.f32.partialorder %v11216_v1, inf  ;;  %vm6000_vm12 = vcmp.eq.f32.partialorder %v11213_v58, 0.0 }
 0x4e5   : > { %14165 = vst [vmem:[#allocation18_spill] sm:$0xff] %v11228_v32  ;;  %v11248_v32 = vsel %vm5909_vm13, %v5910_v43, %v5908_v22  ;;  %v14170_v43 = vmax.f32 %v11062_v35, 1e-06  ;;  %v8810_v51 = vpop.eup %8809  ;;  %vm6133_vm13 = vcmp.eq.f32.partialorder %v11216_v1, 0.0  ;;  %vm6005_vm14 = vcmp.eq.f32.partialorder %v11226_v14, inf }
 0x4e6   : > { %v11234_v6 = vpop.f32.mrb[40].mxu1 }
 0x4e7   : > { %14166 = vst [vmem:[#allocation19_spill] sm:$0xff] %v11234_v6  ;;  %v11244_v16 = vpop.f32.mrb[41].mxu1  ;;  %v5885_v6 = vmul.f32 %v8802_v62, %v11106_v15  ;;  %v6620_v22 = vadd.f32 %v11253_v5, %v14170_v43 }
 0x4e8   : > { %14167 = vst [vmem:[#allocation20_spill] sm:$0xff] %v11244_v16  ;;  %v11255_v42 = vpop.f32.mrb[42].mxu1  ;;  %v6621_v16 = vadd.f32 %v11253_v5, %v14172_v2  ;;  %v14174_v2 = vmax.f32 %v11013_v38, 1e-06  ;;  %v5894_v38 = vsel %vm5893_vm2, %v11120_v63, %v5892_v45 }
 0x4e9   : > { %14169 = vst [vmem:[#allocation22_spill] sm:$0xff] %v11255_v42  ;;  %v11266_v62 = vpop.f32.mrb[43].mxu1  ;;  %v6011_v42 = vmul.f32 %v8806_v47, %v11123_v46  ;;  %v11275_v13 = vpop.f32.mrb[40].mxu0  ;;  %v11285_v47 = vsel %vm5783_vm15, %v5784_v37, %v5782_v48  ;;  %v5887_v44 = vsel %vm5886_vm0, %v11106_v15, %v5885_v6  ;;  %8817 = vlog2.f32 %v6620_v22 }
 0x4ea   : > { %14171 = vst [vmem:[#allocation23_spill] sm:$0xff] %v11266_v62  ;;  %v11281_v62 = vpop.f32.mrb[41].mxu0  ;;  %v6622_v35 = vadd.f32 %v11253_v5, %v14174_v2  ;;  %v5372_v37 = vmul.f32 %v10987_v28, %v10987_v28  ;;  %v5373_v6 = vmul.f32 %v10995_v34, %v10995_v34  ;;  %8819 = vlog2.f32 %v6621_v16 }
 0x4eb   : > { %14173 = vst [vmem:[#allocation24_spill] sm:$0xff] %v11281_v62  ;;  %v11294_v43 = vpop.f32.mrb[42].mxu0  ;;  %v14175_v62 = vmax.f32 %v11022_v11, 1e-06  ;;  %v6013_v2 = vsel %vm6012_vm3, %v11123_v46, %v6011_v42  ;;  %v6018_v28 = vmul.f32 %v8808_v52, %v11164_v19  ;;  %v6123_v16 = vmul.f32 %v8810_v51, %v11167_v26  ;;  %v11331_v52 = vpop.permute.xlu0 %6587 }
 0x4ec   : > { %v11304_v48 = vpop.f32.mrb[43].mxu0  ;;  %8821 = vlog2.f32 %v6622_v35  ;;  %v11318_v34 = vadd.f32 %v5372_v37, %v10907_v53  ;;  %v11321_v22 = vadd.f32 %v5373_v6, %v10911_v20  ;;  %14176 = vst [vmem:[#allocation25_spill] sm:$0xff] %v11331_v52  ;;  %v14178_v20 = vmax.f32 %v11116_v29, 1e-06 }
 0x4ed   : > { %v6623_v7 = vadd.f32 %v11253_v5, %v14175_v62  ;;  %v8812_v62 = vpop.eup %8811  ;;  %v11328_v5 = vsel %vm5888_vm1, %v5889_v0, %v5887_v44  ;;  %v14180_v51 = vand.u32 2147483648, %v11120_v63  ;;  %v14181_v6 = vmax.f32 %v11129_v41, 1e-06 }
 0x4ee   : > { %v11314_v11 = vpop.f32.mrb[44].mxu1  ;;  %v6636_v37 = vadd.f32 %v11331_v52, %v14178_v20  ;;  %v8814_v0 = vpop.eup %8813  ;;  %v6020_v63 = vsel %vm6019_vm6, %v11164_v19, %v6018_v28  ;;  %v6134_v46 = vand.u32 2147483648, %v11216_v1  ;;  %v14189_v53 = vand.u32 2147483648, %v11167_v26 }
 0x4ef   : > { %v11323_v45 = vpop.f32.mrb[45].mxu1  ;;  %8823 = vlog2.f32 %v6623_v7  ;;  %v11347_v44 = vsel %vm5895_vm4, %v14180_v51, %v5894_v38  ;;  %v11351_v7 = vsel %vm6014_vm5, %v6015_v18, %v6013_v2  ;;  %v6637_v29 = vadd.f32 %v11331_v52, %v14181_v6 }
 0x4f0   : > { %v11333_v35 = vpop.f32.mrb[46].mxu1  ;;  %8825 = vrsqrt.f32 %v11318_v34  ;;  %v5997_v38 = vmul.f32 %v8812_v62, %v11213_v58  ;;  %v6125_v18 = vsel %vm6124_vm7, %v11167_v26, %v6123_v16  ;;  %v6130_v2 = vmul.f32 %v8814_v0, %v11216_v1  ;;  %v8816_v0 = vpop.eup %8815 }
 0x4f1   : > { %14177 = vst [vmem:[#allocation26_spill] sm:$0xff] %v11333_v35  ;;  %v11341_v15 = vpop.f32.mrb[47].mxu1  ;;  %8827 = vrsqrt.f32 %v11321_v22  ;;  %v11357_v20 = vpop.f32.mrb[44].mxu0  ;;  %v14184_v51 = vmax.f32 %v11054_v39, 1e-06  ;;  %v14188_v39 = vand.u32 2147483648, %v11164_v19 }
 0x4f2   : > { %14179 = vst [vmem:[#allocation27_spill] sm:$0xff] %v11341_v15  ;;  %14182 = vst [vmem:[#allocation28_spill] sm:$0xff] %v11357_v20  ;;  %v11367_v41 = vpop.f32.mrb[45].mxu0  ;;  %v14185_v62 = vmax.f32 %v11066_v59, 1e-06  ;;  %8829 = vlog2.f32 %v6636_v37  ;;  %v5999_v19 = vsel %vm5998_vm10, %v11213_v58, %v5997_v38  ;;  %vm6007_vm15 = vcmp.eq.f32.partialorder %v11226_v14, 0.0 }
 0x4f3   : > { %14183 = vst [vmem:[#allocation29_spill] sm:$0xff] %v11367_v41  ;;  %v6638_v28 = vadd.f32 %v11331_v52, %v14184_v51  ;;  %v11379_v42 = vpop.f32.mrb[46].mxu0  ;;  %v11392_v59 = vsel %vm6021_vm8, %v14188_v39, %v6020_v63  ;;  %8831 = vlog2.f32 %v6637_v29  ;;  %v5390_v51 = vmul.f32 %v11003_v54, %v11003_v54  ;;  %v8818_v37 = vpop.eup %8817 }
 0x4f4   : > { %v6639_v6 = vadd.f32 %v11331_v52, %v14185_v62  ;;  %14186 = vst [vmem:[#allocation30_spill] sm:$0xff] %v11379_v42  ;;  %v11384_v16 = vpop.f32.mrb[47].mxu0  ;;  %v5391_v62 = vmul.f32 %v11009_v57, %v11009_v57  ;;  %v5406_v54 = vmul.f32 %v11018_v4, %v11018_v4  ;;  %v8820_v29 = vpop.eup %8819  ;;  %v6132_v63 = vsel %vm6131_vm11, %v11216_v1, %v6130_v2 }
 0x4f5   : > { %14187 = vst [vmem:[#allocation31_spill] sm:$0xff] %v11384_v16  ;;  %v11404_v16 = vsel %vm6126_vm9, %v14189_v53, %v6125_v18  ;;  %8833 = vlog2.f32 %v6638_v28  ;;  %v6749_v26 = vmul.f32 0.6931472, %v8818_v37  ;;  %v11418_v53 = vadd.f32 %v5390_v51, %v10915_v23  ;;  %v11468_v1 = vpop.permute.xlu1 %6592 }
 0x4f6   : > { %v11398_v41 = vpop.f32.mrb[48].mxu1  ;;  %8835 = vlog2.f32 %v6639_v6  ;;  %v8822_v38 = vpop.eup %8821  ;;  %v6004_v28 = vmul.f32 %v8816_v0, %v11226_v14  ;;  %v6751_v39 = vmul.f32 0.6931472, %v8820_v29  ;;  %v11424_v4 = vadd.f32 %v5391_v62, %v10919_v21  ;;  %14191 = vst [vmem:[#allocation32_spill] sm:$0xff] %v11468_v1 }
 0x4f7   : > { %v11412_v57 = vpop.f32.mrb[49].mxu1  ;;  %v11427_v42 = vadd.f32 %v5406_v54, %v10925_v55  ;;  %v6008_v23 = vand.u32 2147483648, %v11226_v14  ;;  %v6753_v51 = vmul.f32 0.6931472, %v8822_v38  ;;  %7004 = vst [vmem:[%s11433_s17] sm:$0xff] %v6749_v26  ;;  %8837 = vrsqrt.f32 %v11418_v53 }
 0x4f8   : > { %v11420_v18 = vpop.f32.mrb[50].mxu1  ;;  %7005 = vst [vmem:[%s11433_s17 + $0x8] sm:$0xff] %v6751_v39  ;;  %vm6110_vm0 = vcmp.eq.f32.partialorder %v11318_v34, inf  ;;  %8839 = vrsqrt.f32 %v11424_v4  ;;  %v14190_v29 = vand.u32 2147483648, %v11213_v58  ;;  %v11453_v38 = vsel %vm6133_vm13, %v6134_v46, %v6132_v63 }
 0x4f9   : > { %v11429_v15 = vpop.f32.mrb[51].mxu1  ;;  %v8824_v2 = vpop.eup %8823  ;;  %7006 = vst [vmem:[%s11433_s17 + $0x10] sm:$0xff] %v6753_v51  ;;  %vm6112_vm1 = vcmp.eq.f32.partialorder %v11318_v34, 0.0  ;;  %v6006_v6 = vsel %vm6005_vm14, %v11226_v14, %v6004_v28  ;;  %vm6117_vm2 = vcmp.eq.f32.partialorder %v11321_v22, inf  ;;  %8841 = vrsqrt.f32 %v11427_v42 }
 0x4fa   : > { %v11437_v21 = vpop.f32.mrb[48].mxu0  ;;  %v8826_v55 = vpop.eup %8825  ;;  %v6755_v62 = vmul.f32 0.6931472, %v8824_v2  ;;  %v11449_v26 = vsel %vm6000_vm12, %v14190_v29, %v5999_v19  ;;  %v6113_v2 = vand.u32 2147483648, %v11318_v34  ;;  %vm6119_vm3 = vcmp.eq.f32.partialorder %v11321_v22, 0.0 }
 0x4fb   : > { %v11443_v37 = vpop.f32.mrb[49].mxu0  ;;  %v8828_v54 = vpop.eup %8827  ;;  %v6109_v39 = vmul.f32 %v8826_v55, %v11318_v34  ;;  %v14192_v19 = vmax.f32 %v11239_v17, 1e-06  ;;  %v14193_v51 = vmax.f32 %v11285_v47, 1e-06  ;;  %v5388_v47 = vmul.f32 %v11043_v30, %v11043_v30 }
 0x4fc   : > { %v11459_v0 = vpop.f32.mrb[50].mxu0  ;;  %7007 = vst [vmem:[%s11433_s17 + $0x18] sm:$0xff] %v6755_v62  ;;  %v6116_v58 = vmul.f32 %v8828_v54, %v11321_v22  ;;  %v14194_v55 = vmax.f32 %v11160_v36, 1e-06  ;;  %v8830_v29 = vpop.eup %8829  ;;  %v14195_v52 = vmax.f32 %v11199_v3, 1e-06 }
 0x4fd   : > { %v11470_v46 = vpop.f32.mrb[51].mxu0  ;;  %v6652_v63 = vadd.f32 %v11468_v1, %v14192_v19  ;;  %v6653_v28 = vadd.f32 %v11468_v1, %v14193_v51  ;;  %v8832_v36 = vpop.eup %8831  ;;  %v11495_v51 = vsel %vm6007_vm15, %v6008_v23, %v6006_v6  ;;  %v6781_v35 = vmul.f32 0.6931472, %v8830_v29 }
 0x4fe   : > { %v6654_v62 = vadd.f32 %v11468_v1, %v14194_v55  ;;  %v11482_v54 = vpop.f32.mrb[52].mxu1  ;;  %v6655_v17 = vadd.f32 %v11468_v1, %v14195_v52  ;;  %v6111_v55 = vsel %vm6110_vm0, %v11318_v34, %v6109_v39  ;;  %v6118_v30 = vsel %vm6117_vm2, %v11321_v22, %v6116_v58 }
 0x4ff   : > { %v11491_v19 = vpop.f32.mrb[53].mxu1  ;;  %8843 = vlog2.f32 %v6652_v63  ;;  %v8834_v52 = vpop.eup %8833  ;;  %v6783_v20 = vmul.f32 0.6931472, %v8832_v36  ;;  %v11506_v14 = vadd.f32 %v5388_v47, %v10929_v25  ;;  %7020 = vst [vmem:[%s11433_s17 + $0x80] sm:$0xff] %v6781_v35  ;;  %v5407_v63 = vmul.f32 %v11031_v9, %v11031_v9  ;;  %v14200_v9 = vld [vmem:[#allocation8_spill] sm:$0xff] }
 0x500   : > { %v11500_v3 = vpop.f32.mrb[54].mxu1  ;;  %8845 = vlog2.f32 %v6653_v28  ;;  %v8836_v23 = vpop.eup %8835  ;;  %v6785_v39 = vmul.f32 0.6931472, %v8834_v52  ;;  %v5389_v29 = vmul.f32 %v11049_v49, %v11049_v49  ;;  %v6120_v25 = vand.u32 2147483648, %v11321_v22 }
 0x501   : > { %14196 = vst [vmem:[#allocation33_spill] sm:$0xff] %v11500_v3  ;;  %v11508_v6 = vpop.f32.mrb[55].mxu1  ;;  %8847 = vlog2.f32 %v6654_v62  ;;  %v11515_v1 = vpop.f32.mrb[52].mxu0  ;;  %v6787_v28 = vmul.f32 0.6931472, %v8836_v23  ;;  %7021 = vst [vmem:[%s11433_s17 + $0x88] sm:$0xff] %v6783_v20  ;;  %v11526_v49 = vadd.f32 %v5407_v63, %v14200_v9  ;;  %v11535_v20 = vsel %vm6112_vm1, %v6113_v2, %v6111_v55 }
 0x502   : > { %14197 = vst [vmem:[#allocation34_spill] sm:$0xff] %v11508_v6  ;;  %14198 = vst [vmem:[#allocation35_spill] sm:$0xff] %v11515_v1  ;;  %8849 = vlog2.f32 %v6655_v17  ;;  %v11520_v47 = vpop.f32.mrb[53].mxu0  ;;  %v8838_v35 = vpop.eup %8837  ;;  %vm6236_vm4 = vcmp.eq.f32.partialorder %v11418_v53, inf  ;;  %v14201_v62 = vld [vmem:[#allocation9_spill] sm:$0xff]  ;;  %v11539_v17 = vsel %vm6119_vm3, %v6120_v25, %v6118_v30  ;;  %vm6238_vm5 = vcmp.eq.f32.partialorder %v11418_v53, 0.0 }
 0x503   : > { %14199 = vst [vmem:[#allocation36_spill] sm:$0xff] %v11520_v47  ;;  %7022 = vst [vmem:[%s11433_s17 + $0x90] sm:$0xff] %v6785_v39  ;;  %8851 = vrsqrt.f32 %v11506_v14  ;;  %v11529_v36 = vadd.f32 %v5389_v29, %v14201_v62  ;;  %v11531_v52 = vpop.f32.mrb[54].mxu0  ;;  %v8840_v58 = vpop.eup %8839  ;;  %v6239_v23 = vand.u32 2147483648, %v11418_v53  ;;  %v6235_v63 = vmul.f32 %v8838_v35, %v11418_v53 }
 0x504   : > { %14202 = vst [vmem:[#allocation8_spill] sm:$0xff] %v11531_v52  ;;  %7023 = vst [vmem:[%s11433_s17 + $0x98] sm:$0xff] %v6787_v28  ;;  %v11544_v39 = vpop.f32.mrb[55].mxu0  ;;  %8853 = vrsqrt.f32 %v11526_v49  ;;  %v5404_v34 = vmul.f32 %v11058_v31, %v11058_v31  ;;  %v5405_v2 = vmul.f32 %v11070_v27, %v11070_v27  ;;  %v8842_v55 = vpop.eup %8841  ;;  %v6242_v30 = vmul.f32 %v8840_v58, %v11424_v4  ;;  %v14209_v52 = vld [vmem:[#allocation11_spill] sm:$0xff] }
 0x505   : > { %14203 = vst [vmem:[#allocation9_spill] sm:$0xff] %v11544_v39  ;;  %vm6243_vm6 = vcmp.eq.f32.partialorder %v11424_v4, inf  ;;  %vm6245_vm7 = vcmp.eq.f32.partialorder %v11424_v4, 0.0  ;;  %8855 = vrsqrt.f32 %v11529_v36  ;;  %v6246_v25 = vand.u32 2147483648, %v11424_v4  ;;  %v11581_v58 = vpop.permute.xlu1 %6597 }
 0x506   : > { %v11552_v22 = vpop.f32.mrb[56].mxu1  ;;  %vm6348_vm8 = vcmp.eq.f32.partialorder %v11427_v42, inf  ;;  %vm6350_vm9 = vcmp.eq.f32.partialorder %v11427_v42, 0.0  ;;  %v6351_v31 = vand.u32 2147483648, %v11427_v42  ;;  %vm6222_vm10 = vcmp.eq.f32.partialorder %v11506_v14, inf }
 0x507   : > { %14204 = vst [vmem:[#allocation37_spill] sm:$0xff] %v11552_v22  ;;  %v11558_v29 = vpop.f32.mrb[57].mxu1  ;;  %v6237_v62 = vsel %vm6236_vm4, %v11418_v53, %v6235_v63  ;;  %v14208_v22 = vld [vmem:[#allocation10_spill] sm:$0xff]  ;;  %v6225_v63 = vand.u32 2147483648, %v11506_v14  ;;  %vm6224_vm11 = vcmp.eq.f32.partialorder %v11506_v14, 0.0  ;;  %vm6355_vm12 = vcmp.eq.f32.partialorder %v11526_v49, inf }
 0x508   : > { %14205 = vst [vmem:[#allocation38_spill] sm:$0xff] %v11558_v29  ;;  %v11564_v27 = vpop.f32.mrb[58].mxu1  ;;  %v6347_v29 = vmul.f32 %v8842_v55, %v11427_v42  ;;  %v11576_v39 = vadd.f32 %v5404_v34, %v14208_v22  ;;  %v14211_v55 = vmax.f32 %v11328_v5, 1e-06  ;;  %vm6229_vm13 = vcmp.eq.f32.partialorder %v11529_v36, inf }
 0x509   : > { %14206 = vst [vmem:[#allocation39_spill] sm:$0xff] %v11564_v27  ;;  %v11569_v35 = vpop.f32.mrb[59].mxu1  ;;  %v8844_v9 = vpop.eup %8843  ;;  %v11579_v27 = vadd.f32 %v5405_v2, %v14209_v52  ;;  %vm6357_vm14 = vcmp.eq.f32.partialorder %v11526_v49, 0.0  ;;  %vm6231_vm15 = vcmp.eq.f32.partialorder %v11529_v36, 0.0 }
 0x50a   : > { %14207 = vst [vmem:[#allocation40_spill] sm:$0xff] %v11569_v35  ;;  %v11583_v28 = vpop.f32.mrb[56].mxu0  ;;  %v8846_v47 = vpop.eup %8845  ;;  %v6244_v35 = vsel %vm6243_vm6, %v11424_v4, %v6242_v30  ;;  %v6813_v6 = vmul.f32 0.6931472, %v8844_v9  ;;  %v6668_v34 = vadd.f32 %v11581_v58, %v14211_v55  ;;  %8857 = vrsqrt.f32 %v11576_v39 }
 0x50b   : > { %14210 = vst [vmem:[#allocation10_spill] sm:$0xff] %v11583_v28  ;;  %v11592_v22 = vpop.f32.mrb[57].mxu0  ;;  %v8848_v52 = vpop.eup %8847  ;;  %v6815_v2 = vmul.f32 0.6931472, %v8846_v47  ;;  %v14213_v30 = vmax.f32 %v11347_v44, 1e-06  ;;  %v11604_v55 = vsel %vm6238_vm5, %v6239_v23, %v6237_v62  ;;  %8859 = vrsqrt.f32 %v11579_v27 }
 0x50c   : > { %14212 = vst [vmem:[#allocation11_spill] sm:$0xff] %v11592_v22  ;;  %v11600_v28 = vpop.f32.mrb[58].mxu0  ;;  %v8850_v5 = vpop.eup %8849  ;;  %v6817_v47 = vmul.f32 0.6931472, %v8848_v52  ;;  %7036 = vst [vmem:[%s11433_s17 + $0x100] sm:$0xff] %v6813_v6  ;;  %v6349_v53 = vsel %vm6348_vm8, %v11427_v42, %v6347_v29  ;;  %v6358_v52 = vand.u32 2147483648, %v11526_v49  ;;  %8861 = vlog2.f32 %v6668_v34 }
 0x50d   : > { %v6669_v9 = vadd.f32 %v11581_v58, %v14213_v30  ;;  %v14214_v22 = vmax.f32 %v11207_v8, 1e-06  ;;  %v11611_v3 = vpop.f32.mrb[59].mxu0  ;;  %v8852_v44 = vpop.eup %8851  ;;  %v11615_v30 = vsel %vm6245_vm7, %v6246_v25, %v6244_v35  ;;  %v6819_v23 = vmul.f32 0.6931472, %v8850_v5  ;;  %7037 = vst [vmem:[%s11433_s17 + $0x108] sm:$0xff] %v6815_v2 }
 0x50e   : > { %v14215_v6 = vmax.f32 %v11248_v32, 1e-06  ;;  %v11624_v62 = vpop.f32.mrb[60].mxu1  ;;  %7038 = vst [vmem:[%s11433_s17 + $0x110] sm:$0xff] %v6817_v47  ;;  %v8854_v25 = vpop.eup %8853  ;;  %v6232_v32 = vand.u32 2147483648, %v11529_v36  ;;  %v11642_v34 = vsel %vm6350_vm9, %v6351_v31, %v6349_v53  ;;  %vm6334_vm0 = vcmp.eq.f32.partialorder %v11576_v39, inf }
 0x50f   : > { %v6670_v1 = vadd.f32 %v11581_v58, %v14214_v22  ;;  %v6221_v22 = vmul.f32 %v8852_v44, %v11506_v14  ;;  %v11630_v4 = vpop.f32.mrb[61].mxu1  ;;  %7039 = vst [vmem:[%s11433_s17 + $0x118] sm:$0xff] %v6819_v23  ;;  %8863 = vlog2.f32 %v6669_v9  ;;  %v8856_v2 = vpop.eup %8855  ;;  %v6354_v47 = vmul.f32 %v8854_v25, %v11526_v49 }
 0x510   : > { %v6671_v8 = vadd.f32 %v11581_v58, %v14215_v6  ;;  %v11637_v35 = vpop.f32.mrb[62].mxu1  ;;  %v11645_v44 = vpop.permute.xlu0 %6602  ;;  %v6228_v6 = vmul.f32 %v8856_v2, %v11529_v36  ;;  %vm6336_vm1 = vcmp.eq.f32.partialorder %v11576_v39, 0.0  ;;  %v6337_v42 = vand.u32 2147483648, %v11576_v39 }
 0x511   : > { %8865 = vlog2.f32 %v6670_v1  ;;  %v11647_v23 = vpop.f32.mrb[63].mxu1  ;;  %v6223_v9 = vsel %vm6222_vm10, %v11506_v14, %v6221_v22  ;;  %v11654_v5 = vpop.f32.mrb[60].mxu0  ;;  %v14217_v1 = vmax.f32 %v11449_v26, 1e-06  ;;  %v14218_v53 = vmax.f32 %v11495_v51, 1e-06 }
 0x512   : > { %14216 = vst [vmem:[#allocation41_spill] sm:$0xff] %v11647_v23  ;;  %8867 = vlog2.f32 %v6671_v8  ;;  %v11664_v22 = vpop.f32.mrb[61].mxu0  ;;  %v6230_v8 = vsel %vm6229_vm13, %v11529_v36, %v6228_v6  ;;  %vm6341_vm2 = vcmp.eq.f32.partialorder %v11579_v27, inf  ;;  %v14219_v2 = vmax.f32 %v11351_v7, 1e-06  ;;  %v11676_v23 = vpop.permute.xlu1 %6607 }
 0x513   : > { %v6684_v31 = vadd.f32 %v11645_v44, %v14217_v1  ;;  %v6685_v25 = vadd.f32 %v11645_v44, %v14218_v53  ;;  %v14220_v26 = vmax.f32 %v11392_v59, 1e-06  ;;  %v11678_v51 = vpop.f32.mrb[62].mxu0  ;;  %v6226_v53 = vsel %vm6224_vm11, %v6225_v63, %v6223_v9 }
 0x514   : > { %v6686_v29 = vadd.f32 %v11645_v44, %v14219_v2  ;;  %14221 = vst [vmem:[#allocation42_spill] sm:$0xff] %v11678_v51  ;;  %v6356_v6 = vsel %vm6355_vm12, %v11526_v49, %v6354_v47  ;;  %vm6343_vm3 = vcmp.eq.f32.partialorder %v11579_v27, 0.0  ;;  %v11686_v7 = vpop.f32.mrb[63].mxu0  ;;  %v8858_v2 = vpop.eup %8857  ;;  %v6233_v59 = vsel %vm6231_vm15, %v6232_v32, %v6230_v8 }
 0x515   : > { %v6687_v1 = vadd.f32 %v11645_v44, %v14220_v26  ;;  %8869 = vlog2.f32 %v6684_v31  ;;  %14222 = vst [vmem:[#allocation43_spill] sm:$0xff] %v11686_v7  ;;  %v14223_v26 = vmax.f32 %v11535_v20, 1e-06  ;;  %v14224_v14 = vmax.f32 %v11539_v17, 1e-06  ;;  %v8860_v47 = vpop.eup %8859 }
 0x516   : > { %8871 = vlog2.f32 %v6685_v25  ;;  %v11696_v9 = vpop.f32.mrb[64].mxu1  ;;  %v6333_v31 = vmul.f32 %v8858_v2, %v11576_v39  ;;  %v6344_v7 = vand.u32 2147483648, %v11579_v27  ;;  %v14226_v36 = vmax.f32 %v11404_v16, 1e-06  ;;  %v8862_v2 = vpop.eup %8861 }
 0x517   : > { %v6700_v51 = vadd.f32 %v11676_v23, %v14223_v26  ;;  %v6701_v63 = vadd.f32 %v11676_v23, %v14224_v14  ;;  %14225 = vst [vmem:[#allocation44_spill] sm:$0xff] %v11696_v9  ;;  %8873 = vlog2.f32 %v6686_v29  ;;  %v11703_v25 = vpop.f32.mrb[65].mxu1  ;;  %v6540_v20 = vmax.f32 %v6226_v53, 1e-06 }
 0x518   : > { %v6702_v32 = vadd.f32 %v11676_v23, %v14226_v36  ;;  %v6340_v8 = vmul.f32 %v8860_v47, %v11579_v27  ;;  %8875 = vlog2.f32 %v6687_v1  ;;  %v14227_v17 = vmax.f32 %v11453_v38, 1e-06  ;;  %v11709_v14 = vpop.f32.mrb[66].mxu1 }
 0x519   : > { %v6359_v29 = vsel %vm6357_vm14, %v6358_v52, %v6356_v6  ;;  %v6541_v9 = vmax.f32 %v6233_v59, 1e-06  ;;  %v6335_v16 = vsel %vm6334_vm0, %v11576_v39, %v6333_v31  ;;  %8877 = vlog2.f32 %v6700_v51  ;;  %v11716_v53 = vpop.f32.mrb[67].mxu1  ;;  %v8864_v47 = vpop.eup %8863 }
 0x51a   : > { %v6703_v26 = vadd.f32 %v11676_v23, %v14227_v17  ;;  %v6338_v38 = vsel %vm6336_vm1, %v6337_v42, %v6335_v16  ;;  %v6342_v1 = vsel %vm6341_vm2, %v11579_v27, %v6340_v8  ;;  %v6845_v36 = vmul.f32 0.6931472, %v8862_v2  ;;  %v11723_v49 = vpop.f32.mrb[64].mxu0  ;;  %v11727_v39 = vpop.permute.xlu0 %6612 }
 0x51b   : > { %8879 = vlog2.f32 %v6701_v63  ;;  %v8866_v52 = vpop.eup %8865  ;;  %v6556_v6 = vmax.f32 %v6338_v38, 1e-06  ;;  %v6345_v51 = vsel %vm6343_vm3, %v6344_v7, %v6342_v1  ;;  %v6847_v59 = vmul.f32 0.6931472, %v8864_v47  ;;  %14228 = vst [vmem:[#allocation45_spill] sm:$0xff] %v11727_v39  ;;  %v11729_v42 = vpop.f32.mrb[65].mxu0 }
 0x51c   : > { %8881 = vlog2.f32 %v6702_v32  ;;  %v8868_v31 = vpop.eup %8867  ;;  %v6557_v17 = vmax.f32 %v6345_v51, 1e-06  ;;  %v6849_v8 = vmul.f32 0.6931472, %v8866_v52  ;;  %7052 = vst [vmem:[%s11433_s17 + $0x180] sm:$0xff] %v6845_v36  ;;  %v11732_v63 = vpop.f32.mrb[66].mxu0  ;;  %v6716_v27 = vadd.f32 %v11727_v39, %v6540_v20 }
 0x51d   : > { %8883 = vlog2.f32 %v6703_v26  ;;  %v6558_v2 = vmax.f32 %v11642_v34, 1e-06  ;;  %v6851_v16 = vmul.f32 0.6931472, %v8868_v31  ;;  %7053 = vst [vmem:[%s11433_s17 + $0x188] sm:$0xff] %v6847_v59  ;;  %v11737_v7 = vpop.f32.mrb[67].mxu0  ;;  %v6717_v47 = vadd.f32 %v11727_v39, %v6541_v9  ;;  %v11747_v52 = vpop.permute.xlu1 %6617 }
 0x51e   : > { %v6559_v32 = vmax.f32 %v6359_v29, 1e-06  ;;  %7054 = vst [vmem:[%s11433_s17 + $0x190] sm:$0xff] %v6849_v8  ;;  %v14229_v38 = vmax.f32 %v11604_v55, 1e-06  ;;  %14231 = vst [vmem:[#allocation46_spill] sm:$0xff] %v11747_v52  ;;  %v11754_v20 = vmul.f32 %v11082_v33, %v11082_v33  ;;  %8885 = vlog2.f32 %v6716_v27 }
 0x51f   : > { %v14230_v26 = vmax.f32 %v11615_v30, 1e-06  ;;  %v11749_v34 = vpop.f32.mrb[68].mxu1  ;;  %v8870_v51 = vpop.eup %8869  ;;  %7055 = vst [vmem:[%s11433_s17 + $0x198] sm:$0xff] %v6851_v16  ;;  %v14233_v29 = vld [vmem:[#allocation12_spill] sm:$0xff]  ;;  %v6732_v55 = vadd.f32 %v11747_v52, %v6556_v6  ;;  %v14235_v31 = vld [vmem:[#allocation13_spill] sm:$0xff]  ;;  %8887 = vlog2.f32 %v6717_v47  ;;  %v6733_v33 = vadd.f32 %v11747_v52, %v6557_v17 }
 0x520   : > { %v6718_v1 = vadd.f32 %v11727_v39, %v14229_v38  ;;  %14232 = vst [vmem:[#allocation47_spill] sm:$0xff] %v11749_v34  ;;  %v11758_v9 = vmul.f32 %v14233_v29, %v14233_v29  ;;  %v11761_v30 = vpop.f32.mrb[69].mxu1  ;;  %v8872_v59 = vpop.eup %8871  ;;  %v11765_v8 = vmul.f32 %v14235_v31, %v14235_v31  ;;  %v6877_v16 = vmul.f32 0.6931472, %v8870_v51 }
 0x521   : > { %v6719_v36 = vadd.f32 %v11727_v39, %v14230_v26  ;;  %14234 = vst [vmem:[#allocation12_spill] sm:$0xff] %v11761_v30  ;;  %v11768_v38 = vpop.f32.mrb[70].mxu1  ;;  %v8874_v26 = vpop.eup %8873  ;;  %v11772_v27 = vmul.f32 %v11125_v40, %v11125_v40  ;;  %v6879_v6 = vmul.f32 0.6931472, %v8872_v59  ;;  %v6734_v29 = vadd.f32 %v11747_v52, %v6558_v2 }
 0x522   : > { %14236 = vst [vmem:[#allocation13_spill] sm:$0xff] %v11768_v38  ;;  %8889 = vlog2.f32 %v6718_v1  ;;  %v11775_v30 = vpop.f32.mrb[71].mxu1  ;;  %v8876_v31 = vpop.eup %8875  ;;  %v5187_v47 = vmul.f32 %v11108_v24, %v11108_v24  ;;  %v6881_v17 = vmul.f32 0.6931472, %v8874_v26  ;;  %7068 = vst [vmem:[%s11433_s17 + $0x200] sm:$0xff] %v6877_v16  ;;  %v6735_v51 = vadd.f32 %v11747_v52, %v6559_v32  ;;  %v14240_v26 = vld [vmem:[#allocation14_spill] sm:$0xff] }
 0x523   : > { %14237 = vst [vmem:[#allocation48_spill] sm:$0xff] %v11775_v30  ;;  %8891 = vlog2.f32 %v6719_v36  ;;  %v11781_v38 = vpop.f32.mrb[68].mxu0  ;;  %v8878_v40 = vpop.eup %8877  ;;  %v5169_v1 = vmul.f32 %v11136_v60, %v11136_v60  ;;  %v11787_v2 = vmul.f32 %v11144_v10, %v11144_v10  ;;  %v6883_v59 = vmul.f32 0.6931472, %v8876_v31  ;;  %7069 = vst [vmem:[%s11433_s17 + $0x208] sm:$0xff] %v6879_v6 }
 0x524   : > { %14238 = vst [vmem:[#allocation49_spill] sm:$0xff] %v11781_v38  ;;  %8893 = vlog2.f32 %v6732_v55  ;;  %v11790_v24 = vpop.f32.mrb[69].mxu0  ;;  %7070 = vst [vmem:[%s11433_s17 + $0x210] sm:$0xff] %v6881_v17  ;;  %v11795_v32 = vmul.f32 %v11150_v56, %v11150_v56  ;;  %v6909_v36 = vmul.f32 0.6931472, %v8878_v40  ;;  %v11799_v60 = vmul.f32 %v14240_v26, %v14240_v26 }
 0x525   : > { %14239 = vst [vmem:[#allocation50_spill] sm:$0xff] %v11790_v24  ;;  %v8880_v16 = vpop.eup %8879  ;;  %8895 = vlog2.f32 %v6733_v33  ;;  %v11801_v10 = vpop.f32.mrb[70].mxu0  ;;  %7071 = vst [vmem:[%s11433_s17 + $0x218] sm:$0xff] %v6883_v59  ;;  %v11806_v31 = vmul.f32 %v11169_v61, %v11169_v61  ;;  %v11810_v56 = vmul.f32 %v11179_v50, %v11179_v50  ;;  %v11817_v26 = vmul.f32 %v11194_v12, %v11194_v12  ;;  %v14243_v59 = vld [vmem:[#allocation15_spill] sm:$0xff]  ;;  %v14247_v12 = vld [vmem:[#allocation18_spill] sm:$0xff] }
 0x526   : > { %14241 = vst [vmem:[#allocation14_spill] sm:$0xff] %v11801_v10  ;;  %v8882_v6 = vpop.eup %8881  ;;  %v6911_v55 = vmul.f32 0.6931472, %v8880_v16  ;;  %8897 = vlog2.f32 %v6734_v29  ;;  %v11812_v17 = vpop.f32.mrb[71].mxu0  ;;  %7084 = vst [vmem:[%s11433_s17 + $0x280] sm:$0xff] %v6909_v36  ;;  %v11821_v16 = vmul.f32 %v14243_v59, %v14243_v59  ;;  %v14245_v29 = vld [vmem:[#allocation16_spill] sm:$0xff]  ;;  %v11836_v10 = vmul.f32 %v14247_v12, %v14247_v12 }
 0x527   : > { %14242 = vst [vmem:[#allocation51_spill] sm:$0xff] %v11812_v17  ;;  %v8884_v40 = vpop.eup %8883  ;;  %v6913_v33 = vmul.f32 0.6931472, %v8882_v6  ;;  %8899 = vlog2.f32 %v6735_v51  ;;  %v11823_v61 = vpop.f32.mrb[72].mxu1  ;;  %v11828_v17 = vmul.f32 %v14245_v29, %v14245_v29  ;;  %v14246_v6 = vld [vmem:[#allocation17_spill] sm:$0xff]  ;;  %v5298_v51 = vmul.f32 %v11398_v41, %v11398_v41  ;;  %v14250_v12 = vld [vmem:[#allocation19_spill] sm:$0xff] }
 0x528   : > { %14244 = vst [vmem:[#allocation15_spill] sm:$0xff] %v11823_v61  ;;  %v6915_v50 = vmul.f32 0.6931472, %v8884_v40  ;;  %7085 = vst [vmem:[%s11433_s17 + $0x288] sm:$0xff] %v6911_v55  ;;  %v11832_v36 = vmul.f32 %v14246_v6, %v14246_v6  ;;  %v11838_v59 = vpop.f32.mrb[73].mxu1  ;;  %v5299_v55 = vmul.f32 %v11412_v57, %v11412_v57  ;;  %v5314_v40 = vmul.f32 %v11420_v18, %v11420_v18  ;;  %v8886_v61 = vpop.eup %8885 }
 0x529   : > { %14248 = vst [vmem:[#allocation16_spill] sm:$0xff] %v11838_v59  ;;  %7086 = vst [vmem:[%s11433_s17 + $0x290] sm:$0xff] %v6913_v33  ;;  %v5296_v29 = vmul.f32 %v11437_v21, %v11437_v21  ;;  %v11849_v6 = vpop.f32.mrb[74].mxu1  ;;  %v11854_v59 = vmul.f32 %v14250_v12, %v14250_v12  ;;  %v14251_v33 = vld [vmem:[#allocation20_spill] sm:$0xff]  ;;  %v5315_v57 = vmul.f32 %v11429_v15, %v11429_v15  ;;  %v6941_v24 = vmul.f32 0.6931472, %v8886_v61 }
 0x52a   : > { %14249 = vst [vmem:[#allocation17_spill] sm:$0xff] %v11849_v6  ;;  %7087 = vst [vmem:[%s11433_s17 + $0x298] sm:$0xff] %v6915_v50  ;;  %v11858_v41 = vmul.f32 %v14251_v33, %v14251_v33  ;;  %v5297_v18 = vmul.f32 %v11443_v37, %v11443_v37  ;;  %v11864_v21 = vpop.f32.mrb[75].mxu1  ;;  %v8888_v6 = vpop.eup %8887  ;;  %v11867_v50 = vadd.f32 %v5298_v51, %v11754_v20 }
 0x52b   : > { %14252 = vst [vmem:[#allocation18_spill] sm:$0xff] %v11864_v21  ;;  %v11870_v12 = vadd.f32 %v5299_v55, %v11758_v9  ;;  %v11873_v33 = vadd.f32 %v5314_v40, %v11765_v8  ;;  %v11875_v30 = vpop.f32.mrb[72].mxu0  ;;  %v6943_v38 = vmul.f32 0.6931472, %v8888_v6  ;;  %v11878_v37 = vadd.f32 %v5296_v29, %v11772_v27  ;;  %7100 = vst [vmem:[%s11433_s17 + $0x300] sm:$0xff] %v6941_v24  ;;  %v14255_v8 = vld [vmem:[#allocation22_spill] sm:$0xff] }
 0x52c   : > { %14253 = vst [vmem:[#allocation19_spill] sm:$0xff] %v11875_v30  ;;  %v8890_v15 = vpop.eup %8889  ;;  %v11880_v21 = vadd.f32 %v5315_v57, %v5187_v47  ;;  %v11882_v61 = vadd.f32 %v5297_v18, %v5169_v1  ;;  %v11884_v20 = vpop.f32.mrb[73].mxu0  ;;  %v11889_v55 = vmul.f32 %v14255_v8, %v14255_v8  ;;  %v11893_v40 = vmul.f32 %v11275_v13, %v11275_v13  ;;  %v14257_v29 = vld [vmem:[#allocation23_spill] sm:$0xff]  ;;  %v14258_v24 = vld [vmem:[#allocation24_spill] sm:$0xff] }
 0x52d   : > { %14254 = vst [vmem:[#allocation20_spill] sm:$0xff] %v11884_v20  ;;  %v8892_v9 = vpop.eup %8891  ;;  %v6945_v51 = vmul.f32 0.6931472, %v8890_v15  ;;  %8901 = vrsqrt.f32 %v11867_v50  ;;  %v11896_v27 = vpop.f32.mrb[74].mxu0  ;;  %7101 = vst [vmem:[%s11433_s17 + $0x308] sm:$0xff] %v6943_v38  ;;  %v11901_v6 = vmul.f32 %v14257_v29, %v14257_v29  ;;  %v11905_v57 = vmul.f32 %v14258_v24, %v14258_v24 }
 0x52e   : > { %14256 = vst [vmem:[#allocation22_spill] sm:$0xff] %v11896_v27  ;;  %v8894_v47 = vpop.eup %8893  ;;  %v6947_v1 = vmul.f32 0.6931472, %v8892_v9  ;;  %8903 = vrsqrt.f32 %v11870_v12  ;;  %v11908_v13 = vpop.f32.mrb[75].mxu0  ;;  %v11913_v9 = vmul.f32 %v11294_v43, %v11294_v43  ;;  %v11917_v38 = vmul.f32 %v11304_v48, %v11304_v48 }
 0x52f   : > { %14259 = vst [vmem:[#allocation23_spill] sm:$0xff] %v11908_v13  ;;  %v8896_v18 = vpop.eup %8895  ;;  %7102 = vst [vmem:[%s11433_s17 + $0x310] sm:$0xff] %v6945_v51  ;;  %v6973_v15 = vmul.f32 0.6931472, %v8894_v47  ;;  %8905 = vrsqrt.f32 %v11873_v33  ;;  %v11920_v8 = vpop.f32.mrb[76].mxu1  ;;  %v11925_v51 = vmul.f32 %v11314_v11, %v11314_v11  ;;  %v5312_v43 = vmul.f32 %v11459_v0, %v11459_v0 }
 0x530   : > { %14260 = vst [vmem:[#allocation24_spill] sm:$0xff] %v11920_v8  ;;  %v8898_v29 = vpop.eup %8897  ;;  %7103 = vst [vmem:[%s11433_s17 + $0x318] sm:$0xff] %v6947_v1  ;;  %v6975_v24 = vmul.f32 0.6931472, %v8896_v18  ;;  %v5313_v47 = vmul.f32 %v11470_v46, %v11470_v46  ;;  %v11931_v48 = vpop.f32.mrb[77].mxu1  ;;  %v11936_v1 = vmul.f32 %v11323_v45, %v11323_v45  ;;  %vm5592_vm4 = vcmp.eq.f32.partialorder %v11867_v50, inf }
 0x531   : > { %14261 = vst [vmem:[#allocation52_spill] sm:$0xff] %v11931_v48  ;;  %v8900_v13 = vpop.eup %8899  ;;  %v6977_v27 = vmul.f32 0.6931472, %v8898_v29  ;;  %7116 = vst [vmem:[%s11433_s17 + $0x380] sm:$0xff] %v6973_v15  ;;  %8907 = vrsqrt.f32 %v11878_v37  ;;  %v11940_v11 = vpop.f32.mrb[78].mxu1  ;;  %vm5594_vm5 = vcmp.eq.f32.partialorder %v11867_v50, 0.0  ;;  %v11960_v29 = vadd.f32 %v5312_v43, %v11787_v2 }
 0x532   : > { %14262 = vst [vmem:[#allocation53_spill] sm:$0xff] %v11940_v11  ;;  %v6979_v0 = vmul.f32 0.6931472, %v8900_v13  ;;  %7117 = vst [vmem:[%s11433_s17 + $0x388] sm:$0xff] %v6975_v24  ;;  %v5595_v46 = vand.u32 2147483648, %v11867_v50  ;;  %vm5599_vm6 = vcmp.eq.f32.partialorder %v11870_v12, inf  ;;  %8909 = vrsqrt.f32 %v11880_v21 }
 0x533   : > { %v11947_v18 = vpop.f32.mrb[79].mxu1  ;;  %7118 = vst [vmem:[%s11433_s17 + $0x390] sm:$0xff] %v6977_v27  ;;  %vm5601_vm7 = vcmp.eq.f32.partialorder %v11870_v12, 0.0  ;;  %v5602_v45 = vand.u32 2147483648, %v11870_v12  ;;  %vm5704_vm8 = vcmp.eq.f32.partialorder %v11873_v33, inf  ;;  %8911 = vrsqrt.f32 %v11882_v61  ;;  %v11954_v13 = vpop.f32.mrb[76].mxu0 }
 0x534   : > { %14263 = vst [vmem:[#allocation54_spill] sm:$0xff] %v11947_v18  ;;  %14264 = vst [vmem:[#allocation55_spill] sm:$0xff] %v11954_v13  ;;  %vm5706_vm9 = vcmp.eq.f32.partialorder %v11873_v33, 0.0  ;;  %v5707_v15 = vand.u32 2147483648, %v11873_v33  ;;  %v11963_v27 = vadd.f32 %v5313_v47, %v11795_v32  ;;  %v11965_v24 = vpop.f32.mrb[77].mxu0  ;;  %v5330_v18 = vmul.f32 %v11482_v54, %v11482_v54  ;;  %v14266_v13 = vld [vmem:[#allocation33_spill] sm:$0xff] }
 0x535   : > { %7119 = vst [vmem:[%s11433_s17 + $0x398] sm:$0xff] %v6979_v0  ;;  %14265 = vst [vmem:[#allocation56_spill] sm:$0xff] %v11965_v24  ;;  %v5331_v11 = vmul.f32 %v11491_v19, %v11491_v19  ;;  %v5346_v0 = vmul.f32 %v14266_v13, %v14266_v13  ;;  %v14267_v48 = vld [vmem:[#allocation35_spill] sm:$0xff]  ;;  %v11975_v20 = vpop.f32.mrb[78].mxu0  ;;  %vm5578_vm10 = vcmp.eq.f32.partialorder %v11878_v37, inf  ;;  %vm5580_vm11 = vcmp.eq.f32.partialorder %v11878_v37, 0.0 }
 0x536   : > { %v5328_v8 = vmul.f32 %v14267_v48, %v14267_v48  ;;  %14268 = vst [vmem:[#allocation33_spill] sm:$0xff] %v11975_v20  ;;  %v5581_v2 = vand.u32 2147483648, %v11878_v37  ;;  %8913 = vrsqrt.f32 %v11960_v29  ;;  %v11981_v54 = vpop.f32.mrb[79].mxu0  ;;  %vm5711_vm12 = vcmp.eq.f32.partialorder %v11880_v21, inf  ;;  %v11987_v43 = vpop.f32.mrb[80].mxu1 }
 0x537   : > { %14269 = vst [vmem:[#allocation35_spill] sm:$0xff] %v11981_v54  ;;  %v8902_v32 = vpop.eup %8901  ;;  %vm5713_vm13 = vcmp.eq.f32.partialorder %v11880_v21, 0.0  ;;  %v5714_v19 = vand.u32 2147483648, %v11880_v21  ;;  %8915 = vrsqrt.f32 %v11963_v27  ;;  %14270 = vst [vmem:[#allocation57_spill] sm:$0xff] %v11987_v43  ;;  %vm5585_vm14 = vcmp.eq.f32.partialorder %v11882_v61, inf  ;;  %v12000_v24 = vpop.f32.mrb[81].mxu1 }
 0x538   : > { %v8904_v47 = vpop.eup %8903  ;;  %v5591_v48 = vmul.f32 %v8902_v32, %v11867_v50  ;;  %v11992_v13 = vadd.f32 %v5330_v18, %v11799_v60  ;;  %v11995_v54 = vadd.f32 %v5331_v11, %v11806_v31  ;;  %v11998_v20 = vadd.f32 %v5346_v0, %v11810_v56  ;;  %14271 = vst [vmem:[#allocation58_spill] sm:$0xff] %v12000_v24  ;;  %v12008_v60 = vpop.f32.mrb[82].mxu1 }
 0x539   : > { %v8906_v30 = vpop.eup %8905  ;;  %v5598_v34 = vmul.f32 %v8904_v47, %v11870_v12  ;;  %vm5587_vm15 = vcmp.eq.f32.partialorder %v11882_v61, 0.0  ;;  %v5588_v32 = vand.u32 2147483648, %v11882_v61  ;;  %v12006_v43 = vadd.f32 %v5328_v8, %v11817_v26  ;;  %14272 = vst [vmem:[#allocation59_spill] sm:$0xff] %v12008_v60  ;;  %v12016_v11 = vpop.f32.mrb[83].mxu1 }
 0x53a   : > { %v5593_v31 = vsel %vm5592_vm4, %v11867_v50, %v5591_v48  ;;  %v5703_v56 = vmul.f32 %v8906_v30, %v11873_v33  ;;  %vm5690_vm0 = vcmp.eq.f32.partialorder %v11960_v29, inf  ;;  %8917 = vrsqrt.f32 %v11992_v13  ;;  %14273 = vst [vmem:[#allocation60_spill] sm:$0xff] %v12016_v11  ;;  %v12026_v30 = vpop.f32.mrb[80].mxu0 }
 0x53b   : > { %v8908_v18 = vpop.eup %8907  ;;  %v5596_v0 = vsel %vm5594_vm5, %v5595_v46, %v5593_v31  ;;  %v5600_v26 = vsel %vm5599_vm6, %v11870_v12, %v5598_v34  ;;  %vm5692_vm1 = vcmp.eq.f32.partialorder %v11960_v29, 0.0  ;;  %v5693_v8 = vand.u32 2147483648, %v11960_v29  ;;  %14274 = vst [vmem:[#allocation61_spill] sm:$0xff] %v12026_v30  ;;  %v12035_v34 = vpop.f32.mrb[81].mxu0 }
 0x53c   : > { %vm5697_vm2 = vcmp.eq.f32.partialorder %v11963_v27, inf  ;;  %v8910_v47 = vpop.eup %8909  ;;  %v6450_v48 = vmax.f32 %v5596_v0, 1e-06  ;;  %v5603_v11 = vsel %vm5601_vm7, %v5602_v45, %v5600_v26  ;;  %v5705_v50 = vsel %vm5704_vm8, %v11873_v33, %v5703_v56  ;;  %14275 = vst [vmem:[#allocation62_spill] sm:$0xff] %v12035_v34  ;;  %v12041_v12 = vpop.f32.mrb[82].mxu0  ;;  %v14276_v45 = vld [vmem:[#allocation21_spill] sm:$0xff] }
 0x53d   : > { %v5577_v46 = vmul.f32 %v8908_v18, %v11878_v37  ;;  %vm5699_vm3 = vcmp.eq.f32.partialorder %v11963_v27, 0.0  ;;  %v8912_v31 = vpop.eup %8911  ;;  %v6451_v60 = vmax.f32 %v5603_v11, 1e-06  ;;  %v5708_v30 = vsel %vm5706_vm9, %v5707_v15, %v5705_v50  ;;  %v12048_v24 = vpop.f32.mrb[83].mxu0  ;;  %v14279_v50 = vld [vmem:[#allocation25_spill] sm:$0xff] }
 0x53e   : > { %v5710_v0 = vmul.f32 %v8910_v47, %v11880_v21  ;;  %8919 = vrsqrt.f32 %v11995_v54  ;;  %v6626_v26 = vadd.f32 %v14276_v45, %v6450_v48  ;;  %v6466_v56 = vmax.f32 %v5708_v30, 1e-06  ;;  %14277 = vst [vmem:[#allocation21_spill] sm:$0xff] %v12048_v24  ;;  %v12057_v30 = vpop.f32.mrb[84].mxu1 }
 0x53f   : > { %v5579_v18 = vsel %vm5578_vm10, %v11878_v37, %v5577_v46  ;;  %v5584_v34 = vmul.f32 %v8912_v31, %v11882_v61  ;;  %v6627_v33 = vadd.f32 %v14276_v45, %v6451_v60  ;;  %v5700_v47 = vand.u32 2147483648, %v11963_v27  ;;  %14278 = vst [vmem:[#allocation63_spill] sm:$0xff] %v12057_v30  ;;  %v12062_v60 = vpop.f32.mrb[85].mxu1 }
 0x540   : > { %v5582_v15 = vsel %vm5580_vm11, %v5581_v2, %v5579_v18  ;;  %v5712_v11 = vsel %vm5711_vm12, %v11880_v21, %v5710_v0  ;;  %v8914_v48 = vpop.eup %8913  ;;  %8921 = vlog2.f32 %v6626_v26  ;;  %v6642_v46 = vadd.f32 %v14279_v50, %v6466_v56  ;;  %v12068_v30 = vpop.f32.mrb[86].mxu1 }
 0x541   : > { %v6448_v31 = vmax.f32 %v5582_v15, 1e-06  ;;  %v5715_v24 = vsel %vm5713_vm13, %v5714_v19, %v5712_v11  ;;  %v8916_v37 = vpop.eup %8915  ;;  %8923 = vlog2.f32 %v6627_v33  ;;  %v5586_v0 = vsel %vm5585_vm14, %v11882_v61, %v5584_v34  ;;  %v12074_v56 = vpop.f32.mrb[87].mxu1  ;;  %v14280_v15 = vld [vmem:[#allocation34_spill] sm:$0xff] }
 0x542   : > { %v6467_v2 = vmax.f32 %v5715_v24, 1e-06  ;;  %v5689_v18 = vmul.f32 %v8914_v48, %v11960_v29  ;;  %8925 = vlog2.f32 %v6642_v46  ;;  %v5589_v21 = vsel %vm5587_vm15, %v5588_v32, %v5586_v0  ;;  %v12082_v48 = vpop.f32.mrb[84].mxu0 }
 0x543   : > { %v6624_v26 = vadd.f32 %v14276_v45, %v6448_v31  ;;  %v5696_v19 = vmul.f32 %v8916_v37, %v11963_v27  ;;  %v6449_v33 = vmax.f32 %v5589_v21, 1e-06  ;;  %v5347_v11 = vmul.f32 %v14280_v15, %v14280_v15  ;;  %v14281_v31 = vld [vmem:[#allocation36_spill] sm:$0xff] }
 0x544   : > { %v6643_v24 = vadd.f32 %v14279_v50, %v6467_v2  ;;  %v5691_v34 = vsel %vm5690_vm0, %v11960_v29, %v5689_v18  ;;  %v8918_v46 = vpop.eup %8917  ;;  %v5329_v37 = vmul.f32 %v14281_v31, %v14281_v31  ;;  %v12091_v2 = vpop.f32.mrb[85].mxu0  ;;  %vm5816_vm4 = vcmp.eq.f32.partialorder %v11992_v13, inf }
 0x545   : > { %8927 = vlog2.f32 %v6624_v26  ;;  %v5694_v61 = vsel %vm5692_vm1, %v5693_v8, %v5691_v34  ;;  %v5698_v32 = vsel %vm5697_vm2, %v11963_v27, %v5696_v19  ;;  %v6625_v0 = vadd.f32 %v14276_v45, %v6449_v33  ;;  %v12096_v26 = vpop.f32.mrb[86].mxu0 }
 0x546   : > { %8929 = vlog2.f32 %v6643_v24  ;;  %v6464_v18 = vmax.f32 %v5694_v61, 1e-06  ;;  %v5701_v21 = vsel %vm5699_vm3, %v5700_v47, %v5698_v32  ;;  %v5815_v8 = vmul.f32 %v8918_v46, %v11992_v13  ;;  %v12101_v19 = vpop.f32.mrb[87].mxu0  ;;  %v12106_v47 = vpop.f32.mrb[88].mxu1 }
 0x547   : > { %v6465_v29 = vmax.f32 %v5701_v21, 1e-06  ;;  %8931 = vrsqrt.f32 %v11998_v20  ;;  %14282 = vst [vmem:[#allocation25_spill] sm:$0xff] %v12101_v19  ;;  %vm5818_vm5 = vcmp.eq.f32.partialorder %v11992_v13, 0.0  ;;  %v5819_v27 = vand.u32 2147483648, %v11992_v13  ;;  %14283 = vst [vmem:[#allocation34_spill] sm:$0xff] %v12106_v47 }
 0x548   : > { %v8920_v34 = vpop.eup %8919  ;;  %8933 = vlog2.f32 %v6625_v0  ;;  %v6640_v24 = vadd.f32 %v14279_v50, %v6464_v18  ;;  %v5817_v15 = vsel %vm5816_vm4, %v11992_v13, %v5815_v8  ;;  %v12112_v61 = vpop.f32.mrb[89].mxu1  ;;  %vm5823_vm6 = vcmp.eq.f32.partialorder %v11995_v54, inf  ;;  %v14289_v47 = vld [vmem:[#allocation8_spill] sm:$0xff] }
 0x549   : > { %v6641_v33 = vadd.f32 %v14279_v50, %v6465_v29  ;;  %v5822_v46 = vmul.f32 %v8920_v34, %v11995_v54  ;;  %8935 = vrsqrt.f32 %v12006_v43  ;;  %14284 = vst [vmem:[#allocation36_spill] sm:$0xff] %v12112_v61  ;;  %v5820_v32 = vsel %vm5818_vm5, %v5819_v27, %v5817_v15  ;;  %v12116_v0 = vpop.f32.mrb[90].mxu1  ;;  %v12126_v15 = vpop.f32.mrb[88].mxu0 }
 0x54a   : > { %8937 = vlog2.f32 %v6640_v24  ;;  %v5826_v31 = vand.u32 2147483648, %v11995_v54  ;;  %14285 = vst [vmem:[#allocation64_spill] sm:$0xff] %v12116_v0  ;;  %v8922_v18 = vpop.eup %8921  ;;  %v6482_v21 = vmax.f32 %v5820_v32, 1e-06  ;;  %vm5825_vm7 = vcmp.eq.f32.partialorder %v11995_v54, 0.0  ;;  %14286 = vst [vmem:[#allocation65_spill] sm:$0xff] %v12126_v15 }
 0x54b   : > { %8939 = vlog2.f32 %v6641_v33  ;;  %v5824_v29 = vsel %vm5823_vm6, %v11995_v54, %v5822_v46  ;;  %v8924_v13 = vpop.eup %8923  ;;  %v6761_v8 = vmul.f32 0.6931472, %v8922_v18  ;;  %v12121_v24 = vadd.f32 %v5347_v11, %v11821_v16  ;;  %v12128_v0 = vpop.f32.mrb[91].mxu1  ;;  %v14288_v46 = vld [vmem:[#allocation32_spill] sm:$0xff]  ;;  %v14290_v18 = vld [vmem:[#allocation26_spill] sm:$0xff] }
 0x54c   : > { %v5827_v34 = vsel %vm5825_vm7, %v5826_v31, %v5824_v29  ;;  %v12124_v27 = vadd.f32 %v5329_v37, %v11828_v17  ;;  %14287 = vst [vmem:[#allocation66_spill] sm:$0xff] %v12128_v0  ;;  %v8926_v33 = vpop.eup %8925  ;;  %v6763_v32 = vmul.f32 0.6931472, %v8924_v13  ;;  %v6658_v61 = vadd.f32 %v14288_v46, %v6482_v21  ;;  %v14291_v11 = vld [vmem:[#allocation28_spill] sm:$0xff]  ;;  %v14294_v0 = vld [vmem:[#allocation38_spill] sm:$0xff] }
 0x54d   : > { %v6483_v54 = vmax.f32 %v5827_v34, 1e-06  ;;  %v5344_v31 = vmul.f32 %v14289_v47, %v14289_v47  ;;  %v12135_v16 = vmul.f32 %v14290_v18, %v14290_v18  ;;  %v12139_v17 = vmul.f32 %v14291_v11, %v14291_v11  ;;  %7010 = vst [vmem:[%s11433_s17 + $0x30] sm:$0xff] %v6761_v8 }
 0x54e   : > { %v6793_v37 = vmul.f32 0.6931472, %v8926_v33  ;;  %8941 = vrsqrt.f32 %v12121_v24  ;;  %7011 = vst [vmem:[%s11433_s17 + $0x38] sm:$0xff] %v6763_v32  ;;  %vm5928_vm8 = vcmp.eq.f32.partialorder %v11998_v20, inf  ;;  %vm5930_vm9 = vcmp.eq.f32.partialorder %v11998_v20, 0.0  ;;  %v14292_v32 = vld [vmem:[#allocation9_spill] sm:$0xff] }
 0x54f   : > { %v8928_v29 = vpop.eup %8927  ;;  %8943 = vlog2.f32 %v6658_v61  ;;  %v6659_v21 = vadd.f32 %v14288_v46, %v6483_v54  ;;  %v5931_v34 = vand.u32 2147483648, %v11998_v20  ;;  %vm5802_vm10 = vcmp.eq.f32.partialorder %v12006_v43, inf }
 0x550   : > { %v8930_v47 = vpop.eup %8929  ;;  %7026 = vst [vmem:[%s11433_s17 + $0xb0] sm:$0xff] %v6793_v37  ;;  %v6757_v13 = vmul.f32 0.6931472, %v8928_v29  ;;  %8945 = vrsqrt.f32 %v12124_v27  ;;  %v12152_v61 = vadd.f32 %v5344_v31, %v11832_v36  ;;  %v5345_v54 = vmul.f32 %v14292_v32, %v14292_v32  ;;  %v14293_v37 = vld [vmem:[#allocation37_spill] sm:$0xff] }
 0x551   : > { %v8932_v8 = vpop.eup %8931  ;;  %v6795_v33 = vmul.f32 0.6931472, %v8930_v47  ;;  %8947 = vlog2.f32 %v6659_v21  ;;  %vm5804_vm11 = vcmp.eq.f32.partialorder %v12006_v43, 0.0  ;;  %v5362_v29 = vmul.f32 %v14293_v37, %v14293_v37 }
 0x552   : > { %v8934_v18 = vpop.eup %8933  ;;  %7008 = vst [vmem:[%s11433_s17 + $0x20] sm:$0xff] %v6757_v13  ;;  %v5927_v11 = vmul.f32 %v8932_v8, %v11998_v20  ;;  %v5363_v47 = vmul.f32 %v14294_v0, %v14294_v0  ;;  %v5805_v31 = vand.u32 2147483648, %v12006_v43  ;;  %vm5935_vm12 = vcmp.eq.f32.partialorder %v12121_v24, inf }
 0x553   : > { %v8936_v21 = vpop.eup %8935  ;;  %7027 = vst [vmem:[%s11433_s17 + $0xb8] sm:$0xff] %v6795_v33  ;;  %v6759_v36 = vmul.f32 0.6931472, %v8934_v18  ;;  %8949 = vrsqrt.f32 %v12152_v61  ;;  %vm5937_vm13 = vcmp.eq.f32.partialorder %v12121_v24, 0.0  ;;  %v12173_v0 = vadd.f32 %v5345_v54, %v11836_v10  ;;  %v12188_v54 = vpop.f32.mrb[89].mxu0 }
 0x554   : > { %v8938_v13 = vpop.eup %8937  ;;  %v5929_v8 = vsel %vm5928_vm8, %v11998_v20, %v5927_v11  ;;  %v5801_v32 = vmul.f32 %v8936_v21, %v12006_v43  ;;  %v12179_v15 = vadd.f32 %v5362_v29, %v11854_v59  ;;  %v12182_v19 = vadd.f32 %v5363_v47, %v11858_v41  ;;  %v12196_v41 = vpop.f32.mrb[90].mxu0 }
 0x555   : > { %v8940_v33 = vpop.eup %8939  ;;  %7009 = vst [vmem:[%s11433_s17 + $0x28] sm:$0xff] %v6759_v36  ;;  %v6789_v18 = vmul.f32 0.6931472, %v8938_v13  ;;  %v5932_v37 = vsel %vm5930_vm9, %v5931_v34, %v5929_v8  ;;  %8951 = vrsqrt.f32 %v12173_v0  ;;  %v5938_v59 = vand.u32 2147483648, %v12121_v24  ;;  %14295 = vst [vmem:[#allocation32_spill] sm:$0xff] %v12196_v41  ;;  %v14296_v36 = vld [vmem:[#allocation39_spill] sm:$0xff] }
 0x556   : > { %v6791_v11 = vmul.f32 0.6931472, %v8940_v33  ;;  %v6498_v21 = vmax.f32 %v5932_v37, 1e-06  ;;  %v5803_v10 = vsel %vm5802_vm10, %v12006_v43, %v5801_v32  ;;  %vm5809_vm14 = vcmp.eq.f32.partialorder %v12124_v27, inf  ;;  %v12209_v37 = vpop.f32.mrb[91].mxu0 }
 0x557   : > { %7024 = vst [vmem:[%s11433_s17 + $0xa0] sm:$0xff] %v6789_v18  ;;  %v5806_v20 = vsel %vm5804_vm11, %v5805_v31, %v5803_v10  ;;  %vm5811_vm15 = vcmp.eq.f32.partialorder %v12124_v27, 0.0  ;;  %8953 = vrsqrt.f32 %v12179_v15  ;;  %v5378_v13 = vmul.f32 %v14296_v36, %v14296_v36  ;;  %14297 = vst [vmem:[#allocation8_spill] sm:$0xff] %v12209_v37  ;;  %v14299_v41 = vld [vmem:[#allocation40_spill] sm:$0xff] }
 0x558   : > { %v8942_v34 = vpop.eup %8941  ;;  %7025 = vst [vmem:[%s11433_s17 + $0xa8] sm:$0xff] %v6791_v11  ;;  %v6674_v29 = vadd.f32 %v11581_v58, %v6498_v21  ;;  %v6480_v47 = vmax.f32 %v5806_v20, 1e-06  ;;  %v5812_v8 = vand.u32 2147483648, %v12124_v27  ;;  %vm5914_vm0 = vcmp.eq.f32.partialorder %v12152_v61, inf }
 0x559   : > { %v8944_v43 = vpop.eup %8943  ;;  %v5934_v31 = vmul.f32 %v8942_v34, %v12121_v24  ;;  %8955 = vrsqrt.f32 %v12182_v19  ;;  %vm5916_vm1 = vcmp.eq.f32.partialorder %v12152_v61, 0.0  ;;  %v5917_v20 = vand.u32 2147483648, %v12152_v61 }
 0x55a   : > { %v8946_v32 = vpop.eup %8945  ;;  %v6825_v33 = vmul.f32 0.6931472, %v8944_v43  ;;  %8957 = vlog2.f32 %v6674_v29  ;;  %v6656_v18 = vadd.f32 %v14288_v46, %v6480_v47  ;;  %vm5921_vm2 = vcmp.eq.f32.partialorder %v12173_v0, inf }
 0x55b   : > { %v8948_v11 = vpop.eup %8947  ;;  %v5936_v21 = vsel %vm5935_vm12, %v12121_v24, %v5934_v31  ;;  %v5808_v10 = vmul.f32 %v8946_v32, %v12124_v27  ;;  %v12221_v47 = vadd.f32 %v5378_v13, %v11889_v55  ;;  %v14298_v32 = vld [vmem:[#allocation10_spill] sm:$0xff]  ;;  %vm5923_vm3 = vcmp.eq.f32.partialorder %v12173_v0, 0.0 }
 0x55c   : > { %7042 = vst [vmem:[%s11433_s17 + $0x130] sm:$0xff] %v6825_v33  ;;  %v6827_v34 = vmul.f32 0.6931472, %v8948_v11  ;;  %8959 = vlog2.f32 %v6656_v18  ;;  %v5939_v29 = vsel %vm5937_vm13, %v5938_v59, %v5936_v21  ;;  %v5360_v37 = vmul.f32 %v14298_v32, %v14298_v32  ;;  %v12230_v11 = vpop.f32.mrb[92].mxu1 }
 0x55d   : > { %v8950_v36 = vpop.eup %8949  ;;  %v6499_v43 = vmax.f32 %v5939_v29, 1e-06  ;;  %v5810_v31 = vsel %vm5809_vm14, %v12124_v27, %v5808_v10  ;;  %v5379_v33 = vmul.f32 %v14299_v41, %v14299_v41  ;;  %8961 = vrsqrt.f32 %v12221_v47 }
 0x55e   : > { %7043 = vst [vmem:[%s11433_s17 + $0x138] sm:$0xff] %v6827_v34  ;;  %v5813_v24 = vsel %vm5811_vm15, %v5812_v8, %v5810_v31  ;;  %v5913_v55 = vmul.f32 %v8950_v36, %v12152_v61  ;;  %v5924_v18 = vand.u32 2147483648, %v12173_v0  ;;  %vm6040_vm4 = vcmp.eq.f32.partialorder %v12179_v15, inf  ;;  %v12255_v36 = vpop.f32.mrb[93].mxu1 }
 0x55f   : > { %v6675_v59 = vadd.f32 %v11581_v58, %v6499_v43  ;;  %v6481_v13 = vmax.f32 %v5813_v24, 1e-06  ;;  %v8952_v41 = vpop.eup %8951  ;;  %vm6042_vm5 = vcmp.eq.f32.partialorder %v12179_v15, 0.0  ;;  %v12246_v27 = vadd.f32 %v5360_v37, %v11893_v40  ;;  %v12260_v40 = vpop.f32.mrb[94].mxu1 }
 0x560   : > { %v5915_v21 = vsel %vm5914_vm0, %v12152_v61, %v5913_v55  ;;  %v12249_v8 = vadd.f32 %v5379_v33, %v11901_v6  ;;  %v5920_v29 = vmul.f32 %v8952_v41, %v12173_v0  ;;  %v6043_v32 = vand.u32 2147483648, %v12179_v15  ;;  %v12273_v41 = vpop.f32.mrb[92].mxu0 }
 0x561   : > { %8963 = vlog2.f32 %v6675_v59  ;;  %v6657_v10 = vadd.f32 %v14288_v46, %v6481_v13  ;;  %v5918_v34 = vsel %vm5916_vm1, %v5917_v20, %v5915_v21  ;;  %v8954_v43 = vpop.eup %8953  ;;  %vm6047_vm6 = vcmp.eq.f32.partialorder %v12182_v19, inf  ;;  %v14300_v20 = vld [vmem:[#allocation11_spill] sm:$0xff] }
 0x562   : > { %v6496_v31 = vmax.f32 %v5918_v34, 1e-06  ;;  %8965 = vrsqrt.f32 %v12246_v27  ;;  %v5922_v61 = vsel %vm5921_vm2, %v12173_v0, %v5920_v29  ;;  %v6039_v37 = vmul.f32 %v8954_v43, %v12179_v15 }
 0x563   : > { %v8956_v6 = vpop.eup %8955  ;;  %8967 = vlog2.f32 %v6657_v10  ;;  %v5361_v33 = vmul.f32 %v14300_v20, %v14300_v20  ;;  %v5925_v59 = vsel %vm5923_vm3, %v5924_v18, %v5922_v61  ;;  %v6050_v29 = vand.u32 2147483648, %v12182_v19 }
 0x564   : > { %v8958_v24 = vpop.eup %8957  ;;  %v6672_v55 = vadd.f32 %v11581_v58, %v6496_v31  ;;  %v6046_v13 = vmul.f32 %v8956_v6, %v12182_v19  ;;  %8969 = vrsqrt.f32 %v12249_v8  ;;  %v6497_v10 = vmax.f32 %v5925_v59, 1e-06 }
 0x565   : > { %v6857_v21 = vmul.f32 0.6931472, %v8958_v24  ;;  %v6041_v34 = vsel %vm6040_vm4, %v12179_v15, %v6039_v37  ;;  %vm6049_vm7 = vcmp.eq.f32.partialorder %v12182_v19, 0.0  ;;  %v14301_v24 = vld [vmem:[#allocation27_spill] sm:$0xff]  ;;  %v12292_v15 = vadd.f32 %v5361_v33, %v11905_v57 }
 0x566   : > { %v8960_v43 = vpop.eup %8959  ;;  %8971 = vlog2.f32 %v6672_v55  ;;  %v6044_v0 = vsel %vm6042_vm5, %v6043_v32, %v6041_v34  ;;  %v6048_v18 = vsel %vm6047_vm6, %v12182_v19, %v6046_v13  ;;  %v6673_v6 = vadd.f32 %v11581_v58, %v6497_v10  ;;  %v12296_v13 = vpop.f32.mrb[95].mxu1 }
 0x567   : > { %7058 = vst [vmem:[%s11433_s17 + $0x1b0] sm:$0xff] %v6857_v21  ;;  %v6821_v31 = vmul.f32 0.6931472, %v8960_v43  ;;  %v6514_v61 = vmax.f32 %v6044_v0, 1e-06  ;;  %v6051_v37 = vsel %vm6049_vm7, %v6050_v29, %v6048_v18  ;;  %v8962_v20 = vpop.eup %8961  ;;  %v12289_v59 = vmul.f32 %v14301_v24, %v14301_v24 }
 0x568   : > { %v6515_v55 = vmax.f32 %v6051_v37, 1e-06  ;;  %v5376_v32 = vmul.f32 %v11600_v28, %v11600_v28  ;;  %8973 = vlog2.f32 %v6673_v6  ;;  %v6151_v21 = vmul.f32 %v8962_v20, %v12221_v47 }
 0x569   : > { %7040 = vst [vmem:[%s11433_s17 + $0x120] sm:$0xff] %v6821_v31  ;;  %v6690_v19 = vadd.f32 %v11645_v44, %v6514_v61  ;;  %v5377_v10 = vmul.f32 %v11611_v3, %v11611_v3  ;;  %vm6152_vm8 = vcmp.eq.f32.partialorder %v12221_v47, inf  ;;  %v6155_v57 = vand.u32 2147483648, %v12221_v47  ;;  %v12315_v31 = vpop.f32.mrb[93].mxu0 }
 0x56a   : > { %v6691_v34 = vadd.f32 %v11645_v44, %v6515_v55  ;;  %8975 = vrsqrt.f32 %v12292_v15  ;;  %v6153_v33 = vsel %vm6152_vm8, %v12221_v47, %v6151_v21  ;;  %vm6154_vm9 = vcmp.eq.f32.partialorder %v12221_v47, 0.0 }
 0x56b   : > { %v8964_v28 = vpop.eup %8963  ;;  %8977 = vlog2.f32 %v6690_v19  ;;  %v12310_v29 = vadd.f32 %v5376_v32, %v11913_v9  ;;  %v6156_v0 = vsel %vm6154_vm9, %v6155_v57, %v6153_v33  ;;  %v12313_v18 = vadd.f32 %v5377_v10, %v11917_v38 }
 0x56c   : > { %v8966_v43 = vpop.eup %8965  ;;  %v6859_v3 = vmul.f32 0.6931472, %v8964_v28  ;;  %8979 = vlog2.f32 %v6691_v34  ;;  %v6530_v61 = vmax.f32 %v6156_v0, 1e-06  ;;  %vm6026_vm10 = vcmp.eq.f32.partialorder %v12246_v27, inf  ;;  %v12334_v28 = vpop.f32.mrb[94].mxu0 }
 0x56d   : > { %v8968_v6 = vpop.eup %8967  ;;  %v6025_v37 = vmul.f32 %v8966_v43, %v12246_v27  ;;  %8981 = vrsqrt.f32 %v12310_v29  ;;  %vm6028_vm11 = vcmp.eq.f32.partialorder %v12246_v27, 0.0  ;;  %v6029_v20 = vand.u32 2147483648, %v12246_v27 }
 0x56e   : > { %v8970_v9 = vpop.eup %8969  ;;  %7059 = vst [vmem:[%s11433_s17 + $0x1b8] sm:$0xff] %v6859_v3  ;;  %v6823_v47 = vmul.f32 0.6931472, %v8968_v6  ;;  %8983 = vrsqrt.f32 %v12313_v18  ;;  %v6706_v38 = vadd.f32 %v11676_v23, %v6530_v61  ;;  %vm6159_vm12 = vcmp.eq.f32.partialorder %v12249_v8, inf }
 0x56f   : > { %v6027_v24 = vsel %vm6026_vm10, %v12246_v27, %v6025_v37  ;;  %v6158_v55 = vmul.f32 %v8970_v9, %v12249_v8  ;;  %vm6161_vm13 = vcmp.eq.f32.partialorder %v12249_v8, 0.0  ;;  %v6162_v21 = vand.u32 2147483648, %v12249_v8  ;;  %v14302_v37 = vld [vmem:[#allocation41_spill] sm:$0xff] }
 0x570   : > { %v8972_v32 = vpop.eup %8971  ;;  %7041 = vst [vmem:[%s11433_s17 + $0x128] sm:$0xff] %v6823_v47  ;;  %v6030_v19 = vsel %vm6028_vm11, %v6029_v20, %v6027_v24  ;;  %v5394_v10 = vmul.f32 %v11624_v62, %v11624_v62  ;;  %8985 = vlog2.f32 %v6706_v38  ;;  %v5395_v3 = vmul.f32 %v11630_v4, %v11630_v4 }
 0x571   : > { %v6853_v34 = vmul.f32 0.6931472, %v8972_v32  ;;  %v6512_v57 = vmax.f32 %v6030_v19, 1e-06  ;;  %v6160_v27 = vsel %vm6159_vm12, %v12249_v8, %v6158_v55  ;;  %v5410_v0 = vmul.f32 %v11637_v35, %v11637_v35 }
 0x572   : > { %v6163_v33 = vsel %vm6161_vm13, %v6162_v21, %v6160_v27  ;;  %v12337_v43 = vadd.f32 %v5394_v10, %v11925_v51  ;;  %v8974_v6 = vpop.eup %8973  ;;  %v5392_v8 = vmul.f32 %v11654_v5, %v11654_v5  ;;  %v5411_v9 = vmul.f32 %v14302_v37, %v14302_v37  ;;  %v12365_v21 = vpop.f32.mrb[95].mxu0 }
 0x573   : > { %7056 = vst [vmem:[%s11433_s17 + $0x1a0] sm:$0xff] %v6853_v34  ;;  %v6688_v62 = vadd.f32 %v11645_v44, %v6512_v57  ;;  %v6531_v61 = vmax.f32 %v6163_v33, 1e-06  ;;  %v6855_v47 = vmul.f32 0.6931472, %v8974_v6  ;;  %vm6033_vm14 = vcmp.eq.f32.partialorder %v12292_v15, inf }
 0x574   : > { %v8976_v51 = vpop.eup %8975  ;;  %vm6035_vm15 = vcmp.eq.f32.partialorder %v12292_v15, 0.0  ;;  %8987 = vrsqrt.f32 %v12337_v43  ;;  %v6036_v5 = vand.u32 2147483648, %v12292_v15  ;;  %v12357_v55 = vadd.f32 %v5395_v3, %v11936_v1  ;;  %v12379_v33 = vpop.f32.mrb[96].mxu1 }
 0x575   : > { %v8978_v4 = vpop.eup %8977  ;;  %8989 = vlog2.f32 %v6688_v62  ;;  %v6707_v35 = vadd.f32 %v11676_v23, %v6531_v61  ;;  %v6032_v20 = vmul.f32 %v8976_v51, %v12292_v15  ;;  %7057 = vst [vmem:[%s11433_s17 + $0x1a8] sm:$0xff] %v6855_v47  ;;  %v12360_v32 = vadd.f32 %v5410_v0, %v12135_v16  ;;  %14303 = vst [vmem:[#allocation26_spill] sm:$0xff] %v12379_v33  ;;  %v12385_v6 = vpop.f32.mrb[97].mxu1 }
 0x576   : > { %v8980_v38 = vpop.eup %8979  ;;  %v6889_v24 = vmul.f32 0.6931472, %v8978_v4  ;;  %v12363_v19 = vadd.f32 %v5392_v8, %v12139_v17  ;;  %v12371_v27 = vadd.f32 %v5411_v9, %v12289_v59  ;;  %vm6138_vm0 = vcmp.eq.f32.partialorder %v12310_v29, inf  ;;  %14304 = vst [vmem:[#allocation28_spill] sm:$0xff] %v12385_v6  ;;  %v12394_v51 = vpop.f32.mrb[98].mxu1  ;;  %v14376_v6 = vld [vmem:[#allocation63_spill] sm:$0xff] }
 0x577   : > { %v8982_v10 = vpop.eup %8981  ;;  %v6891_v34 = vmul.f32 0.6931472, %v8980_v38  ;;  %8991 = vlog2.f32 %v6707_v35  ;;  %v6034_v57 = vsel %vm6033_vm14, %v12292_v15, %v6032_v20  ;;  %vm6140_vm1 = vcmp.eq.f32.partialorder %v12310_v29, 0.0  ;;  %14305 = vst [vmem:[#allocation9_spill] sm:$0xff] %v12394_v51  ;;  %v12397_v35 = vpop.f32.mrb[96].mxu0  ;;  %v14375_v51 = vld [vmem:[#allocation21_spill] sm:$0xff] }
 0x578   : > { %v8984_v1 = vpop.eup %8983  ;;  %7074 = vst [vmem:[%s11433_s17 + $0x230] sm:$0xff] %v6889_v24  ;;  %v6037_v16 = vsel %vm6035_vm15, %v6036_v5, %v6034_v57  ;;  %v6137_v17 = vmul.f32 %v8982_v10, %v12310_v29  ;;  %8993 = vrsqrt.f32 %v12357_v55  ;;  %v6141_v59 = vand.u32 2147483648, %v12310_v29  ;;  %14306 = vst [vmem:[#allocation37_spill] sm:$0xff] %v12397_v35  ;;  %v12399_v20 = vpop.f32.mrb[99].mxu1  ;;  %v14308_v5 = vld [vmem:[#allocation29_spill] sm:$0xff]  ;;  %v14309_v24 = vld [vmem:[#allocation30_spill] sm:$0xff] }
 0x579   : > { %7075 = vst [vmem:[%s11433_s17 + $0x238] sm:$0xff] %v6891_v34  ;;  %v6513_v3 = vmax.f32 %v6037_v16, 1e-06  ;;  %v6144_v0 = vmul.f32 %v8984_v1, %v12313_v18  ;;  %vm6145_vm2 = vcmp.eq.f32.partialorder %v12313_v18, inf  ;;  %v6148_v62 = vand.u32 2147483648, %v12313_v18  ;;  %14307 = vst [vmem:[#allocation38_spill] sm:$0xff] %v12399_v20 }
 0x57a   : > { %v6139_v15 = vsel %vm6138_vm0, %v12310_v29, %v6137_v17  ;;  %8995 = vrsqrt.f32 %v12360_v32  ;;  %v8986_v61 = vpop.eup %8985  ;;  %vm6147_vm3 = vcmp.eq.f32.partialorder %v12313_v18, 0.0  ;;  %v5265_v38 = vmul.f32 %v14308_v5, %v14308_v5  ;;  %v14311_v1 = vld [vmem:[#allocation31_spill] sm:$0xff] }
 0x57b   : > { %v6689_v8 = vadd.f32 %v11645_v44, %v6513_v3  ;;  %v6142_v37 = vsel %vm6140_vm1, %v6141_v59, %v6139_v15  ;;  %v6146_v9 = vsel %vm6145_vm2, %v12313_v18, %v6144_v0  ;;  %v6921_v47 = vmul.f32 0.6931472, %v8986_v61  ;;  %v12405_v18 = vpop.f32.mrb[97].mxu0  ;;  %v14315_v5 = vld [vmem:[#allocation43_spill] sm:$0xff] }
 0x57c   : > { %v6528_v4 = vmax.f32 %v6142_v37, 1e-06  ;;  %v6149_v29 = vsel %vm6147_vm3, %v6148_v62, %v6146_v9  ;;  %8997 = vrsqrt.f32 %v12363_v19  ;;  %v5280_v10 = vmul.f32 %v14309_v24, %v14309_v24  ;;  %14310 = vst [vmem:[#allocation39_spill] sm:$0xff] %v12405_v18  ;;  %v12413_v3 = vpop.f32.mrb[98].mxu0  ;;  %v14314_v9 = vld [vmem:[#allocation42_spill] sm:$0xff] }
 0x57d   : > { %8999 = vlog2.f32 %v6689_v8  ;;  %v6529_v34 = vmax.f32 %v6149_v29, 1e-06  ;;  %v5281_v16 = vmul.f32 %v14311_v1, %v14311_v1  ;;  %7090 = vst [vmem:[%s11433_s17 + $0x2b0] sm:$0xff] %v6921_v47  ;;  %vm6264_vm4 = vcmp.eq.f32.partialorder %v12337_v43, inf  ;;  %14312 = vst [vmem:[#allocation10_spill] sm:$0xff] %v12413_v3  ;;  %v12419_v61 = vpop.f32.mrb[99].mxu0 }
 0x57e   : > { %v8988_v57 = vpop.eup %8987  ;;  %v6704_v17 = vadd.f32 %v11676_v23, %v6528_v4  ;;  %9001 = vrsqrt.f32 %v12371_v27  ;;  %vm6266_vm5 = vcmp.eq.f32.partialorder %v12337_v43, 0.0  ;;  %v6267_v62 = vand.u32 2147483648, %v12337_v43  ;;  %14313 = vst [vmem:[#allocation40_spill] sm:$0xff] %v12419_v61 }
 0x57f   : > { %v8990_v59 = vpop.eup %8989  ;;  %v6705_v0 = vadd.f32 %v11676_v23, %v6529_v34  ;;  %v6263_v15 = vmul.f32 %v8988_v57, %v12337_v43  ;;  %v5393_v37 = vmul.f32 %v11664_v22, %v11664_v22  ;;  %v5408_v47 = vmul.f32 %v14314_v9, %v14314_v9  ;;  %v12429_v34 = vpop.f32.mrb[100].mxu1 }
 0x580   : > { %v6885_v8 = vmul.f32 0.6931472, %v8990_v59  ;;  %9003 = vlog2.f32 %v6704_v17  ;;  %vm6271_vm6 = vcmp.eq.f32.partialorder %v12357_v55, inf  ;;  %v5409_v24 = vmul.f32 %v14315_v5, %v14315_v5  ;;  %14316 = vst [vmem:[#allocation11_spill] sm:$0xff] %v12429_v34 }
 0x581   : > { %v8992_v4 = vpop.eup %8991  ;;  %9005 = vlog2.f32 %v6705_v0  ;;  %v6265_v29 = vsel %vm6264_vm4, %v12337_v43, %v6263_v15  ;;  %v12434_v17 = vadd.f32 %v5393_v37, %v5265_v38  ;;  %v12436_v59 = vadd.f32 %v5408_v47, %v5280_v10  ;;  %v12438_v0 = vpop.f32.mrb[101].mxu1 }
 0x582   : > { %v8994_v57 = vpop.eup %8993  ;;  %7072 = vst [vmem:[%s11433_s17 + $0x220] sm:$0xff] %v6885_v8  ;;  %v6923_v1 = vmul.f32 0.6931472, %v8992_v4  ;;  %v6268_v22 = vsel %vm6266_vm5, %v6267_v62, %v6265_v29  ;;  %14317 = vst [vmem:[#allocation27_spill] sm:$0xff] %v12438_v0  ;;  %vm6273_vm7 = vcmp.eq.f32.partialorder %v12357_v55, 0.0  ;;  %v12442_v5 = vadd.f32 %v5409_v24, %v5281_v16  ;;  %v12444_v34 = vpop.f32.mrb[102].mxu1 }
 0x583   : > { %v6546_v15 = vmax.f32 %v6268_v22, 1e-06  ;;  %v6270_v9 = vmul.f32 %v8994_v57, %v12357_v55  ;;  %14318 = vst [vmem:[#allocation41_spill] sm:$0xff] %v12444_v34  ;;  %v6274_v43 = vand.u32 2147483648, %v12357_v55  ;;  %vm6376_vm8 = vcmp.eq.f32.partialorder %v12360_v32, inf  ;;  %v12451_v38 = vpop.f32.mrb[100].mxu0 }
 0x584   : > { %v8996_v8 = vpop.eup %8995  ;;  %7091 = vst [vmem:[%s11433_s17 + $0x2b8] sm:$0xff] %v6923_v1  ;;  %vm6378_vm9 = vcmp.eq.f32.partialorder %v12360_v32, 0.0  ;;  %9007 = vrsqrt.f32 %v12434_v17  ;;  %14319 = vst [vmem:[#allocation29_spill] sm:$0xff] %v12451_v38  ;;  %v12453_v10 = vpop.f32.mrb[103].mxu1  ;;  %v6379_v24 = vand.u32 2147483648, %v12360_v32  ;;  %vm6250_vm10 = vcmp.eq.f32.partialorder %v12363_v19, inf }
 0x585   : > { %14320 = vst [vmem:[#allocation30_spill] sm:$0xff] %v12453_v10  ;;  %v6722_v62 = vadd.f32 %v11727_v39, %v6546_v15  ;;  %v6272_v16 = vsel %vm6271_vm6, %v12357_v55, %v6270_v9  ;;  %v6375_v37 = vmul.f32 %v8996_v8, %v12360_v32  ;;  %9009 = vrsqrt.f32 %v12436_v59  ;;  %v12461_v47 = vpop.f32.mrb[101].mxu0 }
 0x586   : > { %14321 = vst [vmem:[#allocation31_spill] sm:$0xff] %v12461_v47  ;;  %v8998_v4 = vpop.eup %8997  ;;  %v6275_v29 = vsel %vm6273_vm7, %v6274_v43, %v6272_v16  ;;  %vm6252_vm11 = vcmp.eq.f32.partialorder %v12363_v19, 0.0  ;;  %v12468_v57 = vpop.f32.mrb[102].mxu0  ;;  %v6253_v47 = vand.u32 2147483648, %v12363_v19  ;;  %vm6383_vm12 = vcmp.eq.f32.partialorder %v12371_v27, inf }
 0x587   : > { %14322 = vst [vmem:[#allocation42_spill] sm:$0xff] %v12468_v57  ;;  %v9000_v1 = vpop.eup %8999  ;;  %9011 = vlog2.f32 %v6722_v62  ;;  %v6547_v22 = vmax.f32 %v6275_v29, 1e-06  ;;  %v6377_v15 = vsel %vm6376_vm8, %v12360_v32, %v6375_v37  ;;  %v6249_v9 = vmul.f32 %v8998_v4, %v12363_v19  ;;  %v12474_v55 = vpop.f32.mrb[103].mxu0 }
 0x588   : > { %14323 = vst [vmem:[#allocation43_spill] sm:$0xff] %v12474_v55  ;;  %v9002_v8 = vpop.eup %9001  ;;  %v6887_v43 = vmul.f32 0.6931472, %v9000_v1  ;;  %v6380_v16 = vsel %vm6378_vm9, %v6379_v24, %v6377_v15  ;;  %9013 = vrsqrt.f32 %v12442_v5  ;;  %v12485_v57 = vpop.f32.mrb[104].mxu1  ;;  %v6386_v24 = vand.u32 2147483648, %v12371_v27 }
 0x589   : > { %v6723_v62 = vadd.f32 %v11727_v39, %v6547_v22  ;;  %v6562_v29 = vmax.f32 %v6380_v16, 1e-06  ;;  %v6251_v37 = vsel %vm6250_vm10, %v12363_v19, %v6249_v9  ;;  %v6382_v4 = vmul.f32 %v9002_v8, %v12371_v27  ;;  %14324 = vst [vmem:[#allocation67_spill] sm:$0xff] %v12485_v57  ;;  %v12492_v1 = vpop.f32.mrb[105].mxu1 }
 0x58a   : > { %v9004_v55 = vpop.eup %9003  ;;  %7073 = vst [vmem:[%s11433_s17 + $0x228] sm:$0xff] %v6887_v43  ;;  %v6254_v32 = vsel %vm6252_vm11, %v6253_v47, %v6251_v37  ;;  %14325 = vst [vmem:[#allocation68_spill] sm:$0xff] %v12492_v1  ;;  %v12495_v16 = vpop.f32.mrb[106].mxu1  ;;  %vm6385_vm13 = vcmp.eq.f32.partialorder %v12371_v27, 0.0  ;;  %vm6257_vm14 = vcmp.eq.f32.partialorder %v12434_v17, inf  ;;  %vm6259_vm15 = vcmp.eq.f32.partialorder %v12434_v17, 0.0 }
 0x58b   : > { %v9006_v22 = vpop.eup %9005  ;;  %v6917_v15 = vmul.f32 0.6931472, %v9004_v55  ;;  %9015 = vlog2.f32 %v6723_v62  ;;  %v6738_v9 = vadd.f32 %v11747_v52, %v6562_v29  ;;  %v6544_v8 = vmax.f32 %v6254_v32, 1e-06  ;;  %14326 = vst [vmem:[#allocation69_spill] sm:$0xff] %v12495_v16  ;;  %v12499_v47 = vpop.f32.mrb[104].mxu0 }
 0x58c   : > { %v6919_v43 = vmul.f32 0.6931472, %v9006_v22  ;;  %v6384_v19 = vsel %vm6383_vm12, %v12371_v27, %v6382_v4  ;;  %14327 = vst [vmem:[#allocation70_spill] sm:$0xff] %v12499_v47  ;;  %v12501_v37 = vpop.f32.mrb[107].mxu1  ;;  %v12505_v62 = vpop.f32.mrb[105].mxu0  ;;  %v14331_v4 = vld [vmem:[#allocation44_spill] sm:$0xff]  ;;  %v5335_v33 = vmul.f32 %v12062_v60, %v12062_v60 }
 0x58d   : > { %14328 = vst [vmem:[#allocation71_spill] sm:$0xff] %v12501_v37  ;;  %7088 = vst [vmem:[%s11433_s17 + $0x2a0] sm:$0xff] %v6917_v15  ;;  %9017 = vlog2.f32 %v6738_v9  ;;  %v6720_v55 = vadd.f32 %v11727_v39, %v6544_v8  ;;  %v6387_v1 = vsel %vm6385_vm13, %v6386_v24, %v6384_v19  ;;  %v12508_v16 = vpop.f32.mrb[106].mxu0  ;;  %v12514_v15 = vmul.f32 %v14331_v4, %v14331_v4 }
 0x58e   : > { %14329 = vst [vmem:[#allocation72_spill] sm:$0xff] %v12505_v62  ;;  %v9008_v29 = vpop.eup %9007  ;;  %7089 = vst [vmem:[%s11433_s17 + $0x2a8] sm:$0xff] %v6919_v43  ;;  %v6563_v32 = vmax.f32 %v6387_v1, 1e-06  ;;  %v12516_v9 = vpop.f32.mrb[107].mxu0  ;;  %v6260_v1 = vand.u32 2147483648, %v12434_v17 }
 0x58f   : > { %14330 = vst [vmem:[#allocation73_spill] sm:$0xff] %v12508_v16  ;;  %v9010_v22 = vpop.eup %9009  ;;  %9019 = vlog2.f32 %v6720_v55  ;;  %v6256_v27 = vmul.f32 %v9008_v29, %v12434_v17  ;;  %14332 = vst [vmem:[#allocation44_spill] sm:$0xff] %v12516_v9  ;;  %vm6362_vm0 = vcmp.eq.f32.partialorder %v12436_v59, inf  ;;  %vm6364_vm1 = vcmp.eq.f32.partialorder %v12436_v59, 0.0  ;;  %v12526_v29 = vpop.f32.mrb[108].mxu1 }
 0x590   : > { %v6739_v24 = vadd.f32 %v11747_v52, %v6563_v32  ;;  %v6361_v8 = vmul.f32 %v9010_v22, %v12436_v59  ;;  %v6365_v55 = vand.u32 2147483648, %v12436_v59  ;;  %14333 = vst [vmem:[#allocation74_spill] sm:$0xff] %v12526_v29  ;;  %v12529_v62 = vpop.f32.mrb[109].mxu1  ;;  %vm6369_vm2 = vcmp.eq.f32.partialorder %v12442_v5, inf  ;;  %v14351_v29 = vld [vmem:[#allocation59_spill] sm:$0xff] }
 0x591   : > { %v9012_v43 = vpop.eup %9011  ;;  %v6258_v19 = vsel %vm6257_vm14, %v12434_v17, %v6256_v27  ;;  %14334 = vst [vmem:[#allocation75_spill] sm:$0xff] %v12529_v62  ;;  %v12533_v27 = vpop.f32.mrb[110].mxu1  ;;  %vm6371_vm3 = vcmp.eq.f32.partialorder %v12442_v5, 0.0 }
 0x592   : > { %v9014_v4 = vpop.eup %9013  ;;  %v6953_v32 = vmul.f32 0.6931472, %v9012_v43  ;;  %9021 = vlog2.f32 %v6739_v24  ;;  %v6261_v9 = vsel %vm6259_vm15, %v6260_v1, %v6258_v19  ;;  %v6363_v16 = vsel %vm6362_vm0, %v12436_v59, %v6361_v8  ;;  %14335 = vst [vmem:[#allocation76_spill] sm:$0xff] %v12533_v27  ;;  %v12540_v59 = vpop.f32.mrb[108].mxu0 }
 0x593   : > { %v6545_v22 = vmax.f32 %v6261_v9, 1e-06  ;;  %v6366_v37 = vsel %vm6364_vm1, %v6365_v55, %v6363_v16  ;;  %v6368_v17 = vmul.f32 %v9014_v4, %v12442_v5  ;;  %v6372_v43 = vand.u32 2147483648, %v12442_v5  ;;  %14336 = vst [vmem:[#allocation77_spill] sm:$0xff] %v12540_v59  ;;  %v12542_v1 = vpop.f32.mrb[111].mxu1  ;;  %v12550_v55 = vpop.f32.mrb[109].mxu0 }
 0x594   : > { %7106 = vst [vmem:[%s11433_s17 + $0x330] sm:$0xff] %v6953_v32  ;;  %v6560_v47 = vmax.f32 %v6366_v37, 1e-06  ;;  %v5175_v24 = vmul.f32 %v11703_v25, %v11703_v25  ;;  %14337 = vst [vmem:[#allocation78_spill] sm:$0xff] %v12542_v1  ;;  %v5190_v37 = vmul.f32 %v11709_v14, %v11709_v14  ;;  %v5172_v19 = vmul.f32 %v11723_v49, %v11723_v49 }
 0x595   : > { %v9016_v16 = vpop.eup %9015  ;;  %v6721_v9 = vadd.f32 %v11727_v39, %v6545_v22  ;;  %v6370_v8 = vsel %vm6369_vm2, %v12442_v5, %v6368_v17  ;;  %14338 = vst [vmem:[#allocation79_spill] sm:$0xff] %v12550_v55  ;;  %v12555_v1 = vmul.f32 %v11716_v53, %v11716_v53  ;;  %v12557_v22 = vpop.f32.mrb[110].mxu0  ;;  %v12561_v14 = vmul.f32 %v11729_v42, %v11729_v42  ;;  %v14348_v55 = vld [vmem:[#allocation57_spill] sm:$0xff] }
 0x596   : > { %v6955_v4 = vmul.f32 0.6931472, %v9016_v16  ;;  %v6736_v25 = vadd.f32 %v11747_v52, %v6560_v47  ;;  %v6373_v32 = vsel %vm6371_vm3, %v6372_v43, %v6370_v8  ;;  %14339 = vst [vmem:[#allocation80_spill] sm:$0xff] %v12557_v22  ;;  %v12565_v49 = vmul.f32 %v11732_v63, %v11732_v63  ;;  %v12567_v47 = vpop.f32.mrb[111].mxu0  ;;  %v14341_v43 = vld [vmem:[#allocation47_spill] sm:$0xff]  ;;  %v14342_v8 = vld [vmem:[#allocation12_spill] sm:$0xff] }
 0x597   : > { %v9018_v59 = vpop.eup %9017  ;;  %9023 = vlog2.f32 %v6721_v9  ;;  %v6561_v5 = vmax.f32 %v6373_v32, 1e-06  ;;  %14340 = vst [vmem:[#allocation81_spill] sm:$0xff] %v12567_v47  ;;  %v12572_v53 = vmul.f32 %v11737_v7, %v11737_v7  ;;  %v12576_v16 = vmul.f32 %v14341_v43, %v14341_v43  ;;  %v14343_v32 = vld [vmem:[#allocation13_spill] sm:$0xff]  ;;  %v14346_v47 = vld [vmem:[#allocation48_spill] sm:$0xff]  ;;  %v14347_v22 = vld [vmem:[#allocation50_spill] sm:$0xff] }
 0x598   : > { %7107 = vst [vmem:[%s11433_s17 + $0x338] sm:$0xff] %v6955_v4  ;;  %v6985_v17 = vmul.f32 0.6931472, %v9018_v59  ;;  %9025 = vlog2.f32 %v6736_v25  ;;  %v12581_v63 = vmul.f32 %v14342_v8, %v14342_v8  ;;  %v12585_v59 = vmul.f32 %v14343_v32, %v14343_v32  ;;  %v14344_v4 = vld [vmem:[#allocation49_spill] sm:$0xff]  ;;  %v12591_v25 = vpop.f32.mrb[112].mxu1 }
 0x599   : > { %v9020_v9 = vpop.eup %9019  ;;  %v6737_v42 = vadd.f32 %v11747_v52, %v6561_v5  ;;  %v12589_v7 = vmul.f32 %v14344_v4, %v14344_v4  ;;  %14345 = vst [vmem:[#allocation47_spill] sm:$0xff] %v12591_v25  ;;  %v12596_v5 = vmul.f32 %v14346_v47, %v14346_v47  ;;  %v12600_v8 = vmul.f32 %v14347_v22, %v14347_v22  ;;  %v12604_v27 = vpop.f32.mrb[113].mxu1  ;;  %v14350_v4 = vld [vmem:[#allocation58_spill] sm:$0xff] }
 0x59a   : > { %7122 = vst [vmem:[%s11433_s17 + $0x3b0] sm:$0xff] %v6985_v17  ;;  %v6949_v43 = vmul.f32 0.6931472, %v9020_v9  ;;  %v5302_v32 = vmul.f32 %v14348_v55, %v14348_v55  ;;  %14349 = vst [vmem:[#allocation12_spill] sm:$0xff] %v12604_v27  ;;  %v5303_v62 = vmul.f32 %v14350_v4, %v14350_v4  ;;  %v5318_v17 = vmul.f32 %v14351_v29, %v14351_v29  ;;  %v14352_v9 = vld [vmem:[#allocation61_spill] sm:$0xff]  ;;  %v12612_v57 = vpop.f32.mrb[114].mxu1 }
 0x59b   : > { %9027 = vlog2.f32 %v6737_v42  ;;  %v5300_v47 = vmul.f32 %v14352_v9, %v14352_v9  ;;  %14353 = vst [vmem:[#allocation13_spill] sm:$0xff] %v12612_v57  ;;  %v14354_v22 = vld [vmem:[#allocation14_spill] sm:$0xff]  ;;  %v14355_v55 = vld [vmem:[#allocation51_spill] sm:$0xff]  ;;  %v12630_v9 = vpop.f32.mrb[112].mxu0  ;;  %v12632_v0 = vpop.f32.mrb[115].mxu1 }
 0x59c   : > { %v9022_v10 = vpop.eup %9021  ;;  %7104 = vst [vmem:[%s11433_s17 + $0x320] sm:$0xff] %v6949_v43  ;;  %v12617_v38 = vmul.f32 %v14354_v22, %v14354_v22  ;;  %v12621_v42 = vmul.f32 %v14355_v55, %v14355_v55  ;;  %v14356_v4 = vld [vmem:[#allocation15_spill] sm:$0xff]  ;;  %v12628_v29 = vadd.f32 %v5302_v32, %v12514_v15  ;;  %14357 = vst [vmem:[#allocation49_spill] sm:$0xff] %v12630_v9  ;;  %v12640_v55 = vpop.f32.mrb[113].mxu0  ;;  %v14361_v15 = vld [vmem:[#allocation62_spill] sm:$0xff] }
 0x59d   : > { %v12625_v34 = vmul.f32 %v14356_v4, %v14356_v4  ;;  %14358 = vst [vmem:[#allocation48_spill] sm:$0xff] %v12632_v0  ;;  %v6987_v43 = vmul.f32 0.6931472, %v9022_v10  ;;  %v12634_v61 = vadd.f32 %v5303_v62, %v5175_v24  ;;  %v12636_v22 = vadd.f32 %v5318_v17, %v5190_v37  ;;  %14359 = vst [vmem:[#allocation50_spill] sm:$0xff] %v12640_v55  ;;  %v14360_v4 = vld [vmem:[#allocation60_spill] sm:$0xff]  ;;  %v12649_v10 = vpop.f32.mrb[114].mxu0 }
 0x59e   : > { %v12638_v3 = vadd.f32 %v5300_v47, %v5172_v19  ;;  %9029 = vrsqrt.f32 %v12628_v29  ;;  %v5319_v57 = vmul.f32 %v14360_v4, %v14360_v4  ;;  %v5301_v32 = vmul.f32 %v14361_v15, %v14361_v15  ;;  %14362 = vst [vmem:[#allocation57_spill] sm:$0xff] %v12649_v10  ;;  %v14363_v62 = vld [vmem:[#allocation16_spill] sm:$0xff]  ;;  %v14364_v37 = vld [vmem:[#allocation17_spill] sm:$0xff]  ;;  %v14365_v17 = vld [vmem:[#allocation19_spill] sm:$0xff]  ;;  %v12665_v4 = vpop.f32.mrb[115].mxu0 }
 0x59f   : > { %v5316_v0 = vmul.f32 %v12041_v12, %v12041_v12  ;;  %7123 = vst [vmem:[%s11433_s17 + $0x3b8] sm:$0xff] %v6987_v43  ;;  %v12654_v24 = vmul.f32 %v14363_v62, %v14363_v62  ;;  %v12658_v19 = vmul.f32 %v14364_v37, %v14364_v37  ;;  %v12662_v47 = vmul.f32 %v14365_v17, %v14365_v17  ;;  %v14367_v12 = vld [vmem:[#allocation18_spill] sm:$0xff]  ;;  %v14368_v43 = vld [vmem:[#allocation20_spill] sm:$0xff]  ;;  %v14370_v55 = vld [vmem:[#allocation23_spill] sm:$0xff] }
 0x5a0   : > { %9031 = vrsqrt.f32 %v12634_v61  ;;  %14366 = vst [vmem:[#allocation58_spill] sm:$0xff] %v12665_v4  ;;  %v12669_v15 = vmul.f32 %v14367_v12, %v14367_v12  ;;  %v12673_v62 = vmul.f32 %v14368_v43, %v14368_v43  ;;  %v14369_v10 = vld [vmem:[#allocation22_spill] sm:$0xff]  ;;  %v12682_v9 = vmul.f32 %v14370_v55, %v14370_v55  ;;  %v14371_v4 = vld [vmem:[#allocation24_spill] sm:$0xff] }
 0x5a1   : > { %v12677_v37 = vmul.f32 %v14369_v10, %v14369_v10  ;;  %9033 = vrsqrt.f32 %v12636_v22  ;;  %v9024_v17 = vpop.eup %9023  ;;  %v12686_v27 = vmul.f32 %v14371_v4, %v14371_v4  ;;  %v14372_v12 = vld [vmem:[#allocation52_spill] sm:$0xff]  ;;  %v12693_v10 = vpop.f32.mrb[116].mxu1  ;;  %vm5620_vm4 = vcmp.eq.f32.partialorder %v12628_v29, inf }
 0x5a2   : > { %v12690_v43 = vmul.f32 %v14372_v12, %v14372_v12  ;;  %9035 = vrsqrt.f32 %v12638_v3  ;;  %14373 = vst [vmem:[#allocation59_spill] sm:$0xff] %v12693_v10  ;;  %v9026_v25 = vpop.eup %9025  ;;  %v6951_v18 = vmul.f32 0.6931472, %v9024_v17  ;;  %v12697_v55 = vadd.f32 %v5319_v57, %v12555_v1  ;;  %v12705_v12 = vpop.f32.mrb[117].mxu1 }
 0x5a3   : > { %v12700_v4 = vadd.f32 %v5301_v32, %v12561_v14  ;;  %v12703_v20 = vadd.f32 %v5316_v0, %v12565_v49  ;;  %14374 = vst [vmem:[#allocation61_spill] sm:$0xff] %v12705_v12  ;;  %v6981_v35 = vmul.f32 0.6931472, %v9026_v25  ;;  %v5317_v10 = vmul.f32 %v14375_v51, %v14375_v51  ;;  %v12713_v57 = vpop.f32.mrb[118].mxu1 }
 0x5a4   : > { %v5334_v17 = vmul.f32 %v14376_v6, %v14376_v6  ;;  %14377 = vst [vmem:[#allocation14_spill] sm:$0xff] %v12713_v57  ;;  %7105 = vst [vmem:[%s11433_s17 + $0x328] sm:$0xff] %v6951_v18  ;;  %vm5622_vm5 = vcmp.eq.f32.partialorder %v12628_v29, 0.0  ;;  %v5623_v0 = vand.u32 2147483648, %v12628_v29  ;;  %vm5627_vm6 = vcmp.eq.f32.partialorder %v12634_v61, inf  ;;  %v12728_v18 = vpop.f32.mrb[116].mxu0 }
 0x5a5   : > { %9037 = vrsqrt.f32 %v12697_v55  ;;  %v9028_v1 = vpop.eup %9027  ;;  %7120 = vst [vmem:[%s11433_s17 + $0x3a0] sm:$0xff] %v6981_v35  ;;  %vm5629_vm7 = vcmp.eq.f32.partialorder %v12634_v61, 0.0  ;;  %v5630_v6 = vand.u32 2147483648, %v12634_v61  ;;  %vm5732_vm8 = vcmp.eq.f32.partialorder %v12636_v22, inf  ;;  %14378 = vst [vmem:[#allocation51_spill] sm:$0xff] %v12728_v18  ;;  %v12745_v18 = vpop.f32.mrb[119].mxu1 }
 0x5a6   : > { %9039 = vrsqrt.f32 %v12700_v4  ;;  %v6983_v60 = vmul.f32 0.6931472, %v9028_v1  ;;  %vm5734_vm9 = vcmp.eq.f32.partialorder %v12636_v22, 0.0  ;;  %v5735_v51 = vand.u32 2147483648, %v12636_v22  ;;  %14379 = vst [vmem:[#allocation15_spill] sm:$0xff] %v12745_v18 }
 0x5a7   : > { %9041 = vrsqrt.f32 %v12703_v20  ;;  %vm5606_vm10 = vcmp.eq.f32.partialorder %v12638_v3, inf  ;;  %v12732_v35 = vadd.f32 %v5317_v10, %v12572_v53  ;;  %v12735_v14 = vadd.f32 %v5334_v17, %v12576_v16 }
 0x5a8   : > { %v12738_v49 = vadd.f32 %v5335_v33, %v12581_v63  ;;  %v9030_v25 = vpop.eup %9029  ;;  %7121 = vst [vmem:[%s11433_s17 + $0x3a8] sm:$0xff] %v6983_v60  ;;  %vm5608_vm11 = vcmp.eq.f32.partialorder %v12638_v3, 0.0  ;;  %v5609_v32 = vand.u32 2147483648, %v12638_v3  ;;  %vm5739_vm12 = vcmp.eq.f32.partialorder %v12697_v55, inf }
 0x5a9   : > { %v5742_v1 = vand.u32 2147483648, %v12697_v55  ;;  %v5619_v10 = vmul.f32 %v9030_v25, %v12628_v29  ;;  %vm5741_vm13 = vcmp.eq.f32.partialorder %v12697_v55, 0.0  ;;  %vm5613_vm14 = vcmp.eq.f32.partialorder %v12700_v4, inf }
 0x5aa   : > { %v9032_v53 = vpop.eup %9031  ;;  %v5616_v33 = vand.u32 2147483648, %v12700_v4  ;;  %9043 = vrsqrt.f32 %v12732_v35  ;;  %vm5615_vm15 = vcmp.eq.f32.partialorder %v12700_v4, 0.0  ;;  %vm5718_vm0 = vcmp.eq.f32.partialorder %v12703_v20, inf }
 0x5ab   : > { %v9034_v16 = vpop.eup %9033  ;;  %v5626_v63 = vmul.f32 %v9032_v53, %v12634_v61  ;;  %v5721_v17 = vand.u32 2147483648, %v12703_v20  ;;  %9045 = vrsqrt.f32 %v12735_v14  ;;  %v5350_v60 = vmul.f32 %v12068_v30, %v12068_v30 }
 0x5ac   : > { %v9036_v25 = vpop.eup %9035  ;;  %v5621_v18 = vsel %vm5620_vm4, %v12628_v29, %v5619_v10  ;;  %v5731_v57 = vmul.f32 %v9034_v16, %v12636_v22  ;;  %vm5720_vm1 = vcmp.eq.f32.partialorder %v12703_v20, 0.0  ;;  %v5332_v53 = vmul.f32 %v12082_v48, %v12082_v48  ;;  %v12775_v10 = vpop.f32.mrb[117].mxu0 }
 0x5ad   : > { %v5351_v12 = vmul.f32 %v12074_v56, %v12074_v56  ;;  %v5624_v52 = vsel %vm5622_vm5, %v5623_v0, %v5621_v18  ;;  %v5628_v30 = vsel %vm5627_vm6, %v12634_v61, %v5626_v63  ;;  %v5605_v39 = vmul.f32 %v9036_v25, %v12638_v3  ;;  %14380 = vst [vmem:[#allocation60_spill] sm:$0xff] %v12775_v10  ;;  %v12784_v0 = vpop.f32.mrb[118].mxu0 }
 0x5ae   : > { %9047 = vrsqrt.f32 %v12738_v49  ;;  %v6454_v16 = vmax.f32 %v5624_v52, 1e-06  ;;  %v5631_v48 = vsel %vm5629_vm7, %v5630_v6, %v5628_v30  ;;  %v5733_v56 = vsel %vm5732_vm8, %v12636_v22, %v5731_v57  ;;  %14381 = vst [vmem:[#allocation62_spill] sm:$0xff] %v12784_v0  ;;  %v12801_v10 = vpop.f32.mrb[119].mxu0 }
 0x5af   : > { %vm5725_vm2 = vcmp.eq.f32.partialorder %v12732_v35, inf  ;;  %v5728_v29 = vand.u32 2147483648, %v12732_v35  ;;  %v9038_v18 = vpop.eup %9037  ;;  %v6455_v63 = vmax.f32 %v5631_v48, 1e-06  ;;  %v5736_v25 = vsel %vm5734_vm9, %v5735_v51, %v5733_v56 }
 0x5b0   : > { %v5607_v52 = vsel %vm5606_vm10, %v12638_v3, %v5605_v39  ;;  %vm5727_vm3 = vcmp.eq.f32.partialorder %v12732_v35, 0.0  ;;  %vm5844_vm4 = vcmp.eq.f32.partialorder %v12735_v14, inf  ;;  %v9040_v61 = vpop.eup %9039  ;;  %v6630_v57 = vadd.f32 %v14276_v45, %v6454_v16 }
 0x5b1   : > { %v6470_v6 = vmax.f32 %v5736_v25, 1e-06  ;;  %v5610_v30 = vsel %vm5608_vm11, %v5609_v32, %v5607_v52  ;;  %v5738_v48 = vmul.f32 %v9038_v18, %v12697_v55  ;;  %vm5846_vm5 = vcmp.eq.f32.partialorder %v12735_v14, 0.0  ;;  %v9042_v22 = vpop.eup %9041  ;;  %v12814_v52 = vpop.f32.mrb[120].mxu1 }
 0x5b2   : > { %v6631_v51 = vadd.f32 %v14276_v45, %v6455_v63  ;;  %v6452_v56 = vmax.f32 %v5610_v30, 1e-06  ;;  %v5612_v39 = vmul.f32 %v9040_v61, %v12700_v4  ;;  %v5847_v0 = vand.u32 2147483648, %v12735_v14 }
 0x5b3   : > { %9049 = vlog2.f32 %v6630_v57  ;;  %v6646_v16 = vadd.f32 %v14279_v50, %v6470_v6  ;;  %v5740_v3 = vsel %vm5739_vm12, %v12697_v55, %v5738_v48  ;;  %v5717_v32 = vmul.f32 %v9042_v22, %v12703_v20 }
 0x5b4   : > { %9051 = vlog2.f32 %v6631_v51  ;;  %v6628_v18 = vadd.f32 %v14276_v45, %v6452_v56  ;;  %v5743_v63 = vsel %vm5741_vm13, %v5742_v1, %v5740_v3  ;;  %v5614_v25 = vsel %vm5613_vm14, %v12700_v4, %v5612_v39  ;;  %v9044_v61 = vpop.eup %9043  ;;  %v12824_v51 = vpop.f32.mrb[121].mxu1 }
 0x5b5   : > { %9053 = vlog2.f32 %v6646_v16  ;;  %v6471_v57 = vmax.f32 %v5743_v63, 1e-06  ;;  %v5617_v6 = vsel %vm5615_vm15, %v5616_v33, %v5614_v25  ;;  %v5719_v30 = vsel %vm5718_vm0, %v12703_v20, %v5717_v32  ;;  %v9046_v48 = vpop.eup %9045 }
 0x5b6   : > { %9055 = vlog2.f32 %v6628_v18  ;;  %v6453_v55 = vmax.f32 %v5617_v6, 1e-06  ;;  %v5722_v1 = vsel %vm5720_vm1, %v5721_v17, %v5719_v30  ;;  %v5724_v22 = vmul.f32 %v9044_v61, %v12732_v35  ;;  %v12841_v18 = vpop.f32.mrb[122].mxu1  ;;  %v12854_v61 = vpop.f32.mrb[120].mxu0 }
 0x5b7   : > { %v6647_v56 = vadd.f32 %v14279_v50, %v6471_v57  ;;  %v6468_v39 = vmax.f32 %v5722_v1, 1e-06  ;;  %v5843_v4 = vmul.f32 %v9046_v48, %v12735_v14  ;;  %v12829_v33 = vadd.f32 %v5350_v60, %v12585_v59  ;;  %v14382_v48 = vld [vmem:[#allocation53_spill] sm:$0xff] }
 0x5b8   : > { %v9048_v16 = vpop.eup %9047  ;;  %v6629_v3 = vadd.f32 %v14276_v45, %v6453_v55  ;;  %v5726_v20 = vsel %vm5725_vm2, %v12732_v35, %v5724_v22  ;;  %v12836_v17 = vadd.f32 %v5332_v53, %v12589_v7  ;;  %v12839_v32 = vadd.f32 %v5351_v12, %v12596_v5  ;;  %v12868_v22 = vpop.f32.mrb[123].mxu1 }
 0x5b9   : > { %9057 = vlog2.f32 %v6647_v56  ;;  %v6644_v63 = vadd.f32 %v14279_v50, %v6468_v39  ;;  %v5729_v59 = vsel %vm5727_vm3, %v5728_v29, %v5726_v20  ;;  %v5845_v60 = vsel %vm5844_vm4, %v12735_v14, %v5843_v4  ;;  %v14383_v39 = vld [vmem:[#allocation55_spill] sm:$0xff] }
 0x5ba   : > { %9059 = vlog2.f32 %v6629_v3  ;;  %v6469_v25 = vmax.f32 %v5729_v59, 1e-06  ;;  %v5848_v7 = vsel %vm5846_vm5, %v5847_v0, %v5845_v60  ;;  %v5850_v5 = vmul.f32 %v9048_v16, %v12738_v49  ;;  %v14384_v16 = vld [vmem:[#allocation54_spill] sm:$0xff] }
 0x5bb   : > { %9061 = vlog2.f32 %v6644_v63  ;;  %v6486_v12 = vmax.f32 %v5848_v7, 1e-06  ;;  %vm5851_vm6 = vcmp.eq.f32.partialorder %v12738_v49, inf  ;;  %v5854_v53 = vand.u32 2147483648, %v12738_v49  ;;  %v14385_v63 = vld [vmem:[#allocation56_spill] sm:$0xff] }
 0x5bc   : > { %v6645_v35 = vadd.f32 %v14279_v50, %v6469_v25  ;;  %v5852_v29 = vsel %vm5851_vm6, %v12738_v49, %v5850_v5  ;;  %vm5853_vm7 = vcmp.eq.f32.partialorder %v12738_v49, 0.0  ;;  %9063 = vrsqrt.f32 %v12829_v33 }
 0x5bd   : > { %v9050_v14 = vpop.eup %9049  ;;  %v6662_v0 = vadd.f32 %v14288_v46, %v6486_v12  ;;  %v5855_v57 = vsel %vm5853_vm7, %v5854_v53, %v5852_v29  ;;  %9065 = vrsqrt.f32 %v12836_v17  ;;  %v5333_v6 = vmul.f32 %v12091_v2, %v12091_v2  ;;  %v14386_v53 = vld [vmem:[#allocation25_spill] sm:$0xff]  ;;  %v14387_v29 = vld [vmem:[#allocation34_spill] sm:$0xff] }
 0x5be   : > { %v9052_v30 = vpop.eup %9051  ;;  %v12866_v55 = vmul.f32 %v14382_v48, %v14382_v48  ;;  %v6769_v1 = vmul.f32 0.6931472, %v9050_v14  ;;  %9067 = vlog2.f32 %v6645_v35  ;;  %v6487_v49 = vmax.f32 %v5855_v57, 1e-06 }
 0x5bf   : > { %v9054_v56 = vpop.eup %9053  ;;  %v12872_v4 = vmul.f32 %v14383_v39, %v14383_v39  ;;  %v12876_v2 = vmul.f32 %v14384_v16, %v14384_v16  ;;  %v6771_v3 = vmul.f32 0.6931472, %v9052_v30  ;;  %9069 = vlog2.f32 %v6662_v0  ;;  %v14388_v0 = vld [vmem:[#allocation36_spill] sm:$0xff] }
 0x5c0   : > { %v9056_v20 = vpop.eup %9055  ;;  %v12880_v59 = vmul.f32 %v14385_v63, %v14385_v63  ;;  %7014 = vst [vmem:[%s11433_s17 + $0x50] sm:$0xff] %v6769_v1  ;;  %v6801_v60 = vmul.f32 0.6931472, %v9054_v56  ;;  %v6663_v25 = vadd.f32 %v14288_v46, %v6487_v49  ;;  %9071 = vrsqrt.f32 %v12839_v32 }
 0x5c1   : > { %7015 = vst [vmem:[%s11433_s17 + $0x58] sm:$0xff] %v6771_v3  ;;  %v6765_v7 = vmul.f32 0.6931472, %v9056_v20  ;;  %vm5956_vm8 = vcmp.eq.f32.partialorder %v12829_v33, inf  ;;  %v12888_v5 = vadd.f32 %v5333_v6, %v12600_v8  ;;  %v5348_v12 = vmul.f32 %v12096_v26, %v12096_v26 }
 0x5c2   : > { %7030 = vst [vmem:[%s11433_s17 + $0xd0] sm:$0xff] %v6801_v60  ;;  %9073 = vlog2.f32 %v6663_v25  ;;  %v5349_v35 = vmul.f32 %v14386_v53, %v14386_v53  ;;  %v5366_v14 = vmul.f32 %v14387_v29, %v14387_v29  ;;  %v5367_v57 = vmul.f32 %v14388_v0, %v14388_v0  ;;  %v14389_v29 = vld [vmem:[#allocation64_spill] sm:$0xff]  ;;  %v14390_v0 = vld [vmem:[#allocation65_spill] sm:$0xff] }
 0x5c3   : > { %v9058_v30 = vpop.eup %9057  ;;  %7012 = vst [vmem:[%s11433_s17 + $0x40] sm:$0xff] %v6765_v7  ;;  %vm5958_vm9 = vcmp.eq.f32.partialorder %v12829_v33, 0.0  ;;  %v5959_v8 = vand.u32 2147483648, %v12829_v33  ;;  %vm5830_vm10 = vcmp.eq.f32.partialorder %v12836_v17, inf  ;;  %9075 = vrsqrt.f32 %v12888_v5 }
 0x5c4   : > { %v9060_v26 = vpop.eup %9059  ;;  %v6803_v6 = vmul.f32 0.6931472, %v9058_v30  ;;  %v12905_v48 = vadd.f32 %v5348_v12, %v12617_v38  ;;  %v12908_v1 = vadd.f32 %v5349_v35, %v12621_v42  ;;  %v12911_v49 = vadd.f32 %v5366_v14, %v12625_v34 }
 0x5c5   : > { %v9062_v56 = vpop.eup %9061  ;;  %v6767_v39 = vmul.f32 0.6931472, %v9060_v26  ;;  %vm5832_vm11 = vcmp.eq.f32.partialorder %v12836_v17, 0.0  ;;  %v5833_v16 = vand.u32 2147483648, %v12836_v17  ;;  %v12916_v3 = vadd.f32 %v5367_v57, %v12654_v24  ;;  %v12927_v24 = vpop.f32.mrb[121].mxu0 }
 0x5c6   : > { %v9064_v20 = vpop.eup %9063  ;;  %7031 = vst [vmem:[%s11433_s17 + $0xd8] sm:$0xff] %v6803_v6  ;;  %v6797_v38 = vmul.f32 0.6931472, %v9062_v56  ;;  %vm5963_vm12 = vcmp.eq.f32.partialorder %v12839_v32, inf  ;;  %vm5965_vm13 = vcmp.eq.f32.partialorder %v12839_v32, 0.0  ;;  %9077 = vrsqrt.f32 %v12905_v48 }
 0x5c7   : > { %v9066_v34 = vpop.eup %9065  ;;  %7013 = vst [vmem:[%s11433_s17 + $0x48] sm:$0xff] %v6767_v39  ;;  %v5955_v42 = vmul.f32 %v9064_v20, %v12829_v33  ;;  %v5966_v63 = vand.u32 2147483648, %v12839_v32  ;;  %vm5837_vm14 = vcmp.eq.f32.partialorder %v12888_v5, inf  ;;  %9079 = vrsqrt.f32 %v12908_v1 }
 0x5c8   : > { %v9068_v60 = vpop.eup %9067  ;;  %7028 = vst [vmem:[%s11433_s17 + $0xc0] sm:$0xff] %v6797_v38  ;;  %v5829_v25 = vmul.f32 %v9066_v34, %v12836_v17  ;;  %vm5839_vm15 = vcmp.eq.f32.partialorder %v12888_v5, 0.0  ;;  %v5840_v7 = vand.u32 2147483648, %v12888_v5  ;;  %9081 = vrsqrt.f32 %v12911_v49  ;;  %v12953_v34 = vpop.f32.mrb[122].mxu0 }
 0x5c9   : > { %v9070_v12 = vpop.eup %9069  ;;  %v6799_v53 = vmul.f32 0.6931472, %v9068_v60  ;;  %v5957_v35 = vsel %vm5956_vm8, %v12829_v33, %v5955_v42  ;;  %v5382_v14 = vmul.f32 %v14389_v29, %v14389_v29  ;;  %v5364_v57 = vmul.f32 %v14390_v0, %v14390_v0 }
 0x5ca   : > { %v9072_v30 = vpop.eup %9071  ;;  %v6833_v26 = vmul.f32 0.6931472, %v9070_v12  ;;  %v5960_v6 = vsel %vm5958_vm9, %v5959_v8, %v5957_v35  ;;  %v5831_v56 = vsel %vm5830_vm10, %v12836_v17, %v5829_v25  ;;  %vm5942_vm0 = vcmp.eq.f32.partialorder %v12905_v48, inf }
 0x5cb   : > { %7029 = vst [vmem:[%s11433_s17 + $0xc8] sm:$0xff] %v6799_v53  ;;  %v6502_v39 = vmax.f32 %v5960_v6, 1e-06  ;;  %v5834_v20 = vsel %vm5832_vm11, %v5833_v16, %v5831_v56  ;;  %v5962_v38 = vmul.f32 %v9072_v30, %v12839_v32  ;;  %vm5944_vm1 = vcmp.eq.f32.partialorder %v12905_v48, 0.0  ;;  %v12976_v6 = vpop.f32.mrb[123].mxu0 }
 0x5cc   : > { %9083 = vrsqrt.f32 %v12916_v3  ;;  %v9074_v33 = vpop.eup %9073  ;;  %7046 = vst [vmem:[%s11433_s17 + $0x150] sm:$0xff] %v6833_v26  ;;  %v6484_v8 = vmax.f32 %v5834_v20, 1e-06  ;;  %v5945_v42 = vand.u32 2147483648, %v12905_v48  ;;  %vm5949_vm2 = vcmp.eq.f32.partialorder %v12908_v1, inf }
 0x5cd   : > { %vm5951_vm3 = vcmp.eq.f32.partialorder %v12908_v1, 0.0  ;;  %v9076_v17 = vpop.eup %9075  ;;  %v6835_v16 = vmul.f32 0.6931472, %v9074_v33  ;;  %v6678_v60 = vadd.f32 %v11581_v58, %v6502_v39  ;;  %v5964_v25 = vsel %vm5963_vm12, %v12839_v32, %v5962_v38  ;;  %v12991_v33 = vpop.f32.mrb[124].mxu1 }
 0x5ce   : > { %v12964_v12 = vadd.f32 %v5382_v14, %v12658_v19  ;;  %v6660_v53 = vadd.f32 %v14288_v46, %v6484_v8  ;;  %v5967_v35 = vsel %vm5965_vm13, %v5966_v63, %v5964_v25  ;;  %v5836_v29 = vmul.f32 %v9076_v17, %v12888_v5  ;;  %v12998_v17 = vpop.f32.mrb[125].mxu1 }
 0x5cf   : > { %v12971_v0 = vadd.f32 %v5364_v57, %v12662_v47  ;;  %7047 = vst [vmem:[%s11433_s17 + $0x158] sm:$0xff] %v6835_v16  ;;  %9085 = vlog2.f32 %v6678_v60  ;;  %v6503_v30 = vmax.f32 %v5967_v35, 1e-06  ;;  %v5952_v26 = vand.u32 2147483648, %v12908_v1 }
 0x5d0   : > { %vm6068_vm4 = vcmp.eq.f32.partialorder %v12911_v49, inf  ;;  %v9078_v19 = vpop.eup %9077  ;;  %9087 = vlog2.f32 %v6660_v53  ;;  %v5838_v32 = vsel %vm5837_vm14, %v12888_v5, %v5836_v29  ;;  %vm6070_vm5 = vcmp.eq.f32.partialorder %v12911_v49, 0.0  ;;  %v14391_v53 = vld [vmem:[#allocation66_spill] sm:$0xff]  ;;  %v13008_v29 = vpop.f32.mrb[126].mxu1 }
 0x5d1   : > { %v6071_v47 = vand.u32 2147483648, %v12911_v49  ;;  %v9080_v63 = vpop.eup %9079  ;;  %v6679_v14 = vadd.f32 %v11581_v58, %v6503_v30  ;;  %v5841_v57 = vsel %vm5839_vm15, %v5840_v7, %v5838_v32  ;;  %v5941_v56 = vmul.f32 %v9078_v19, %v12905_v48 }
 0x5d2   : > { %9089 = vrsqrt.f32 %v12964_v12  ;;  %v9082_v39 = vpop.eup %9081  ;;  %v6485_v20 = vmax.f32 %v5841_v57, 1e-06  ;;  %v5948_v38 = vmul.f32 %v9080_v63, %v12908_v1  ;;  %vm6075_vm6 = vcmp.eq.f32.partialorder %v12916_v3, inf }
 0x5d3   : > { %9091 = vrsqrt.f32 %v12971_v0  ;;  %v5943_v5 = vsel %vm5942_vm0, %v12905_v48, %v5941_v56  ;;  %v6067_v7 = vmul.f32 %v9082_v39, %v12911_v49  ;;  %v6078_v8 = vand.u32 2147483648, %v12916_v3  ;;  %v13020_v56 = vpop.f32.mrb[124].mxu0 }
 0x5d4   : > { %9093 = vlog2.f32 %v6679_v14  ;;  %v6661_v16 = vadd.f32 %v14288_v46, %v6485_v20  ;;  %v5946_v60 = vsel %vm5944_vm1, %v5945_v42, %v5943_v5  ;;  %v5950_v25 = vsel %vm5949_vm2, %v12908_v1, %v5948_v38  ;;  %v14392_v5 = vld [vmem:[#allocation32_spill] sm:$0xff] }
 0x5d5   : > { %v5383_v35 = vmul.f32 %v14391_v53, %v14391_v53  ;;  %v6500_v19 = vmax.f32 %v5946_v60, 1e-06  ;;  %v5953_v32 = vsel %vm5951_vm3, %v5952_v26, %v5950_v25  ;;  %v6069_v63 = vsel %vm6068_vm4, %v12911_v49, %v6067_v7  ;;  %v13038_v7 = vpop.f32.mrb[127].mxu1  ;;  %v14393_v53 = vld [vmem:[#allocation8_spill] sm:$0xff] }
 0x5d6   : > { %v9084_v30 = vpop.eup %9083  ;;  %v5365_v48 = vmul.f32 %v12188_v54, %v12188_v54  ;;  %9095 = vlog2.f32 %v6661_v16  ;;  %v6501_v42 = vmax.f32 %v5953_v32, 1e-06  ;;  %v6072_v14 = vsel %vm6070_vm5, %v6071_v47, %v6069_v63 }
 0x5d7   : > { %v6074_v57 = vmul.f32 %v9084_v30, %v12916_v3  ;;  %v6676_v39 = vadd.f32 %v11581_v58, %v6500_v19  ;;  %v6518_v1 = vmax.f32 %v6072_v14, 1e-06  ;;  %v13024_v26 = vadd.f32 %v5383_v35, %v12669_v15 }
 0x5d8   : > { %v13027_v20 = vadd.f32 %v5365_v48, %v12673_v62  ;;  %v6677_v54 = vadd.f32 %v11581_v58, %v6501_v42  ;;  %vm6077_vm7 = vcmp.eq.f32.partialorder %v12916_v3, 0.0  ;;  %vm6180_vm8 = vcmp.eq.f32.partialorder %v12964_v12, inf  ;;  %v13049_v48 = vpop.f32.mrb[125].mxu0 }
 0x5d9   : > { %v6076_v49 = vsel %vm6075_vm6, %v12916_v3, %v6074_v57  ;;  %v9086_v47 = vpop.eup %9085  ;;  %9097 = vlog2.f32 %v6676_v39  ;;  %v6694_v38 = vadd.f32 %v11645_v44, %v6518_v1  ;;  %v5380_v62 = vmul.f32 %v14392_v5, %v14392_v5 }
 0x5da   : > { %v6079_v15 = vsel %vm6077_vm7, %v6078_v8, %v6076_v49  ;;  %v9088_v16 = vpop.eup %9087  ;;  %v6865_v60 = vmul.f32 0.6931472, %v9086_v47  ;;  %9099 = vlog2.f32 %v6677_v54  ;;  %v5381_v3 = vmul.f32 %v14393_v53, %v14393_v53 }
 0x5db   : > { %v6519_v25 = vmax.f32 %v6079_v15, 1e-06  ;;  %v6829_v30 = vmul.f32 0.6931472, %v9088_v16  ;;  %9101 = vlog2.f32 %v6694_v38  ;;  %vm6182_vm9 = vcmp.eq.f32.partialorder %v12964_v12, 0.0  ;;  %v14394_v15 = vld [vmem:[#allocation33_spill] sm:$0xff] }
 0x5dc   : > { %v9090_v35 = vpop.eup %9089  ;;  %v6183_v8 = vand.u32 2147483648, %v12964_v12  ;;  %7062 = vst [vmem:[%s11433_s17 + $0x1d0] sm:$0xff] %v6865_v60  ;;  %vm6054_vm10 = vcmp.eq.f32.partialorder %v12971_v0, inf  ;;  %9103 = vrsqrt.f32 %v13024_v26  ;;  %v6057_v57 = vand.u32 2147483648, %v12971_v0 }
 0x5dd   : > { %v9092_v19 = vpop.eup %9091  ;;  %v6695_v32 = vadd.f32 %v11645_v44, %v6519_v25  ;;  %v6179_v63 = vmul.f32 %v9090_v35, %v12964_v12  ;;  %7044 = vst [vmem:[%s11433_s17 + $0x140] sm:$0xff] %v6829_v30  ;;  %9105 = vrsqrt.f32 %v13027_v20  ;;  %v13056_v39 = vadd.f32 %v5380_v62, %v12677_v37 }
 0x5de   : > { %v9094_v42 = vpop.eup %9093  ;;  %v6053_v14 = vmul.f32 %v9092_v19, %v12971_v0  ;;  %v13062_v49 = vadd.f32 %v5381_v3, %v12682_v9  ;;  %vm6056_vm11 = vcmp.eq.f32.partialorder %v12971_v0, 0.0  ;;  %v13071_v5 = vmul.f32 %v14394_v15, %v14394_v15 }
 0x5df   : > { %v6867_v1 = vmul.f32 0.6931472, %v9094_v42  ;;  %9107 = vlog2.f32 %v6695_v32  ;;  %v6181_v54 = vsel %vm6180_vm8, %v12964_v12, %v6179_v63  ;;  %vm6187_vm12 = vcmp.eq.f32.partialorder %v13024_v26, inf }
 0x5e0   : > { %v6184_v47 = vsel %vm6182_vm9, %v6183_v8, %v6181_v54  ;;  %v6055_v38 = vsel %vm6054_vm10, %v12971_v0, %v6053_v14  ;;  %9109 = vrsqrt.f32 %v13056_v39  ;;  %v9096_v37 = vpop.eup %9095  ;;  %vm6189_vm13 = vcmp.eq.f32.partialorder %v13024_v26, 0.0  ;;  %v13077_v0 = vpop.f32.mrb[126].mxu0 }
 0x5e1   : > { %7063 = vst [vmem:[%s11433_s17 + $0x1d8] sm:$0xff] %v6867_v1  ;;  %v6534_v62 = vmax.f32 %v6184_v47, 1e-06  ;;  %v6058_v16 = vsel %vm6056_vm11, %v6057_v57, %v6055_v38  ;;  %v6831_v9 = vmul.f32 0.6931472, %v9096_v37  ;;  %9111 = vrsqrt.f32 %v13062_v49 }
 0x5e2   : > { %v6516_v12 = vmax.f32 %v6058_v16, 1e-06  ;;  %v6190_v25 = vand.u32 2147483648, %v13024_v26  ;;  %vm6061_vm14 = vcmp.eq.f32.partialorder %v13027_v20, inf  ;;  %v5398_v53 = vmul.f32 %v12230_v11, %v12230_v11 }
 0x5e3   : > { %v6710_v60 = vadd.f32 %v11676_v23, %v6534_v62  ;;  %v9098_v3 = vpop.eup %9097  ;;  %7045 = vst [vmem:[%s11433_s17 + $0x148] sm:$0xff] %v6831_v9  ;;  %vm6063_vm15 = vcmp.eq.f32.partialorder %v13027_v20, 0.0  ;;  %v5399_v30 = vmul.f32 %v12255_v36, %v12255_v36  ;;  %v5414_v8 = vmul.f32 %v12260_v40, %v12260_v40 }
 0x5e4   : > { %v6692_v35 = vadd.f32 %v11645_v44, %v6516_v12  ;;  %v9100_v19 = vpop.eup %9099  ;;  %v6861_v32 = vmul.f32 0.6931472, %v9098_v3  ;;  %v6064_v63 = vand.u32 2147483648, %v13027_v20  ;;  %v13093_v11 = vadd.f32 %v5398_v53, %v12686_v27  ;;  %v13105_v27 = vpop.f32.mrb[127].mxu0 }
 0x5e5   : > { %9113 = vlog2.f32 %v6710_v60  ;;  %v9102_v42 = vpop.eup %9101  ;;  %v6863_v14 = vmul.f32 0.6931472, %v9100_v19  ;;  %v13096_v57 = vadd.f32 %v5399_v30, %v12690_v43  ;;  %v13099_v36 = vadd.f32 %v5414_v8, %v12866_v55  ;;  %14395 = vst [vmem:[#allocation16_spill] sm:$0xff] %v13105_v27 }
 0x5e6   : > { %9115 = vlog2.f32 %v6692_v35  ;;  %v9104_v40 = vpop.eup %9103  ;;  %7060 = vst [vmem:[%s11433_s17 + $0x1c0] sm:$0xff] %v6861_v32  ;;  %v6897_v1 = vmul.f32 0.6931472, %v9102_v42  ;;  %vm6166_vm0 = vcmp.eq.f32.partialorder %v13056_v39, inf  ;;  %vm6168_vm1 = vcmp.eq.f32.partialorder %v13056_v39, 0.0 }
 0x5e7   : > { %9117 = vrsqrt.f32 %v13093_v11  ;;  %v9106_v54 = vpop.eup %9105  ;;  %7061 = vst [vmem:[%s11433_s17 + $0x1c8] sm:$0xff] %v6863_v14  ;;  %v6186_v43 = vmul.f32 %v9104_v40, %v13024_v26  ;;  %v5396_v55 = vmul.f32 %v12273_v41, %v12273_v41  ;;  %v5415_v47 = vmul.f32 %v12296_v13, %v12296_v13 }
 0x5e8   : > { %9119 = vrsqrt.f32 %v13096_v57  ;;  %7078 = vst [vmem:[%s11433_s17 + $0x250] sm:$0xff] %v6897_v1  ;;  %v6060_v37 = vmul.f32 %v9106_v54, %v13027_v20  ;;  %v6169_v15 = vand.u32 2147483648, %v13056_v39  ;;  %vm6173_vm2 = vcmp.eq.f32.partialorder %v13062_v49, inf }
 0x5e9   : > { %v9108_v38 = vpop.eup %9107  ;;  %9121 = vrsqrt.f32 %v13099_v36  ;;  %v6188_v41 = vsel %vm6187_vm12, %v13024_v26, %v6186_v43  ;;  %vm6175_vm3 = vcmp.eq.f32.partialorder %v13062_v49, 0.0  ;;  %v6176_v13 = vand.u32 2147483648, %v13062_v49 }
 0x5ea   : > { %v9110_v62 = vpop.eup %9109  ;;  %v6899_v16 = vmul.f32 0.6931472, %v9108_v38  ;;  %v6191_v9 = vsel %vm6189_vm13, %v6190_v25, %v6188_v41  ;;  %v6062_v12 = vsel %vm6061_vm14, %v13027_v20, %v6060_v37  ;;  %vm6292_vm4 = vcmp.eq.f32.partialorder %v13093_v11, inf }
 0x5eb   : > { %v6165_v60 = vmul.f32 %v9110_v62, %v13056_v39  ;;  %v6295_v53 = vand.u32 2147483648, %v13093_v11  ;;  %v9112_v3 = vpop.eup %9111  ;;  %v6535_v35 = vmax.f32 %v6191_v9, 1e-06  ;;  %v6065_v30 = vsel %vm6063_vm15, %v6064_v63, %v6062_v12 }
 0x5ec   : > { %7079 = vst [vmem:[%s11433_s17 + $0x258] sm:$0xff] %v6899_v16  ;;  %vm6294_vm5 = vcmp.eq.f32.partialorder %v13093_v11, 0.0  ;;  %v13137_v26 = vadd.f32 %v5396_v55, %v12872_v4  ;;  %v13140_v25 = vadd.f32 %v5415_v47, %v12876_v2  ;;  %v6517_v8 = vmax.f32 %v6065_v30, 1e-06 }
 0x5ed   : > { %v6167_v19 = vsel %vm6166_vm0, %v13056_v39, %v6165_v60  ;;  %v6172_v32 = vmul.f32 %v9112_v3, %v13062_v49  ;;  %vm6299_vm6 = vcmp.eq.f32.partialorder %v13096_v57, inf  ;;  %v6711_v20 = vadd.f32 %v11676_v23, %v6535_v35 }
 0x5ee   : > { %v6170_v63 = vsel %vm6168_vm1, %v6169_v15, %v6167_v19  ;;  %vm6301_vm7 = vcmp.eq.f32.partialorder %v13096_v57, 0.0  ;;  %9123 = vrsqrt.f32 %v13137_v26  ;;  %v6693_v2 = vadd.f32 %v11645_v44, %v6517_v8 }
 0x5ef   : > { %v9114_v4 = vpop.eup %9113  ;;  %v6532_v42 = vmax.f32 %v6170_v63, 1e-06  ;;  %v6174_v14 = vsel %vm6173_vm2, %v13062_v49, %v6172_v32  ;;  %v6302_v40 = vand.u32 2147483648, %v13096_v57  ;;  %9125 = vlog2.f32 %v6711_v20  ;;  %v14397_v63 = vld [vmem:[#allocation45_spill] sm:$0xff] }
 0x5f0   : > { %v9116_v1 = vpop.eup %9115  ;;  %v6929_v54 = vmul.f32 0.6931472, %v9114_v4  ;;  %v6177_v39 = vsel %vm6175_vm3, %v6176_v13, %v6174_v14  ;;  %v5397_v43 = vmul.f32 %v12315_v31, %v12315_v31  ;;  %9127 = vlog2.f32 %v6693_v2 }
 0x5f1   : > { %v9118_v55 = vpop.eup %9117  ;;  %v6893_v47 = vmul.f32 0.6931472, %v9116_v1  ;;  %v6708_v38 = vadd.f32 %v11676_v23, %v6532_v42  ;;  %v6533_v37 = vmax.f32 %v6177_v39, 1e-06  ;;  %vm6404_vm8 = vcmp.eq.f32.partialorder %v13099_v36, inf  ;;  %v14398_v1 = vld [vmem:[#allocation46_spill] sm:$0xff] }
 0x5f2   : > { %v9120_v15 = vpop.eup %9119  ;;  %7094 = vst [vmem:[%s11433_s17 + $0x2d0] sm:$0xff] %v6929_v54  ;;  %v6291_v62 = vmul.f32 %v9118_v55, %v13093_v11  ;;  %vm6406_vm9 = vcmp.eq.f32.partialorder %v13099_v36, 0.0  ;;  %9129 = vrsqrt.f32 %v13140_v25  ;;  %v6407_v41 = vand.u32 2147483648, %v13099_v36 }
 0x5f3   : > { %v9122_v49 = vpop.eup %9121  ;;  %7076 = vst [vmem:[%s11433_s17 + $0x240] sm:$0xff] %v6893_v47  ;;  %9131 = vlog2.f32 %v6708_v38  ;;  %v6709_v31 = vadd.f32 %v11676_v23, %v6533_v37  ;;  %v6298_v16 = vmul.f32 %v9120_v15, %v13096_v57  ;;  %v13176_v12 = vadd.f32 %v5397_v43, %v12880_v59 }
 0x5f4   : > { %v6293_v13 = vsel %vm6292_vm4, %v13093_v11, %v6291_v62  ;;  %v6403_v9 = vmul.f32 %v9122_v49, %v13099_v36  ;;  %v5412_v60 = vmul.f32 %v12334_v28, %v12334_v28  ;;  %v5413_v30 = vmul.f32 %v12365_v21, %v12365_v21  ;;  %v14396_v28 = vld [vmem:[#allocation35_spill] sm:$0xff] }
 0x5f5   : > { %9133 = vlog2.f32 %v6709_v31  ;;  %v6296_v3 = vsel %vm6294_vm5, %v6295_v53, %v6293_v13  ;;  %v6300_v35 = vsel %vm6299_vm6, %v13096_v57, %v6298_v16  ;;  %v5285_v11 = vmul.f32 %v14396_v28, %v14396_v28 }
 0x5f6   : > { %v6550_v8 = vmax.f32 %v6296_v3, 1e-06  ;;  %v6303_v19 = vsel %vm6301_vm7, %v6302_v40, %v6300_v35  ;;  %v6405_v59 = vsel %vm6404_vm8, %v13099_v36, %v6403_v9  ;;  %9135 = vrsqrt.f32 %v13176_v12 }
 0x5f7   : > { %v6551_v53 = vmax.f32 %v6303_v19, 1e-06  ;;  %v6408_v32 = vsel %vm6406_vm9, %v6407_v41, %v6405_v59  ;;  %v13199_v57 = vadd.f32 %v5412_v60, %v13071_v5  ;;  %v13203_v14 = vadd.f32 %v5413_v30, %v5285_v11 }
 0x5f8   : > { %v9124_v20 = vpop.eup %9123  ;;  %v6726_v21 = vadd.f32 %v14397_v63, %v6550_v8  ;;  %v6566_v4 = vmax.f32 %v6408_v32, 1e-06  ;;  %vm6278_vm10 = vcmp.eq.f32.partialorder %v13137_v26, inf  ;;  %v6281_v36 = vand.u32 2147483648, %v13137_v26 }
 0x5f9   : > { %v6727_v2 = vadd.f32 %v14397_v63, %v6551_v53  ;;  %v6277_v42 = vmul.f32 %v9124_v20, %v13137_v26  ;;  %v9126_v40 = vpop.eup %9125  ;;  %vm6280_vm11 = vcmp.eq.f32.partialorder %v13137_v26, 0.0  ;;  %vm6411_vm12 = vcmp.eq.f32.partialorder %v13140_v25, inf }
 0x5fa   : > { %9137 = vlog2.f32 %v6726_v21  ;;  %v6742_v54 = vadd.f32 %v14398_v1, %v6566_v4  ;;  %v9128_v39 = vpop.eup %9127  ;;  %v6931_v43 = vmul.f32 0.6931472, %v9126_v40  ;;  %v6414_v31 = vand.u32 2147483648, %v13140_v25 }
 0x5fb   : > { %9139 = vlog2.f32 %v6727_v2  ;;  %v6279_v5 = vsel %vm6278_vm10, %v13137_v26, %v6277_v42  ;;  %v6895_v47 = vmul.f32 0.6931472, %v9128_v39  ;;  %vm6413_vm13 = vcmp.eq.f32.partialorder %v13140_v25, 0.0  ;;  %v14399_v42 = vld [vmem:[#allocation26_spill] sm:$0xff] }
 0x5fc   : > { %v9130_v55 = vpop.eup %9129  ;;  %9141 = vlog2.f32 %v6742_v54  ;;  %v6282_v38 = vsel %vm6280_vm11, %v6281_v36, %v6279_v5  ;;  %7095 = vst [vmem:[%s11433_s17 + $0x2d8] sm:$0xff] %v6931_v43  ;;  %vm6285_vm14 = vcmp.eq.f32.partialorder %v13176_v12, inf  ;;  %v6288_v30 = vand.u32 2147483648, %v13176_v12 }
 0x5fd   : > { %v9132_v37 = vpop.eup %9131  ;;  %v6548_v15 = vmax.f32 %v6282_v38, 1e-06  ;;  %v6410_v62 = vmul.f32 %v9130_v55, %v13140_v25  ;;  %9143 = vrsqrt.f32 %v13199_v57  ;;  %7077 = vst [vmem:[%s11433_s17 + $0x248] sm:$0xff] %v6895_v47  ;;  %vm6287_vm15 = vcmp.eq.f32.partialorder %v13176_v12, 0.0  ;;  %v14400_v55 = vld [vmem:[#allocation28_spill] sm:$0xff]  ;;  %v14401_v38 = vld [vmem:[#allocation9_spill] sm:$0xff] }
 0x5fe   : > { %v6925_v49 = vmul.f32 0.6931472, %v9132_v37  ;;  %9145 = vrsqrt.f32 %v13203_v14  ;;  %vm6390_vm0 = vcmp.eq.f32.partialorder %v13199_v57, inf  ;;  %vm6392_vm1 = vcmp.eq.f32.partialorder %v13199_v57, 0.0 }
 0x5ff   : > { %v9134_v26 = vpop.eup %9133  ;;  %v6724_v16 = vadd.f32 %v14397_v63, %v6548_v15  ;;  %v6412_v41 = vsel %vm6411_vm12, %v13140_v25, %v6410_v62  ;;  %v6393_v36 = vand.u32 2147483648, %v13199_v57  ;;  %vm6397_vm2 = vcmp.eq.f32.partialorder %v13203_v14, inf  ;;  %v14402_v15 = vld [vmem:[#allocation37_spill] sm:$0xff] }
 0x600   : > { %v9136_v13 = vpop.eup %9135  ;;  %7092 = vst [vmem:[%s11433_s17 + $0x2c0] sm:$0xff] %v6925_v49  ;;  %v6927_v9 = vmul.f32 0.6931472, %v9134_v26  ;;  %v6415_v60 = vsel %vm6413_vm13, %v6414_v31, %v6412_v41  ;;  %vm6399_vm3 = vcmp.eq.f32.partialorder %v13203_v14, 0.0  ;;  %v6400_v43 = vand.u32 2147483648, %v13203_v14 }
 0x601   : > { %9147 = vlog2.f32 %v6724_v16  ;;  %v6567_v3 = vmax.f32 %v6415_v60, 1e-06  ;;  %v6284_v35 = vmul.f32 %v9136_v13, %v13176_v12  ;;  %v5179_v47 = vmul.f32 %v14400_v55, %v14400_v55  ;;  %v14403_v16 = vld [vmem:[#allocation38_spill] sm:$0xff]  ;;  %v14404_v13 = vld [vmem:[#allocation39_spill] sm:$0xff] }
 0x602   : > { %7093 = vst [vmem:[%s11433_s17 + $0x2c8] sm:$0xff] %v6927_v9  ;;  %v5194_v37 = vmul.f32 %v14401_v38, %v14401_v38  ;;  %v5176_v62 = vmul.f32 %v14402_v15, %v14402_v15  ;;  %v5195_v41 = vmul.f32 %v14403_v16, %v14403_v16  ;;  %v14412_v38 = vld [vmem:[#allocation48_spill] sm:$0xff] }
 0x603   : > { %v6743_v8 = vadd.f32 %v14398_v1, %v6567_v3  ;;  %v6286_v19 = vsel %vm6285_vm14, %v13176_v12, %v6284_v35  ;;  %v5178_v12 = vmul.f32 %v14399_v42, %v14399_v42  ;;  %v14405_v35 = vld [vmem:[#allocation47_spill] sm:$0xff]  ;;  %v5323_v15 = vmul.f32 %v14412_v38, %v14412_v38  ;;  %v14425_v38 = vld [vmem:[#allocation69_spill] sm:$0xff] }
 0x604   : > { %v9138_v25 = vpop.eup %9137  ;;  %v6289_v59 = vsel %vm6287_vm15, %v6288_v30, %v6286_v19  ;;  %v5306_v30 = vmul.f32 %v14405_v35, %v14405_v35  ;;  %v14406_v19 = vld [vmem:[#allocation12_spill] sm:$0xff] }
 0x605   : > { %v9140_v28 = vpop.eup %9139  ;;  %v6961_v11 = vmul.f32 0.6931472, %v9138_v25  ;;  %9149 = vlog2.f32 %v6743_v8  ;;  %v6549_v53 = vmax.f32 %v6289_v59, 1e-06  ;;  %v5307_v25 = vmul.f32 %v14406_v19, %v14406_v19  ;;  %v14407_v59 = vld [vmem:[#allocation13_spill] sm:$0xff]  ;;  %v14420_v19 = vld [vmem:[#allocation43_spill] sm:$0xff] }
 0x606   : > { %v9142_v32 = vpop.eup %9141  ;;  %v6963_v20 = vmul.f32 0.6931472, %v9140_v28  ;;  %v5322_v28 = vmul.f32 %v14407_v59, %v14407_v59  ;;  %v14421_v59 = vld [vmem:[#allocation67_spill] sm:$0xff] }
 0x607   : > { %v9144_v21 = vpop.eup %9143  ;;  %7110 = vst [vmem:[%s11433_s17 + $0x350] sm:$0xff] %v6961_v11  ;;  %v6993_v4 = vmul.f32 0.6931472, %v9142_v32  ;;  %v6725_v2 = vadd.f32 %v14397_v63, %v6549_v53  ;;  %v14409_v32 = vld [vmem:[#allocation10_spill] sm:$0xff] }
 0x608   : > { %v9146_v40 = vpop.eup %9145  ;;  %7111 = vst [vmem:[%s11433_s17 + $0x358] sm:$0xff] %v6963_v20  ;;  %v6389_v54 = vmul.f32 %v9144_v21, %v13199_v57  ;;  %v5192_v20 = vmul.f32 %v14409_v32, %v14409_v32  ;;  %v14410_v21 = vld [vmem:[#allocation40_spill] sm:$0xff]  ;;  %v13315_v32 = vadd.f32 %v5323_v15, %v5195_v41 }
 0x609   : > { %7126 = vst [vmem:[%s11433_s17 + $0x3d0] sm:$0xff] %v6993_v4  ;;  %9151 = vlog2.f32 %v6725_v2  ;;  %v6396_v39 = vmul.f32 %v9146_v40, %v13203_v14  ;;  %v5193_v4 = vmul.f32 %v14410_v21, %v14410_v21  ;;  %v13268_v2 = vadd.f32 %v5306_v30, %v5178_v12  ;;  %v14413_v12 = vld [vmem:[#allocation27_spill] sm:$0xff]  ;;  %v14419_v30 = vld [vmem:[#allocation42_spill] sm:$0xff] }
 0x60a   : > { %v6391_v5 = vsel %vm6390_vm0, %v13199_v57, %v6389_v54  ;;  %v5177_v57 = vmul.f32 %v14404_v13, %v14404_v13  ;;  %v13271_v54 = vadd.f32 %v5307_v25, %v5179_v47  ;;  %v14417_v13 = vld [vmem:[#allocation30_spill] sm:$0xff]  ;;  %v13303_v25 = vmul.f32 %v14420_v19, %v14420_v19  ;;  %v14429_v19 = vld [vmem:[#allocation51_spill] sm:$0xff] }
 0x60b   : > { %v9148_v49 = vpop.eup %9147  ;;  %v6394_v31 = vsel %vm6392_vm1, %v6393_v36, %v6391_v5  ;;  %v6398_v26 = vsel %vm6397_vm2, %v13203_v14, %v6396_v39  ;;  %v14408_v14 = vld [vmem:[#allocation49_spill] sm:$0xff]  ;;  %v13273_v36 = vadd.f32 %v5322_v28, %v5194_v37  ;;  %v14411_v5 = vld [vmem:[#allocation11_spill] sm:$0xff]  ;;  %v13307_v28 = vmul.f32 %v14421_v59, %v14421_v59 }
 0x60c   : > { %v6957_v9 = vmul.f32 0.6931472, %v9148_v49  ;;  %v6564_v60 = vmax.f32 %v6394_v31, 1e-06  ;;  %v6401_v3 = vsel %vm6399_vm3, %v6400_v43, %v6398_v26  ;;  %v5304_v11 = vmul.f32 %v14408_v14, %v14408_v14  ;;  %v14414_v31 = vld [vmem:[#allocation41_spill] sm:$0xff]  ;;  %v14415_v26 = vld [vmem:[#allocation50_spill] sm:$0xff] }
 0x60d   : > { %v6565_v8 = vmax.f32 %v6401_v3, 1e-06  ;;  %v5210_v55 = vmul.f32 %v14411_v5, %v14411_v5  ;;  %v5211_v49 = vmul.f32 %v14413_v12, %v14413_v12  ;;  %v5226_v47 = vmul.f32 %v14414_v31, %v14414_v31 }
 0x60e   : > { %7108 = vst [vmem:[%s11433_s17 + $0x340] sm:$0xff] %v6957_v9  ;;  %v6740_v53 = vadd.f32 %v14398_v1, %v6564_v60  ;;  %v13275_v39 = vadd.f32 %v5304_v11, %v5176_v62  ;;  %v5305_v37 = vmul.f32 %v14415_v26, %v14415_v26  ;;  %v14416_v62 = vld [vmem:[#allocation29_spill] sm:$0xff]  ;;  %v5227_v9 = vmul.f32 %v14417_v13, %v14417_v13  ;;  %v14418_v60 = vld [vmem:[#allocation31_spill] sm:$0xff]  ;;  %v14422_v11 = vld [vmem:[#allocation68_spill] sm:$0xff] }
 0x60f   : > { %v9150_v42 = vpop.eup %9149  ;;  %v6741_v40 = vadd.f32 %v14398_v1, %v6565_v8  ;;  %v5208_v16 = vmul.f32 %v14416_v62, %v14416_v62  ;;  %v13294_v3 = vmul.f32 %v14418_v60, %v14418_v60  ;;  %v13299_v8 = vmul.f32 %v14419_v30, %v14419_v30  ;;  %v14427_v13 = vld [vmem:[#allocation61_spill] sm:$0xff] }
 0x610   : > { %v6995_v43 = vmul.f32 0.6931472, %v9150_v42  ;;  %9153 = vlog2.f32 %v6740_v53  ;;  %v13312_v53 = vmul.f32 %v14422_v11, %v14422_v11  ;;  %v13318_v21 = vadd.f32 %v5305_v37, %v5177_v57  ;;  %v14423_v42 = vld [vmem:[#allocation57_spill] sm:$0xff]  ;;  %v14426_v37 = vld [vmem:[#allocation59_spill] sm:$0xff] }
 0x611   : > { %9155 = vlog2.f32 %v6741_v40  ;;  %v5320_v40 = vmul.f32 %v14423_v42, %v14423_v42  ;;  %v13327_v12 = vmul.f32 %v14425_v38, %v14425_v38  ;;  %vm5648_vm4 = vcmp.eq.f32.partialorder %v13268_v2, inf }
 0x612   : > { %7127 = vst [vmem:[%s11433_s17 + $0x3d8] sm:$0xff] %v6995_v43  ;;  %9157 = vrsqrt.f32 %v13268_v2  ;;  %v14424_v43 = vld [vmem:[#allocation58_spill] sm:$0xff]  ;;  %v5651_v41 = vand.u32 2147483648, %v13268_v2  ;;  %vm5650_vm5 = vcmp.eq.f32.partialorder %v13268_v2, 0.0  ;;  %vm5655_vm6 = vcmp.eq.f32.partialorder %v13271_v54, inf }
 0x613   : > { %v9152_v35 = vpop.eup %9151  ;;  %9159 = vrsqrt.f32 %v13271_v54  ;;  %v5321_v5 = vmul.f32 %v14424_v43, %v14424_v43  ;;  %v5658_v57 = vand.u32 2147483648, %v13271_v54  ;;  %v5763_v15 = vand.u32 2147483648, %v13273_v36 }
 0x614   : > { %v6959_v14 = vmul.f32 0.6931472, %v9152_v35  ;;  %9161 = vrsqrt.f32 %v13273_v36  ;;  %vm5657_vm7 = vcmp.eq.f32.partialorder %v13271_v54, 0.0  ;;  %vm5760_vm8 = vcmp.eq.f32.partialorder %v13273_v36, inf  ;;  %v14428_v35 = vld [vmem:[#allocation14_spill] sm:$0xff] }
 0x615   : > { %9163 = vrsqrt.f32 %v13275_v39  ;;  %v13339_v31 = vadd.f32 %v5320_v40, %v5192_v20  ;;  %v13341_v26 = vadd.f32 %v5321_v5, %v5193_v4  ;;  %v5338_v62 = vmul.f32 %v14426_v37, %v14426_v37  ;;  %v14430_v20 = vld [vmem:[#allocation15_spill] sm:$0xff] }
 0x616   : > { %7109 = vst [vmem:[%s11433_s17 + $0x348] sm:$0xff] %v6959_v14  ;;  %9165 = vrsqrt.f32 %v13315_v32  ;;  %v5339_v60 = vmul.f32 %v14427_v13, %v14427_v13  ;;  %vm5762_vm9 = vcmp.eq.f32.partialorder %v13273_v36, 0.0  ;;  %vm5634_vm10 = vcmp.eq.f32.partialorder %v13275_v39, inf }
 0x617   : > { %9167 = vrsqrt.f32 %v13318_v21  ;;  %v5354_v30 = vmul.f32 %v14428_v35, %v14428_v35  ;;  %v5336_v59 = vmul.f32 %v14429_v19, %v14429_v19  ;;  %v5355_v4 = vmul.f32 %v14430_v20, %v14430_v20 }
 0x618   : > { %vm5636_vm11 = vcmp.eq.f32.partialorder %v13275_v39, 0.0  ;;  %v5637_v11 = vand.u32 2147483648, %v13275_v39  ;;  %vm5767_vm12 = vcmp.eq.f32.partialorder %v13315_v32, inf  ;;  %9169 = vrsqrt.f32 %v13339_v31 }
 0x619   : > { %vm5769_vm13 = vcmp.eq.f32.partialorder %v13315_v32, 0.0  ;;  %v5770_v43 = vand.u32 2147483648, %v13315_v32  ;;  %9171 = vrsqrt.f32 %v13341_v26  ;;  %vm5641_vm14 = vcmp.eq.f32.partialorder %v13318_v21, inf }
 0x61a   : > { %v9154_v14 = vpop.eup %9153  ;;  %v13363_v37 = vadd.f32 %v5338_v62, %v5210_v55  ;;  %v13365_v13 = vadd.f32 %v5339_v60, %v5211_v49  ;;  %v13369_v20 = vadd.f32 %v5354_v30, %v5226_v47  ;;  %v13373_v1 = vadd.f32 %v5355_v4, %v5227_v9 }
 0x61b   : > { %v9156_v42 = vpop.eup %9155  ;;  %v6989_v40 = vmul.f32 0.6931472, %v9154_v14  ;;  %v13371_v14 = vadd.f32 %v5336_v59, %v5208_v16  ;;  %vm5643_vm15 = vcmp.eq.f32.partialorder %v13318_v21, 0.0  ;;  %v5644_v55 = vand.u32 2147483648, %v13318_v21 }
 0x61c   : > { %v9158_v5 = vpop.eup %9157  ;;  %v6991_v38 = vmul.f32 0.6931472, %v9156_v42  ;;  %9173 = vrsqrt.f32 %v13363_v37  ;;  %vm5746_vm0 = vcmp.eq.f32.partialorder %v13339_v31, inf  ;;  %v5749_v9 = vand.u32 2147483648, %v13339_v31 }
 0x61d   : > { %v9160_v35 = vpop.eup %9159  ;;  %7124 = vst [vmem:[%s11433_s17 + $0x3c0] sm:$0xff] %v6989_v40  ;;  %v5647_v19 = vmul.f32 %v9158_v5, %v13268_v2  ;;  %9175 = vrsqrt.f32 %v13365_v13  ;;  %vm5748_vm1 = vcmp.eq.f32.partialorder %v13339_v31, 0.0  ;;  %vm5753_vm2 = vcmp.eq.f32.partialorder %v13341_v26, inf }
 0x61e   : > { %v9162_v27 = vpop.eup %9161  ;;  %7125 = vst [vmem:[%s11433_s17 + $0x3c8] sm:$0xff] %v6991_v38  ;;  %v5654_v42 = vmul.f32 %v9160_v35, %v13271_v54  ;;  %vm5755_vm3 = vcmp.eq.f32.partialorder %v13341_v26, 0.0 }
 0x61f   : > { %v9164_v49 = vpop.eup %9163  ;;  %v5649_v47 = vsel %vm5648_vm4, %v13268_v2, %v5647_v19  ;;  %v5759_v16 = vmul.f32 %v9162_v27, %v13273_v36  ;;  %v5756_v27 = vand.u32 2147483648, %v13341_v26  ;;  %vm5872_vm4 = vcmp.eq.f32.partialorder %v13363_v37, inf }
 0x620   : > { %v9166_v62 = vpop.eup %9165  ;;  %v5652_v60 = vsel %vm5650_vm5, %v5651_v41, %v5649_v47  ;;  %v5656_v30 = vsel %vm5655_vm6, %v13271_v54, %v5654_v42  ;;  %v5633_v59 = vmul.f32 %v9164_v49, %v13275_v39  ;;  %vm5874_vm5 = vcmp.eq.f32.partialorder %v13363_v37, 0.0 }
 0x621   : > { %v9168_v4 = vpop.eup %9167  ;;  %v6458_v40 = vmax.f32 %v5652_v60, 1e-06  ;;  %v5659_v5 = vsel %vm5657_vm7, %v5658_v57, %v5656_v30  ;;  %v5761_v2 = vsel %vm5760_vm8, %v13273_v36, %v5759_v16  ;;  %v5766_v41 = vmul.f32 %v9166_v62, %v13315_v32 }
 0x622   : > { %v6459_v38 = vmax.f32 %v5659_v5, 1e-06  ;;  %v5764_v35 = vsel %vm5762_vm9, %v5763_v15, %v5761_v2  ;;  %v5635_v19 = vsel %vm5634_vm10, %v13275_v39, %v5633_v59  ;;  %v5640_v42 = vmul.f32 %v9168_v4, %v13318_v21  ;;  %v9170_v36 = vpop.eup %9169 }
 0x623   : > { %v6634_v54 = vadd.f32 %v14276_v45, %v6458_v40  ;;  %v6474_v57 = vmax.f32 %v5764_v35, 1e-06  ;;  %v5638_v49 = vsel %vm5636_vm11, %v5637_v11, %v5635_v19  ;;  %v5768_v47 = vsel %vm5767_vm12, %v13315_v32, %v5766_v41  ;;  %v9172_v30 = vpop.eup %9171 }
 0x624   : > { %v6635_v15 = vadd.f32 %v14276_v45, %v6459_v38  ;;  %v6456_v16 = vmax.f32 %v5638_v49, 1e-06  ;;  %v5771_v62 = vsel %vm5769_vm13, %v5770_v43, %v5768_v47  ;;  %v5642_v60 = vsel %vm5641_vm14, %v13318_v21, %v5640_v42 }
 0x625   : > { %9177 = vlog2.f32 %v6634_v54  ;;  %v6650_v39 = vadd.f32 %v14279_v50, %v6474_v57  ;;  %v6475_v11 = vmax.f32 %v5771_v62, 1e-06  ;;  %v5645_v59 = vsel %vm5643_vm15, %v5644_v55, %v5642_v60  ;;  %v14431_v62 = vld [vmem:[#allocation60_spill] sm:$0xff] }
 0x626   : > { %9179 = vlog2.f32 %v6635_v15  ;;  %v6632_v4 = vadd.f32 %v14276_v45, %v6456_v16  ;;  %v6457_v40 = vmax.f32 %v5645_v59, 1e-06  ;;  %v5745_v5 = vmul.f32 %v9170_v36, %v13339_v31  ;;  %v9174_v41 = vpop.eup %9173 }
 0x627   : > { %9181 = vlog2.f32 %v6650_v39  ;;  %v6651_v32 = vadd.f32 %v14279_v50, %v6475_v11  ;;  %v5752_v43 = vmul.f32 %v9172_v30, %v13341_v26  ;;  %v5875_v2 = vand.u32 2147483648, %v13363_v37  ;;  %v9176_v55 = vpop.eup %9175  ;;  %v14432_v30 = vld [vmem:[#allocation70_spill] sm:$0xff]  ;;  %v14433_v11 = vld [vmem:[#allocation71_spill] sm:$0xff] }
 0x628   : > { %9183 = vlog2.f32 %v6632_v4  ;;  %v6633_v38 = vadd.f32 %v14276_v45, %v6457_v40  ;;  %v5747_v21 = vsel %vm5746_vm0, %v13339_v31, %v5745_v5  ;;  %vm5879_vm6 = vcmp.eq.f32.partialorder %v13365_v13, inf  ;;  %v14434_v40 = vld [vmem:[#allocation72_spill] sm:$0xff] }
 0x629   : > { %9185 = vlog2.f32 %v6651_v32  ;;  %v5750_v35 = vsel %vm5748_vm1, %v5749_v9, %v5747_v21  ;;  %v5754_v19 = vsel %vm5753_vm2, %v13341_v26, %v5752_v43  ;;  %v5871_v42 = vmul.f32 %v9174_v41, %v13363_v37 }
 0x62a   : > { %9187 = vlog2.f32 %v6633_v38  ;;  %v6472_v54 = vmax.f32 %v5750_v35, 1e-06  ;;  %v5757_v45 = vsel %vm5755_vm3, %v5756_v27, %v5754_v19  ;;  %v5878_v57 = vmul.f32 %v9176_v55, %v13365_v13  ;;  %v14437_v35 = vld [vmem:[#allocation74_spill] sm:$0xff] }
 0x62b   : > { %v6473_v49 = vmax.f32 %v5757_v45, 1e-06  ;;  %v5873_v47 = vsel %vm5872_vm4, %v13363_v37, %v5871_v42  ;;  %v5882_v31 = vand.u32 2147483648, %v13365_v13  ;;  %9189 = vrsqrt.f32 %v13369_v20 }
 0x62c   : > { %v6648_v9 = vadd.f32 %v14279_v50, %v6472_v54  ;;  %v5876_v36 = vsel %vm5874_vm5, %v5875_v2, %v5873_v47  ;;  %v5880_v26 = vsel %vm5879_vm6, %v13365_v13, %v5878_v57  ;;  %vm5881_vm7 = vcmp.eq.f32.partialorder %v13365_v13, 0.0  ;;  %v14435_v13 = vld [vmem:[#allocation73_spill] sm:$0xff]  ;;  %v14436_v2 = vld [vmem:[#allocation44_spill] sm:$0xff] }
 0x62d   : > { %v6649_v27 = vadd.f32 %v14279_v50, %v6473_v49  ;;  %v6490_v15 = vmax.f32 %v5876_v36, 1e-06  ;;  %v5883_v16 = vsel %vm5881_vm7, %v5882_v31, %v5880_v26  ;;  %v5337_v60 = vmul.f32 %v14431_v62, %v14431_v62  ;;  %v14438_v49 = vld [vmem:[#allocation62_spill] sm:$0xff] }
 0x62e   : > { %v13462_v39 = vmul.f32 %v14432_v30, %v14432_v30  ;;  %v13466_v37 = vmul.f32 %v14433_v11, %v14433_v11  ;;  %9191 = vlog2.f32 %v6648_v9  ;;  %v6491_v59 = vmax.f32 %v5883_v16, 1e-06 }
 0x62f   : > { %v9178_v4 = vpop.eup %9177  ;;  %v13470_v50 = vmul.f32 %v14434_v40, %v14434_v40  ;;  %v13474_v5 = vmul.f32 %v14435_v13, %v14435_v13  ;;  %9193 = vlog2.f32 %v6649_v27  ;;  %v6666_v32 = vadd.f32 %v14288_v46, %v6490_v15 }
 0x630   : > { %v9180_v43 = vpop.eup %9179  ;;  %v13479_v41 = vmul.f32 %v14436_v2, %v14436_v2  ;;  %v6777_v38 = vmul.f32 0.6931472, %v9178_v4  ;;  %v6667_v21 = vadd.f32 %v14288_v46, %v6491_v59  ;;  %9195 = vrsqrt.f32 %v13371_v14 }
 0x631   : > { %v9182_v55 = vpop.eup %9181  ;;  %v13485_v19 = vmul.f32 %v14437_v35, %v14437_v35  ;;  %v6779_v42 = vmul.f32 0.6931472, %v9180_v43  ;;  %9197 = vlog2.f32 %v6666_v32  ;;  %v13488_v54 = vadd.f32 %v5337_v60, %v13294_v3 }
 0x632   : > { %v9184_v45 = vpop.eup %9183  ;;  %7018 = vst [vmem:[%s11433_s17 + $0x70] sm:$0xff] %v6777_v38  ;;  %v6809_v57 = vmul.f32 0.6931472, %v9182_v55  ;;  %9199 = vlog2.f32 %v6667_v21  ;;  %v5352_v47 = vmul.f32 %v14438_v49, %v14438_v49  ;;  %v5353_v31 = vmul.f32 %v12801_v10, %v12801_v10 }
 0x633   : > { %v9186_v9 = vpop.eup %9185  ;;  %7019 = vst [vmem:[%s11433_s17 + $0x78] sm:$0xff] %v6779_v42  ;;  %v6773_v36 = vmul.f32 0.6931472, %v9184_v45  ;;  %vm5984_vm8 = vcmp.eq.f32.partialorder %v13369_v20, inf  ;;  %vm5986_vm9 = vcmp.eq.f32.partialorder %v13369_v20, 0.0  ;;  %9201 = vrsqrt.f32 %v13373_v1 }
 0x634   : > { %v9188_v3 = vpop.eup %9187  ;;  %7034 = vst [vmem:[%s11433_s17 + $0xf0] sm:$0xff] %v6809_v57  ;;  %v6811_v26 = vmul.f32 0.6931472, %v9186_v9  ;;  %v5987_v27 = vand.u32 2147483648, %v13369_v20  ;;  %9203 = vrsqrt.f32 %v13488_v54  ;;  %v13503_v10 = vadd.f32 %v5352_v47, %v13299_v8 }
 0x635   : > { %v9190_v15 = vpop.eup %9189  ;;  %7016 = vst [vmem:[%s11433_s17 + $0x60] sm:$0xff] %v6773_v36  ;;  %v6775_v16 = vmul.f32 0.6931472, %v9188_v3  ;;  %v13507_v62 = vadd.f32 %v5353_v31, %v13303_v25  ;;  %v5370_v60 = vmul.f32 %v12814_v52, %v12814_v52  ;;  %v5371_v30 = vmul.f32 %v12824_v51, %v12824_v51 }
 0x636   : > { %7035 = vst [vmem:[%s11433_s17 + $0xf8] sm:$0xff] %v6811_v26  ;;  %v5983_v11 = vmul.f32 %v9190_v15, %v13369_v20  ;;  %vm5858_vm10 = vcmp.eq.f32.partialorder %v13371_v14, inf  ;;  %vm5860_vm11 = vcmp.eq.f32.partialorder %v13371_v14, 0.0  ;;  %9205 = vrsqrt.f32 %v13503_v10 }
 0x637   : > { %7017 = vst [vmem:[%s11433_s17 + $0x68] sm:$0xff] %v6775_v16  ;;  %v5861_v8 = vand.u32 2147483648, %v13371_v14  ;;  %vm5991_vm12 = vcmp.eq.f32.partialorder %v13373_v1, inf  ;;  %v5994_v25 = vand.u32 2147483648, %v13373_v1  ;;  %9207 = vrsqrt.f32 %v13507_v62 }
 0x638   : > { %v9192_v52 = vpop.eup %9191  ;;  %v5985_v51 = vsel %vm5984_vm8, %v13369_v20, %v5983_v11  ;;  %vm5993_vm13 = vcmp.eq.f32.partialorder %v13373_v1, 0.0  ;;  %vm5865_vm14 = vcmp.eq.f32.partialorder %v13488_v54, inf  ;;  %v13529_v59 = vadd.f32 %v5370_v60, %v13307_v28 }
 0x639   : > { %v13532_v4 = vadd.f32 %v5371_v30, %v13312_v53  ;;  %v9194_v40 = vpop.eup %9193  ;;  %v6805_v13 = vmul.f32 0.6931472, %v9192_v52  ;;  %v5988_v32 = vsel %vm5986_vm9, %v5987_v27, %v5985_v51  ;;  %vm5867_vm15 = vcmp.eq.f32.partialorder %v13488_v54, 0.0 }
 0x63a   : > { %v5868_v43 = vand.u32 2147483648, %v13488_v54  ;;  %v5386_v2 = vmul.f32 %v12841_v18, %v12841_v18  ;;  %v9196_v38 = vpop.eup %9195  ;;  %v6807_v21 = vmul.f32 0.6931472, %v9194_v40  ;;  %v6506_v28 = vmax.f32 %v5988_v32, 1e-06 }
 0x63b   : > { %vm5970_vm0 = vcmp.eq.f32.partialorder %v13503_v10, inf  ;;  %9209 = vrsqrt.f32 %v13529_v59  ;;  %v5368_v53 = vmul.f32 %v12854_v61, %v12854_v61  ;;  %v9198_v20 = vpop.eup %9197  ;;  %7032 = vst [vmem:[%s11433_s17 + $0xe0] sm:$0xff] %v6805_v13  ;;  %v5857_v55 = vmul.f32 %v9196_v38, %v13371_v14 }
 0x63c   : > { %vm5972_vm1 = vcmp.eq.f32.partialorder %v13503_v10, 0.0  ;;  %v5973_v35 = vand.u32 2147483648, %v13503_v10  ;;  %9211 = vrsqrt.f32 %v13532_v4  ;;  %v9200_v18 = vpop.eup %9199  ;;  %7033 = vst [vmem:[%s11433_s17 + $0xe8] sm:$0xff] %v6807_v21  ;;  %v6841_v42 = vmul.f32 0.6931472, %v9198_v20 }
 0x63d   : > { %v6682_v45 = vadd.f32 %v11581_v58, %v6506_v28  ;;  %vm5977_vm2 = vcmp.eq.f32.partialorder %v13507_v62, inf  ;;  %vm5979_vm3 = vcmp.eq.f32.partialorder %v13507_v62, 0.0  ;;  %v9202_v61 = vpop.eup %9201  ;;  %v6843_v57 = vmul.f32 0.6931472, %v9200_v18 }
 0x63e   : > { %v5859_v49 = vsel %vm5858_vm10, %v13371_v14, %v5857_v55  ;;  %v5980_v47 = vand.u32 2147483648, %v13507_v62  ;;  %v13558_v31 = vadd.f32 %v5386_v2, %v13327_v12  ;;  %v9204_v9 = vpop.eup %9203  ;;  %7050 = vst [vmem:[%s11433_s17 + $0x170] sm:$0xff] %v6841_v42  ;;  %v5990_v3 = vmul.f32 %v9202_v61, %v13373_v1 }
 0x63f   : > { %9213 = vlog2.f32 %v6682_v45  ;;  %v5862_v36 = vsel %vm5860_vm11, %v5861_v8, %v5859_v49  ;;  %vm6096_vm4 = vcmp.eq.f32.partialorder %v13529_v59, inf  ;;  %v13566_v26 = vadd.f32 %v5368_v53, %v13462_v39  ;;  %7051 = vst [vmem:[%s11433_s17 + $0x178] sm:$0xff] %v6843_v57 }
 0x640   : > { %v6488_v27 = vmax.f32 %v5862_v36, 1e-06  ;;  %v5864_v15 = vmul.f32 %v9204_v9, %v13488_v54  ;;  %vm6098_vm5 = vcmp.eq.f32.partialorder %v13529_v59, 0.0  ;;  %v6099_v12 = vand.u32 2147483648, %v13529_v59  ;;  %v9206_v16 = vpop.eup %9205 }
 0x641   : > { %9215 = vrsqrt.f32 %v13558_v31  ;;  %v5992_v14 = vsel %vm5991_vm12, %v13373_v1, %v5990_v3  ;;  %vm6103_vm6 = vcmp.eq.f32.partialorder %v13532_v4, inf  ;;  %vm6105_vm7 = vcmp.eq.f32.partialorder %v13532_v4, 0.0  ;;  %v9208_v39 = vpop.eup %9207 }
 0x642   : > { %9217 = vrsqrt.f32 %v13566_v26  ;;  %v6664_v60 = vadd.f32 %v14288_v46, %v6488_v27  ;;  %v5995_v30 = vsel %vm5993_vm13, %v5994_v25, %v5992_v14  ;;  %v5866_v11 = vsel %vm5865_vm14, %v13488_v54, %v5864_v15 }
 0x643   : > { %v5969_v8 = vmul.f32 %v9206_v16, %v13503_v10  ;;  %v6507_v52 = vmax.f32 %v5995_v30, 1e-06  ;;  %v5869_v51 = vsel %vm5867_vm15, %v5868_v43, %v5866_v11  ;;  %v5976_v40 = vmul.f32 %v9208_v39, %v13507_v62 }
 0x644   : > { %v6106_v13 = vand.u32 2147483648, %v13532_v4  ;;  %9219 = vlog2.f32 %v6664_v60  ;;  %v6489_v32 = vmax.f32 %v5869_v51, 1e-06  ;;  %vm6208_vm8 = vcmp.eq.f32.partialorder %v13558_v31, inf  ;;  %v14439_v51 = vld [vmem:[#allocation75_spill] sm:$0xff] }
 0x645   : > { %v5971_v1 = vsel %vm5970_vm0, %v13503_v10, %v5969_v8  ;;  %v9210_v25 = vpop.eup %9209  ;;  %v6683_v2 = vadd.f32 %v11581_v58, %v6507_v52  ;;  %v5978_v54 = vsel %vm5977_vm2, %v13507_v62, %v5976_v40  ;;  %vm6210_vm9 = vcmp.eq.f32.partialorder %v13558_v31, 0.0 }
 0x646   : > { %v5974_v38 = vsel %vm5972_vm1, %v5973_v35, %v5971_v1  ;;  %v6211_v43 = vand.u32 2147483648, %v13558_v31  ;;  %v9212_v21 = vpop.eup %9211  ;;  %v6665_v28 = vadd.f32 %v14288_v46, %v6489_v32  ;;  %v5981_v20 = vsel %vm5979_vm3, %v5980_v47, %v5978_v54  ;;  %v14441_v1 = vld [vmem:[#allocation77_spill] sm:$0xff] }
 0x647   : > { %v6504_v53 = vmax.f32 %v5974_v38, 1e-06  ;;  %v6095_v55 = vmul.f32 %v9210_v25, %v13529_v59  ;;  %9221 = vlog2.f32 %v6683_v2  ;;  %v6505_v10 = vmax.f32 %v5981_v20, 1e-06 }
 0x648   : > { %v6102_v35 = vmul.f32 %v9212_v21, %v13532_v4  ;;  %v5387_v18 = vmul.f32 %v12868_v22, %v12868_v22  ;;  %9223 = vlog2.f32 %v6665_v28  ;;  %v5369_v62 = vmul.f32 %v12927_v24, %v12927_v24 }
 0x649   : > { %v6680_v42 = vadd.f32 %v11581_v58, %v6504_v53  ;;  %v6097_v46 = vsel %vm6096_vm4, %v13529_v59, %v6095_v55  ;;  %v9214_v45 = vpop.eup %9213  ;;  %v6681_v61 = vadd.f32 %v11581_v58, %v6505_v10  ;;  %vm6082_vm10 = vcmp.eq.f32.partialorder %v13566_v26, inf  ;;  %v14442_v53 = vld [vmem:[#allocation78_spill] sm:$0xff]  ;;  %v14443_v55 = vld [vmem:[#allocation79_spill] sm:$0xff] }
 0x64a   : > { %v6100_v57 = vsel %vm6098_vm5, %v6099_v12, %v6097_v46  ;;  %v6104_v22 = vsel %vm6103_vm6, %v13532_v4, %v6102_v35  ;;  %v13622_v49 = vadd.f32 %v5387_v18, %v13466_v37  ;;  %v6873_v9 = vmul.f32 0.6931472, %v9214_v45  ;;  %v14444_v35 = vld [vmem:[#allocation80_spill] sm:$0xff]  ;;  %v14445_v46 = vld [vmem:[#allocation81_spill] sm:$0xff] }
 0x64b   : > { %v9216_v47 = vpop.eup %9215  ;;  %9225 = vlog2.f32 %v6680_v42  ;;  %v6522_v36 = vmax.f32 %v6100_v57, 1e-06  ;;  %v6107_v24 = vsel %vm6105_vm7, %v6106_v13, %v6104_v22  ;;  %vm6084_vm11 = vcmp.eq.f32.partialorder %v13566_v26, 0.0 }
 0x64c   : > { %v9218_v3 = vpop.eup %9217  ;;  %9227 = vlog2.f32 %v6681_v61  ;;  %v6523_v58 = vmax.f32 %v6107_v24, 1e-06  ;;  %v6207_v59 = vmul.f32 %v9216_v47, %v13558_v31  ;;  %7066 = vst [vmem:[%s11433_s17 + $0x1f0] sm:$0xff] %v6873_v9  ;;  %v6085_v12 = vand.u32 2147483648, %v13566_v26 }
 0x64d   : > { %v6698_v27 = vadd.f32 %v11645_v44, %v6522_v36  ;;  %v6081_v37 = vmul.f32 %v9218_v3, %v13566_v26  ;;  %9229 = vrsqrt.f32 %v13622_v49  ;;  %v13639_v16 = vadd.f32 %v5369_v62, %v13470_v50  ;;  %v14440_v50 = vld [vmem:[#allocation76_spill] sm:$0xff] }
 0x64e   : > { %v6699_v15 = vadd.f32 %v11645_v44, %v6523_v58  ;;  %v6209_v4 = vsel %vm6208_vm8, %v13558_v31, %v6207_v59  ;;  %v9220_v14 = vpop.eup %9219  ;;  %v5384_v30 = vmul.f32 %v12953_v34, %v12953_v34  ;;  %v5275_v40 = vmul.f32 %v14439_v51, %v14439_v51 }
 0x64f   : > { %9231 = vlog2.f32 %v6698_v27  ;;  %v6212_v39 = vsel %vm6210_vm9, %v6211_v43, %v6209_v4  ;;  %v6083_v60 = vsel %vm6082_vm10, %v13566_v26, %v6081_v37  ;;  %v6837_v11 = vmul.f32 0.6931472, %v9220_v14 }
 0x650   : > { %9233 = vlog2.f32 %v6699_v15  ;;  %v6538_v8 = vmax.f32 %v6212_v39, 1e-06  ;;  %v6086_v52 = vsel %vm6084_vm11, %v6085_v12, %v6083_v60  ;;  %v5290_v13 = vmul.f32 %v14440_v50, %v14440_v50 }
 0x651   : > { %v6520_v32 = vmax.f32 %v6086_v52, 1e-06  ;;  %9235 = vrsqrt.f32 %v13639_v16  ;;  %v9222_v31 = vpop.eup %9221  ;;  %v13653_v26 = vmul.f32 %v14441_v1, %v14441_v1  ;;  %7048 = vst [vmem:[%s11433_s17 + $0x160] sm:$0xff] %v6837_v11  ;;  %v13658_v25 = vadd.f32 %v5384_v30, %v13474_v5 }
 0x652   : > { %v6714_v34 = vadd.f32 %v11676_v23, %v6538_v8  ;;  %v5385_v2 = vmul.f32 %v12976_v6, %v12976_v6  ;;  %v9224_v38 = vpop.eup %9223  ;;  %v6875_v54 = vmul.f32 0.6931472, %v9222_v31  ;;  %v5402_v21 = vmul.f32 %v12991_v33, %v12991_v33 }
 0x653   : > { %v6696_v43 = vadd.f32 %v11645_v44, %v6520_v32  ;;  %v5403_v28 = vmul.f32 %v12998_v17, %v12998_v17  ;;  %v5291_v20 = vmul.f32 %v14442_v53, %v14442_v53  ;;  %v5273_v5 = vmul.f32 %v14443_v55, %v14443_v55 }
 0x654   : > { %v6839_v10 = vmul.f32 0.6931472, %v9224_v38  ;;  %9237 = vlog2.f32 %v6714_v34  ;;  %v13673_v18 = vmul.f32 %v14444_v35, %v14444_v35  ;;  %7067 = vst [vmem:[%s11433_s17 + $0x1f8] sm:$0xff] %v6875_v54  ;;  %v13677_v33 = vadd.f32 %v5385_v2, %v13479_v41 }
 0x655   : > { %v9226_v6 = vpop.eup %9225  ;;  %9239 = vlog2.f32 %v6696_v43  ;;  %v13680_v17 = vadd.f32 %v5402_v21, %v13485_v19  ;;  %v13684_v62 = vmul.f32 %v14445_v46, %v14445_v46  ;;  %v13688_v61 = vadd.f32 %v5403_v28, %v5275_v40 }
 0x656   : > { %v9228_v42 = vpop.eup %9227  ;;  %7049 = vst [vmem:[%s11433_s17 + $0x168] sm:$0xff] %v6839_v10  ;;  %v6869_v45 = vmul.f32 0.6931472, %v9226_v6  ;;  %9241 = vrsqrt.f32 %v13658_v25  ;;  %vm6215_vm12 = vcmp.eq.f32.partialorder %v13622_v49, inf  ;;  %v5418_v41 = vmul.f32 %v13008_v29, %v13008_v29 }
 0x657   : > { %v9230_v57 = vpop.eup %9229  ;;  %v6871_v22 = vmul.f32 0.6931472, %v9228_v42  ;;  %9243 = vrsqrt.f32 %v13677_v33  ;;  %vm6217_vm13 = vcmp.eq.f32.partialorder %v13622_v49, 0.0  ;;  %v6218_v47 = vand.u32 2147483648, %v13622_v49 }
 0x658   : > { %7064 = vst [vmem:[%s11433_s17 + $0x1e0] sm:$0xff] %v6869_v45  ;;  %v6214_v19 = vmul.f32 %v9230_v57, %v13622_v49  ;;  %9245 = vrsqrt.f32 %v13680_v17  ;;  %vm6089_vm14 = vcmp.eq.f32.partialorder %v13639_v16, inf  ;;  %vm6091_vm15 = vcmp.eq.f32.partialorder %v13639_v16, 0.0 }
 0x659   : > { %v9232_v9 = vpop.eup %9231  ;;  %7065 = vst [vmem:[%s11433_s17 + $0x1e8] sm:$0xff] %v6871_v22  ;;  %v6092_v36 = vand.u32 2147483648, %v13639_v16  ;;  %9247 = vrsqrt.f32 %v13688_v61  ;;  %vm6194_vm0 = vcmp.eq.f32.partialorder %v13658_v25, inf  ;;  %v6197_v58 = vand.u32 2147483648, %v13658_v25 }
 0x65a   : > { %v9234_v29 = vpop.eup %9233  ;;  %v6905_v24 = vmul.f32 0.6931472, %v9232_v9  ;;  %v6216_v3 = vsel %vm6215_vm12, %v13622_v49, %v6214_v19  ;;  %vm6196_vm1 = vcmp.eq.f32.partialorder %v13658_v25, 0.0  ;;  %v13712_v15 = vadd.f32 %v5418_v41, %v5290_v13 }
 0x65b   : > { %v9236_v59 = vpop.eup %9235  ;;  %v6907_v27 = vmul.f32 0.6931472, %v9234_v29  ;;  %v6219_v37 = vsel %vm6217_vm13, %v6218_v47, %v6216_v3  ;;  %v5400_v4 = vmul.f32 %v13020_v56, %v13020_v56  ;;  %v5419_v39 = vmul.f32 %v13038_v7, %v13038_v7  ;;  %v14446_v47 = vld [vmem:[#allocation16_spill] sm:$0xff] }
 0x65c   : > { %7082 = vst [vmem:[%s11433_s17 + $0x270] sm:$0xff] %v6905_v24  ;;  %v6539_v12 = vmax.f32 %v6219_v37, 1e-06  ;;  %v6088_v14 = vmul.f32 %v9236_v59, %v13639_v16  ;;  %v5401_v60 = vmul.f32 %v13049_v48, %v13049_v48  ;;  %vm6201_vm2 = vcmp.eq.f32.partialorder %v13677_v33, inf }
 0x65d   : > { %7083 = vst [vmem:[%s11433_s17 + $0x278] sm:$0xff] %v6907_v27  ;;  %vm6203_vm3 = vcmp.eq.f32.partialorder %v13677_v33, 0.0  ;;  %v6204_v49 = vand.u32 2147483648, %v13677_v33  ;;  %9249 = vrsqrt.f32 %v13712_v15  ;;  %v13732_v11 = vadd.f32 %v5400_v4, %v13653_v26 }
 0x65e   : > { %v9238_v56 = vpop.eup %9237  ;;  %v6715_v30 = vadd.f32 %v11676_v23, %v6539_v12  ;;  %v6090_v7 = vsel %vm6089_vm14, %v13639_v16, %v6088_v14  ;;  %v13734_v48 = vadd.f32 %v5419_v39, %v5291_v20  ;;  %vm6320_vm4 = vcmp.eq.f32.partialorder %v13680_v17, inf  ;;  %v14447_v12 = vld [vmem:[#allocation46_spill] sm:$0xff] }
 0x65f   : > { %v9240_v8 = vpop.eup %9239  ;;  %v6937_v52 = vmul.f32 0.6931472, %v9238_v56  ;;  %v6093_v51 = vsel %vm6091_vm15, %v6092_v36, %v6090_v7  ;;  %v13739_v40 = vadd.f32 %v5401_v60, %v5273_v5  ;;  %vm6322_vm5 = vcmp.eq.f32.partialorder %v13680_v17, 0.0 }
 0x660   : > { %v9242_v50 = vpop.eup %9241  ;;  %v6901_v13 = vmul.f32 0.6931472, %v9240_v8  ;;  %9251 = vlog2.f32 %v6715_v30  ;;  %v6521_v32 = vmax.f32 %v6093_v51, 1e-06  ;;  %v6323_v26 = vand.u32 2147483648, %v13680_v17 }
 0x661   : > { %v9244_v31 = vpop.eup %9243  ;;  %7098 = vst [vmem:[%s11433_s17 + $0x2f0] sm:$0xff] %v6937_v52  ;;  %v6193_v1 = vmul.f32 %v9242_v50, %v13658_v25  ;;  %vm6327_vm6 = vcmp.eq.f32.partialorder %v13688_v61, inf  ;;  %9253 = vrsqrt.f32 %v13732_v11  ;;  %vm6329_vm7 = vcmp.eq.f32.partialorder %v13688_v61, 0.0 }
 0x662   : > { %v9246_v16 = vpop.eup %9245  ;;  %7080 = vst [vmem:[%s11433_s17 + $0x260] sm:$0xff] %v6901_v13  ;;  %v6697_v34 = vadd.f32 %v11645_v44, %v6521_v32  ;;  %v6200_v2 = vmul.f32 %v9244_v31, %v13677_v33  ;;  %9255 = vrsqrt.f32 %v13734_v48  ;;  %v6330_v21 = vand.u32 2147483648, %v13688_v61 }
 0x663   : > { %v9248_v38 = vpop.eup %9247  ;;  %v6195_v54 = vsel %vm6194_vm0, %v13658_v25, %v6193_v1  ;;  %v6319_v43 = vmul.f32 %v9246_v16, %v13680_v17  ;;  %v5416_v28 = vmul.f32 %v13077_v0, %v13077_v0  ;;  %vm6432_vm8 = vcmp.eq.f32.partialorder %v13712_v15, inf }
 0x664   : > { %9257 = vlog2.f32 %v6697_v34  ;;  %v6198_v44 = vsel %vm6196_vm1, %v6197_v58, %v6195_v54  ;;  %v6202_v53 = vsel %vm6201_vm2, %v13677_v33, %v6200_v2  ;;  %v6326_v20 = vmul.f32 %v9248_v38, %v13688_v61 }
 0x665   : > { %v6536_v55 = vmax.f32 %v6198_v44, 1e-06  ;;  %v6205_v5 = vsel %vm6203_vm3, %v6204_v49, %v6202_v53  ;;  %v6321_v10 = vsel %vm6320_vm4, %v13680_v17, %v6319_v43  ;;  %9259 = vrsqrt.f32 %v13739_v40 }
 0x666   : > { %v6537_v0 = vmax.f32 %v6205_v5, 1e-06  ;;  %v6324_v25 = vsel %vm6322_vm5, %v6323_v26, %v6321_v10  ;;  %v6328_v6 = vsel %vm6327_vm6, %v13688_v61, %v6326_v20  ;;  %vm6434_vm9 = vcmp.eq.f32.partialorder %v13712_v15, 0.0 }
 0x667   : > { %v9250_v35 = vpop.eup %9249  ;;  %v6712_v33 = vadd.f32 %v11676_v23, %v6536_v55  ;;  %v6554_v42 = vmax.f32 %v6324_v25, 1e-06  ;;  %v6331_v46 = vsel %vm6329_vm7, %v6330_v21, %v6328_v6  ;;  %v6435_v22 = vand.u32 2147483648, %v13712_v15 }
 0x668   : > { %v6713_v45 = vadd.f32 %v11676_v23, %v6537_v0  ;;  %v6555_v57 = vmax.f32 %v6331_v46, 1e-06  ;;  %v6431_v17 = vmul.f32 %v9250_v35, %v13712_v15  ;;  %v13786_v19 = vadd.f32 %v5416_v28, %v13673_v18 }
 0x669   : > { %9261 = vlog2.f32 %v6712_v33  ;;  %v6730_v41 = vadd.f32 %v14397_v63, %v6554_v42  ;;  %v5417_v9 = vmul.f32 %v14446_v47, %v14446_v47  ;;  %vm6306_vm10 = vcmp.eq.f32.partialorder %v13732_v11, inf }
 0x66a   : > { %v9252_v61 = vpop.eup %9251  ;;  %9263 = vlog2.f32 %v6713_v45  ;;  %v6731_v36 = vadd.f32 %v14397_v63, %v6555_v57  ;;  %v6433_v23 = vsel %vm6432_vm8, %v13712_v15, %v6431_v17  ;;  %vm6308_vm11 = vcmp.eq.f32.partialorder %v13732_v11, 0.0 }
 0x66b   : > { %v9254_v29 = vpop.eup %9253  ;;  %v6939_v24 = vmul.f32 0.6931472, %v9252_v61  ;;  %9265 = vlog2.f32 %v6730_v41  ;;  %v6436_v18 = vsel %vm6434_vm9, %v6435_v22, %v6433_v23  ;;  %v6309_v27 = vand.u32 2147483648, %v13732_v11  ;;  %v7156_v23 = vld [vmem:[%s11433_s17] sm:$0xff] (%p9479_p10) }
 0x66c   : > { %v9256_v3 = vpop.eup %9255  ;;  %9267 = vlog2.f32 %v6731_v36  ;;  %v6570_v58 = vmax.f32 %v6436_v18, 1e-06  ;;  %v6305_v59 = vmul.f32 %v9254_v29, %v13732_v11  ;;  %vm6439_vm12 = vcmp.eq.f32.partialorder %v13734_v48, inf  ;;  %v7158_v29 = vld [vmem:[%s11433_s17 + $0x8] sm:$0xff] (%p9479_p10)  ;;  %v7162_v18 = vld [vmem:[%s11433_s17 + $0x18] sm:$0xff] (%p9479_p10)  ;;  %7157 = vst [vmem:[%s13859_s20] sm:$0xff] (%p9479_p10), %v7156_v23  ;;  %v7284_v23 = vld [vmem:[%s11433_s17 + $0x200] sm:$0xff] (%p9479_p10) }
 0x66d   : > { %7099 = vst [vmem:[%s11433_s17 + $0x2f8] sm:$0xff] %v6939_v24  ;;  %v6438_v37 = vmul.f32 %v9256_v3, %v13734_v48  ;;  %9269 = vrsqrt.f32 %v13786_v19  ;;  %v5545_v15 = vadd.f32 %v5417_v9, %v13684_v62  ;;  %vm6441_vm13 = vcmp.eq.f32.partialorder %v13734_v48, 0.0  ;;  %v7160_v24 = vld [vmem:[%s11433_s17 + $0x10] sm:$0xff] (%p9479_p10)  ;;  %v7164_v3 = vld [vmem:[%s11433_s17 + $0x20] sm:$0xff] (%p9479_p10)  ;;  %7159 = vst [vmem:[%s13859_s20 + $0x8] sm:$0xff] (%p9479_p10), %v7158_v29 }
 0x66e   : > { %v9258_v4 = vpop.eup %9257  ;;  %v6746_v14 = vadd.f32 %v14447_v12, %v6570_v58  ;;  %v6307_v39 = vsel %vm6306_vm10, %v13732_v11, %v6305_v59  ;;  %v6442_v60 = vand.u32 2147483648, %v13734_v48  ;;  %vm6313_vm14 = vcmp.eq.f32.partialorder %v13739_v40, inf  ;;  %v7166_v58 = vld [vmem:[%s11433_s17 + $0x28] sm:$0xff] (%p9479_p10)  ;;  %v7168_v59 = vld [vmem:[%s11433_s17 + $0x30] sm:$0xff] (%p9479_p10)  ;;  %7161 = vst [vmem:[%s13859_s20 + $0x10] sm:$0xff] (%p9479_p10), %v7160_v24  ;;  %7163 = vst [vmem:[%s13859_s20 + $0x18] sm:$0xff] (%p9479_p10), %v7162_v18 }
 0x66f   : > { %v9260_v49 = vpop.eup %9259  ;;  %v6903_v56 = vmul.f32 0.6931472, %v9258_v4  ;;  %v6310_v30 = vsel %vm6308_vm11, %v6309_v27, %v6307_v39  ;;  %v6440_v7 = vsel %vm6439_vm12, %v13734_v48, %v6438_v37  ;;  %9271 = vrsqrt.f32 %v5545_v15  ;;  %v7170_v27 = vld [vmem:[%s11433_s17 + $0x38] sm:$0xff] (%p9479_p10)  ;;  %v7172_v37 = vld [vmem:[%s11433_s17 + $0x40] sm:$0xff] (%p9479_p10)  ;;  %v7176_v4 = vld [vmem:[%s11433_s17 + $0x50] sm:$0xff] (%p9479_p10)  ;;  %7165 = vst [vmem:[%s13859_s20 + $0x20] sm:$0xff] (%p9479_p10), %v7164_v3 }
 0x670   : > { %9273 = vlog2.f32 %v6746_v14  ;;  %v6552_v62 = vmax.f32 %v6310_v30, 1e-06  ;;  %v6443_v8 = vsel %vm6441_vm13, %v6442_v60, %v6440_v7  ;;  %v6312_v52 = vmul.f32 %v9260_v49, %v13739_v40  ;;  %v7180_v14 = vld [vmem:[%s11433_s17 + $0x60] sm:$0xff] (%p9479_p10)  ;;  %v7182_v39 = vld [vmem:[%s11433_s17 + $0x68] sm:$0xff] (%p9479_p10)  ;;  %v7184_v60 = vld [vmem:[%s11433_s17 + $0x70] sm:$0xff] (%p9479_p10)  ;;  %7167 = vst [vmem:[%s13859_s20 + $0x28] sm:$0xff] (%p9479_p10), %v7166_v58 }
 0x671   : > { %7081 = vst [vmem:[%s11433_s17 + $0x268] sm:$0xff] %v6903_v56  ;;  %v6571_v51 = vmax.f32 %v6443_v8, 1e-06  ;;  %v6316_v50 = vand.u32 2147483648, %v13739_v40  ;;  %vm6315_vm15 = vcmp.eq.f32.partialorder %v13739_v40, 0.0  ;;  %vm6418_vm0 = vcmp.eq.f32.partialorder %v13786_v19, inf }
 0x672   : > { %v6728_v13 = vadd.f32 %v14397_v63, %v6552_v62  ;;  %v6314_v11 = vsel %vm6313_vm14, %v13739_v40, %v6312_v52  ;;  %v6421_v53 = vand.u32 2147483648, %v13786_v19  ;;  %vm6420_vm1 = vcmp.eq.f32.partialorder %v13786_v19, 0.0  ;;  %7169 = vst [vmem:[%s13859_s20 + $0x30] sm:$0xff] (%p9479_p10), %v7168_v59  ;;  %7171 = vst [vmem:[%s13859_s20 + $0x38] sm:$0xff] (%p9479_p10), %v7170_v27  ;;  %v7186_v49 = vld [vmem:[%s11433_s17 + $0x78] sm:$0xff] (%p9479_p10)  ;;  %v7188_v56 = vld [vmem:[%s11433_s17 + $0x80] sm:$0xff] (%p9479_p10) }
 0x673   : > { %v9262_v48 = vpop.eup %9261  ;;  %v6747_v32 = vadd.f32 %v14447_v12, %v6571_v51  ;;  %v6317_v31 = vsel %vm6315_vm15, %v6316_v50, %v6314_v11  ;;  %vm6425_vm2 = vcmp.eq.f32.partialorder %v5545_v15, inf  ;;  %v6428_v0 = vand.u32 2147483648, %v5545_v15  ;;  %7173 = vst [vmem:[%s13859_s20 + $0x40] sm:$0xff] (%p9479_p10), %v7172_v37  ;;  %7177 = vst [vmem:[%s13859_s20 + $0x50] sm:$0xff] (%p9479_p10), %v7176_v4  ;;  %v7190_v30 = vld [vmem:[%s11433_s17 + $0x88] sm:$0xff] (%p9479_p10)  ;;  %v7192_v7 = vld [vmem:[%s11433_s17 + $0x90] sm:$0xff] (%p9479_p10) }
 0x674   : > { %v9264_v1 = vpop.eup %9263  ;;  %v6933_v26 = vmul.f32 0.6931472, %v9262_v48  ;;  %9275 = vlog2.f32 %v6728_v13  ;;  %v6553_v16 = vmax.f32 %v6317_v31, 1e-06  ;;  %vm6427_vm3 = vcmp.eq.f32.partialorder %v5545_v15, 0.0  ;;  %7181 = vst [vmem:[%s13859_s20 + $0x60] sm:$0xff] (%p9479_p10), %v7180_v14 }
 0x675   : > { %v9266_v34 = vpop.eup %9265  ;;  %v6935_v2 = vmul.f32 0.6931472, %v9264_v1  ;;  %9277 = vlog2.f32 %v6747_v32  ;;  %7183 = vst [vmem:[%s13859_s20 + $0x68] sm:$0xff] (%p9479_p10), %v7182_v39  ;;  %7185 = vst [vmem:[%s13859_s20 + $0x70] sm:$0xff] (%p9479_p10), %v7184_v60  ;;  %v7194_v62 = vld [vmem:[%s11433_s17 + $0x98] sm:$0xff] (%p9479_p10)  ;;  %v7196_v8 = vld [vmem:[%s11433_s17 + $0xa0] sm:$0xff] (%p9479_p10) }
 0x676   : > { %v9268_v38 = vpop.eup %9267  ;;  %7096 = vst [vmem:[%s11433_s17 + $0x2e0] sm:$0xff] %v6933_v26  ;;  %v6969_v54 = vmul.f32 0.6931472, %v9266_v34  ;;  %v6729_v43 = vadd.f32 %v14397_v63, %v6553_v16  ;;  %7187 = vst [vmem:[%s13859_s20 + $0x78] sm:$0xff] (%p9479_p10), %v7186_v49  ;;  %v7198_v52 = vld [vmem:[%s11433_s17 + $0xa8] sm:$0xff] (%p9479_p10)  ;;  %v7200_v51 = vld [vmem:[%s11433_s17 + $0xb0] sm:$0xff] (%p9479_p10) }
 0x677   : > { %v9270_v40 = vpop.eup %9269  ;;  %7097 = vst [vmem:[%s11433_s17 + $0x2e8] sm:$0xff] %v6935_v2  ;;  %v6971_v21 = vmul.f32 0.6931472, %v9268_v38  ;;  %7189 = vst [vmem:[%s13859_s20 + $0x180] sm:$0xff] (%p9479_p10), %v7188_v56  ;;  %v7202_v50 = vld [vmem:[%s11433_s17 + $0xb8] sm:$0xff] (%p9479_p10)  ;;  %v7204_v13 = vld [vmem:[%s11433_s17 + $0xc0] sm:$0xff] (%p9479_p10) }
 0x678   : > { %7114 = vst [vmem:[%s11433_s17 + $0x370] sm:$0xff] %v6969_v54  ;;  %9279 = vlog2.f32 %v6729_v43  ;;  %v6417_v28 = vmul.f32 %v9270_v40, %v13786_v19  ;;  %7191 = vst [vmem:[%s13859_s20 + $0x188] sm:$0xff] (%p9479_p10), %v7190_v30  ;;  %v7206_v11 = vld [vmem:[%s11433_s17 + $0xc8] sm:$0xff] (%p9479_p10)  ;;  %v7208_v48 = vld [vmem:[%s11433_s17 + $0xd0] sm:$0xff] (%p9479_p10) }
 0x679   : > { %v9272_v44 = vpop.eup %9271  ;;  %7115 = vst [vmem:[%s11433_s17 + $0x378] sm:$0xff] %v6971_v21  ;;  %7193 = vst [vmem:[%s13859_s20 + $0x190] sm:$0xff] (%p9479_p10), %v7192_v7  ;;  %v7210_v32 = vld [vmem:[%s11433_s17 + $0xd8] sm:$0xff] (%p9479_p10)  ;;  %v7212_v31 = vld [vmem:[%s11433_s17 + $0xe0] sm:$0xff] (%p9479_p10) }
 0x67a   : > { %v9274_v20 = vpop.eup %9273  ;;  %v6419_v55 = vsel %vm6418_vm0, %v13786_v19, %v6417_v28  ;;  %v6424_v63 = vmul.f32 %v9272_v44, %v5545_v15  ;;  %7195 = vst [vmem:[%s13859_s20 + $0x198] sm:$0xff] (%p9479_p10), %v7194_v62  ;;  %7197 = vst [vmem:[%s13859_s20 + $0x1a0] sm:$0xff] (%p9479_p10), %v7196_v8  ;;  %v7214_v1 = vld [vmem:[%s11433_s17 + $0xe8] sm:$0xff] (%p9479_p10)  ;;  %v7216_v26 = vld [vmem:[%s11433_s17 + $0xf0] sm:$0xff] (%p9479_p10) }
 0x67b   : > { %v7001_v5 = vmul.f32 0.6931472, %v9274_v20  ;;  %v6422_v10 = vsel %vm6420_vm1, %v6421_v53, %v6419_v55  ;;  %7199 = vst [vmem:[%s13859_s20 + $0x1a8] sm:$0xff] (%p9479_p10), %v7198_v52  ;;  %7201 = vst [vmem:[%s13859_s20 + $0x1b0] sm:$0xff] (%p9479_p10), %v7200_v51  ;;  %v7218_v16 = vld [vmem:[%s11433_s17 + $0xf8] sm:$0xff] (%p9479_p10)  ;;  %v7220_v34 = vld [vmem:[%s11433_s17 + $0x100] sm:$0xff] (%p9479_p10) }
 0x67c   : > { %v6568_v25 = vmax.f32 %v6422_v10, 1e-06  ;;  %v6426_v6 = vsel %vm6425_vm2, %v5545_v15, %v6424_v63  ;;  %v7174_v15 = vld [vmem:[%s11433_s17 + $0x48] sm:$0xff] (%p9479_p10)  ;;  %7203 = vst [vmem:[%s13859_s20 + $0x1b8] sm:$0xff] (%p9479_p10), %v7202_v50  ;;  %7205 = vst [vmem:[%s13859_s20 + $0x1c0] sm:$0xff] (%p9479_p10), %v7204_v13  ;;  %v7224_v38 = vld [vmem:[%s11433_s17 + $0x110] sm:$0xff] (%p9479_p10) }
 0x67d   : > { %7130 = vst [vmem:[%s11433_s17 + $0x3f0] sm:$0xff] %v7001_v5  ;;  %v6429_v35 = vsel %vm6427_vm3, %v6428_v0, %v6426_v6  ;;  %7175 = vst [vmem:[%s13859_s20 + $0x48] sm:$0xff] (%p9479_p10), %v7174_v15  ;;  %v7222_v2 = vld [vmem:[%s11433_s17 + $0x108] sm:$0xff] (%p9479_p10)  ;;  %v7226_v54 = vld [vmem:[%s11433_s17 + $0x118] sm:$0xff] (%p9479_p10) }
 0x67e   : > { %v9276_v33 = vpop.eup %9275  ;;  %v6744_v42 = vadd.f32 %v14447_v12, %v6568_v25  ;;  %v6569_v46 = vmax.f32 %v6429_v35, 1e-06  ;;  %7207 = vst [vmem:[%s13859_s20 + $0x1c8] sm:$0xff] (%p9479_p10), %v7206_v11  ;;  %7209 = vst [vmem:[%s13859_s20 + $0x1d0] sm:$0xff] (%p9479_p10), %v7208_v48  ;;  %v7228_v43 = vld [vmem:[%s11433_s17 + $0x120] sm:$0xff] (%p9479_p10)  ;;  %v7230_v40 = vld [vmem:[%s11433_s17 + $0x128] sm:$0xff] (%p9479_p10) }
 0x67f   : > { %v9278_v45 = vpop.eup %9277  ;;  %v6965_v57 = vmul.f32 0.6931472, %v9276_v33  ;;  %7211 = vst [vmem:[%s13859_s20 + $0x1d8] sm:$0xff] (%p9479_p10), %v7210_v32  ;;  %7213 = vst [vmem:[%s13859_s20 + $0x1e0] sm:$0xff] (%p9479_p10), %v7212_v31  ;;  %v7232_v21 = vld [vmem:[%s11433_s17 + $0x130] sm:$0xff] (%p9479_p10)  ;;  %v7234_v28 = vld [vmem:[%s11433_s17 + $0x138] sm:$0xff] (%p9479_p10) }
 0x680   : > { %v7003_v17 = vmul.f32 0.6931472, %v9278_v45  ;;  %9281 = vlog2.f32 %v6744_v42  ;;  %v6745_v22 = vadd.f32 %v14447_v12, %v6569_v46  ;;  %v7178_v12 = vld [vmem:[%s11433_s17 + $0x58] sm:$0xff] (%p9479_p10)  ;;  %7215 = vst [vmem:[%s13859_s20 + $0x1e8] sm:$0xff] (%p9479_p10), %v7214_v1  ;;  %7217 = vst [vmem:[%s13859_s20 + $0x1f0] sm:$0xff] (%p9479_p10), %v7216_v26  ;;  %v7236_v44 = vld [vmem:[%s11433_s17 + $0x140] sm:$0xff] (%p9479_p10) }
 0x681   : > { %7112 = vst [vmem:[%s11433_s17 + $0x360] sm:$0xff] %v6965_v57  ;;  %7179 = vst [vmem:[%s13859_s20 + $0x58] sm:$0xff] (%p9479_p10), %v7178_v12  ;;  %v7238_v53 = vld [vmem:[%s11433_s17 + $0x148] sm:$0xff] (%p9479_p10)  ;;  %v7240_v20 = vld [vmem:[%s11433_s17 + $0x150] sm:$0xff] (%p9479_p10) }
 0x682   : > { %v9280_v41 = vpop.eup %9279  ;;  %7131 = vst [vmem:[%s11433_s17 + $0x3f8] sm:$0xff] %v7003_v17  ;;  %9283 = vlog2.f32 %v6745_v22  ;;  %7219 = vst [vmem:[%s13859_s20 + $0x1f8] sm:$0xff] (%p9479_p10), %v7218_v16  ;;  %v7242_v55 = vld [vmem:[%s11433_s17 + $0x158] sm:$0xff] (%p9479_p10)  ;;  %v7244_v63 = vld [vmem:[%s11433_s17 + $0x160] sm:$0xff] (%p9479_p10) }
 0x683   : > { %v6967_v19 = vmul.f32 0.6931472, %v9280_v41  ;;  %7221 = vst [vmem:[%s13859_s20 + $0x300] sm:$0xff] (%p9479_p10), %v7220_v34  ;;  %7223 = vst [vmem:[%s13859_s20 + $0x308] sm:$0xff] (%p9479_p10), %v7222_v2  ;;  %v7246_v5 = vld [vmem:[%s11433_s17 + $0x168] sm:$0xff] (%p9479_p10)  ;;  %v7248_v10 = vld [vmem:[%s11433_s17 + $0x170] sm:$0xff] (%p9479_p10) }
 0x684   : > { %7225 = vst [vmem:[%s13859_s20 + $0x310] sm:$0xff] (%p9479_p10), %v7224_v38  ;;  %7227 = vst [vmem:[%s13859_s20 + $0x318] sm:$0xff] (%p9479_p10), %v7226_v54  ;;  %v7250_v0 = vld [vmem:[%s11433_s17 + $0x178] sm:$0xff] (%p9479_p10)  ;;  %v7252_v25 = vld [vmem:[%s11433_s17 + $0x180] sm:$0xff] (%p9479_p10) }
 0x685   : > { %7113 = vst [vmem:[%s11433_s17 + $0x368] sm:$0xff] %v6967_v19  ;;  %7229 = vst [vmem:[%s13859_s20 + $0x320] sm:$0xff] (%p9479_p10), %v7228_v43  ;;  %v7254_v6 = vld [vmem:[%s11433_s17 + $0x188] sm:$0xff] (%p9479_p10)  ;;  %v7256_v35 = vld [vmem:[%s11433_s17 + $0x190] sm:$0xff] (%p9479_p10) }
 0x686   : > { %7231 = vst [vmem:[%s13859_s20 + $0x328] sm:$0xff] (%p9479_p10), %v7230_v40  ;;  %7233 = vst [vmem:[%s13859_s20 + $0x330] sm:$0xff] (%p9479_p10), %v7232_v21  ;;  %v7258_v33 = vld [vmem:[%s11433_s17 + $0x198] sm:$0xff] (%p9479_p10)  ;;  %v7260_v42 = vld [vmem:[%s11433_s17 + $0x1a0] sm:$0xff] (%p9479_p10) }
 0x687   : > { %7235 = vst [vmem:[%s13859_s20 + $0x338] sm:$0xff] (%p9479_p10), %v7234_v28  ;;  %7237 = vst [vmem:[%s13859_s20 + $0x340] sm:$0xff] (%p9479_p10), %v7236_v44  ;;  %v7262_v46 = vld [vmem:[%s11433_s17 + $0x1a8] sm:$0xff] (%p9479_p10)  ;;  %v7264_v45 = vld [vmem:[%s11433_s17 + $0x1b0] sm:$0xff] (%p9479_p10) }
 0x688   : > { %7239 = vst [vmem:[%s13859_s20 + $0x348] sm:$0xff] (%p9479_p10), %v7238_v53  ;;  %7241 = vst [vmem:[%s13859_s20 + $0x350] sm:$0xff] (%p9479_p10), %v7240_v20  ;;  %v7266_v57 = vld [vmem:[%s11433_s17 + $0x1b8] sm:$0xff] (%p9479_p10)  ;;  %v7268_v17 = vld [vmem:[%s11433_s17 + $0x1c0] sm:$0xff] (%p9479_p10) }
 0x689   : > { %7138 = sbr.rel (!%p9479_p10) target bundleno = 1717 (0x6b5), region = 104  ;;  %7243 = vst [vmem:[%s13859_s20 + $0x358] sm:$0xff] (%p9479_p10), %v7242_v55  ;;  %7245 = vst [vmem:[%s13859_s20 + $0x360] sm:$0xff] (%p9479_p10), %v7244_v63  ;;  %v7270_v22 = vld [vmem:[%s11433_s17 + $0x1c8] sm:$0xff] (%p9479_p10)  ;;  %v7272_v41 = vld [vmem:[%s11433_s17 + $0x1d0] sm:$0xff] (%p9479_p10) }
 0x68a   : > { %v9282_v47 = vpop.eup %9281  ;;  %7247 = vst [vmem:[%s13859_s20 + $0x368] sm:$0xff] (%p9479_p10), %v7246_v5  ;;  %7249 = vst [vmem:[%s13859_s20 + $0x370] sm:$0xff] (%p9479_p10), %v7248_v10  ;;  %v7274_v19 = vld [vmem:[%s11433_s17 + $0x1d8] sm:$0xff] (%p9479_p10)  ;;  %v7286_v29 = vld [vmem:[%s11433_s17 + $0x208] sm:$0xff] (%p9479_p10) }
 0x68b   : > { %v6997_v9 = vmul.f32 0.6931472, %v9282_v47  ;;  %7251 = vst [vmem:[%s13859_s20 + $0x378] sm:$0xff] (%p9479_p10), %v7250_v0  ;;  %7253 = vst [vmem:[%s13859_s20 + $0x480] sm:$0xff] (%p9479_p10), %v7252_v25  ;;  %v7276_v47 = vld [vmem:[%s11433_s17 + $0x1e0] sm:$0xff] (%p9479_p10)  ;;  %v7288_v24 = vld [vmem:[%s11433_s17 + $0x210] sm:$0xff] (%p9479_p10) }
 0x68c   : > { %v9284_v61 = vpop.eup %9283  ;;  %7255 = vst [vmem:[%s13859_s20 + $0x488] sm:$0xff] (%p9479_p10), %v7254_v6  ;;  %7257 = vst [vmem:[%s13859_s20 + $0x490] sm:$0xff] (%p9479_p10), %v7256_v35  ;;  %v7290_v18 = vld [vmem:[%s11433_s17 + $0x218] sm:$0xff] (%p9479_p10)  ;;  %v7292_v3 = vld [vmem:[%s11433_s17 + $0x220] sm:$0xff] (%p9479_p10) }
 0x68d   : > { %7128 = vst [vmem:[%s11433_s17 + $0x3e0] sm:$0xff] %v6997_v9  ;;  %v6999_v36 = vmul.f32 0.6931472, %v9284_v61  ;;  %7259 = vst [vmem:[%s13859_s20 + $0x498] sm:$0xff] (%p9479_p10), %v7258_v33  ;;  %v7278_v9 = vld [vmem:[%s11433_s17 + $0x1e8] sm:$0xff] (%p9479_p10)  ;;  %v7280_v61 = vld [vmem:[%s11433_s17 + $0x1f0] sm:$0xff] (%p9479_p10) }
 0x68e   : > { %7261 = vst [vmem:[%s13859_s20 + $0x4a0] sm:$0xff] (%p9479_p10), %v7260_v42  ;;  %7263 = vst [vmem:[%s13859_s20 + $0x4a8] sm:$0xff] (%p9479_p10), %v7262_v46  ;;  %v7294_v58 = vld [vmem:[%s11433_s17 + $0x228] sm:$0xff] (%p9479_p10)  ;;  %v7296_v59 = vld [vmem:[%s11433_s17 + $0x230] sm:$0xff] (%p9479_p10) }
 0x68f   : > { %7129 = vst [vmem:[%s11433_s17 + $0x3e8] sm:$0xff] %v6999_v36  ;;  %7265 = vst [vmem:[%s13859_s20 + $0x4b0] sm:$0xff] (%p9479_p10), %v7264_v45  ;;  %v7282_v36 = vld [vmem:[%s11433_s17 + $0x1f8] sm:$0xff] (%p9479_p10)  ;;  %v7300_v37 = vld [vmem:[%s11433_s17 + $0x240] sm:$0xff] (%p9479_p10) }
 0x690   : > { %7267 = vst [vmem:[%s13859_s20 + $0x4b8] sm:$0xff] %v7266_v57  ;;  %7269 = vst [vmem:[%s13859_s20 + $0x4c0] sm:$0xff] %v7268_v17  ;;  %v7298_v27 = vld [vmem:[%s11433_s17 + $0x238] sm:$0xff]  ;;  %v7302_v15 = vld [vmem:[%s11433_s17 + $0x248] sm:$0xff] }
 0x691   : > { %7271 = vst [vmem:[%s13859_s20 + $0x4c8] sm:$0xff] %v7270_v22  ;;  %7273 = vst [vmem:[%s13859_s20 + $0x4d0] sm:$0xff] %v7272_v41  ;;  %v7304_v4 = vld [vmem:[%s11433_s17 + $0x250] sm:$0xff]  ;;  %v7306_v12 = vld [vmem:[%s11433_s17 + $0x258] sm:$0xff] }
 0x692   : > { %7275 = vst [vmem:[%s13859_s20 + $0x4d8] sm:$0xff] %v7274_v19  ;;  %7277 = vst [vmem:[%s13859_s20 + $0x4e0] sm:$0xff] %v7276_v47  ;;  %v7308_v14 = vld [vmem:[%s11433_s17 + $0x260] sm:$0xff]  ;;  %v7310_v39 = vld [vmem:[%s11433_s17 + $0x268] sm:$0xff] }
 0x693   : > { %7279 = vst [vmem:[%s13859_s20 + $0x4e8] sm:$0xff] %v7278_v9  ;;  %7281 = vst [vmem:[%s13859_s20 + $0x4f0] sm:$0xff] %v7280_v61  ;;  %v7312_v60 = vld [vmem:[%s11433_s17 + $0x270] sm:$0xff]  ;;  %v7314_v49 = vld [vmem:[%s11433_s17 + $0x278] sm:$0xff] }
 0x694   : > { %7283 = vst [vmem:[%s13859_s20 + $0x4f8] sm:$0xff] %v7282_v36  ;;  %7285 = vst [vmem:[%s13859_s20 + $0x600] sm:$0xff] %v7284_v23  ;;  %v7316_v56 = vld [vmem:[%s11433_s17 + $0x280] sm:$0xff]  ;;  %v7318_v30 = vld [vmem:[%s11433_s17 + $0x288] sm:$0xff] }
 0x695   : > { %7287 = vst [vmem:[%s13859_s20 + $0x608] sm:$0xff] %v7286_v29  ;;  %7289 = vst [vmem:[%s13859_s20 + $0x610] sm:$0xff] %v7288_v24  ;;  %v7320_v7 = vld [vmem:[%s11433_s17 + $0x290] sm:$0xff]  ;;  %v7322_v62 = vld [vmem:[%s11433_s17 + $0x298] sm:$0xff] }
 0x696   : > { %7291 = vst [vmem:[%s13859_s20 + $0x618] sm:$0xff] %v7290_v18  ;;  %7293 = vst [vmem:[%s13859_s20 + $0x620] sm:$0xff] %v7292_v3  ;;  %v7324_v8 = vld [vmem:[%s11433_s17 + $0x2a0] sm:$0xff]  ;;  %v7326_v52 = vld [vmem:[%s11433_s17 + $0x2a8] sm:$0xff] }
 0x697   : > { %7295 = vst [vmem:[%s13859_s20 + $0x628] sm:$0xff] %v7294_v58  ;;  %7297 = vst [vmem:[%s13859_s20 + $0x630] sm:$0xff] %v7296_v59  ;;  %v7328_v51 = vld [vmem:[%s11433_s17 + $0x2b0] sm:$0xff]  ;;  %v7330_v50 = vld [vmem:[%s11433_s17 + $0x2b8] sm:$0xff] }
 0x698   : > { %7299 = vst [vmem:[%s13859_s20 + $0x638] sm:$0xff] %v7298_v27  ;;  %7301 = vst [vmem:[%s13859_s20 + $0x640] sm:$0xff] %v7300_v37  ;;  %v7332_v13 = vld [vmem:[%s11433_s17 + $0x2c0] sm:$0xff]  ;;  %v7334_v11 = vld [vmem:[%s11433_s17 + $0x2c8] sm:$0xff] }
 0x699   : > { %7303 = vst [vmem:[%s13859_s20 + $0x648] sm:$0xff] %v7302_v15  ;;  %7305 = vst [vmem:[%s13859_s20 + $0x650] sm:$0xff] %v7304_v4  ;;  %v7336_v48 = vld [vmem:[%s11433_s17 + $0x2d0] sm:$0xff]  ;;  %v7338_v32 = vld [vmem:[%s11433_s17 + $0x2d8] sm:$0xff] }
 0x69a   : > { %7307 = vst [vmem:[%s13859_s20 + $0x658] sm:$0xff] %v7306_v12  ;;  %7309 = vst [vmem:[%s13859_s20 + $0x660] sm:$0xff] %v7308_v14  ;;  %v7340_v31 = vld [vmem:[%s11433_s17 + $0x2e0] sm:$0xff]  ;;  %v7342_v1 = vld [vmem:[%s11433_s17 + $0x2e8] sm:$0xff] }
 0x69b   : > { %7311 = vst [vmem:[%s13859_s20 + $0x668] sm:$0xff] %v7310_v39  ;;  %7313 = vst [vmem:[%s13859_s20 + $0x670] sm:$0xff] %v7312_v60  ;;  %v7344_v26 = vld [vmem:[%s11433_s17 + $0x2f0] sm:$0xff]  ;;  %v7346_v16 = vld [vmem:[%s11433_s17 + $0x2f8] sm:$0xff] }
 0x69c   : > { %7315 = vst [vmem:[%s13859_s20 + $0x678] sm:$0xff] %v7314_v49  ;;  %7317 = vst [vmem:[%s13859_s20 + $0x780] sm:$0xff] %v7316_v56  ;;  %v7348_v34 = vld [vmem:[%s11433_s17 + $0x300] sm:$0xff]  ;;  %v7350_v2 = vld [vmem:[%s11433_s17 + $0x308] sm:$0xff] }
 0x69d   : > { %7319 = vst [vmem:[%s13859_s20 + $0x788] sm:$0xff] %v7318_v30  ;;  %7321 = vst [vmem:[%s13859_s20 + $0x790] sm:$0xff] %v7320_v7  ;;  %v7352_v38 = vld [vmem:[%s11433_s17 + $0x310] sm:$0xff]  ;;  %v7354_v54 = vld [vmem:[%s11433_s17 + $0x318] sm:$0xff] }
 0x69e   : > { %7323 = vst [vmem:[%s13859_s20 + $0x798] sm:$0xff] %v7322_v62  ;;  %7325 = vst [vmem:[%s13859_s20 + $0x7a0] sm:$0xff] %v7324_v8  ;;  %v7356_v43 = vld [vmem:[%s11433_s17 + $0x320] sm:$0xff]  ;;  %v7358_v40 = vld [vmem:[%s11433_s17 + $0x328] sm:$0xff] }
 0x69f   : > { %7327 = vst [vmem:[%s13859_s20 + $0x7a8] sm:$0xff] %v7326_v52  ;;  %7329 = vst [vmem:[%s13859_s20 + $0x7b0] sm:$0xff] %v7328_v51  ;;  %v7360_v21 = vld [vmem:[%s11433_s17 + $0x330] sm:$0xff]  ;;  %v7362_v28 = vld [vmem:[%s11433_s17 + $0x338] sm:$0xff] }
 0x6a0   : > { %7331 = vst [vmem:[%s13859_s20 + $0x7b8] sm:$0xff] %v7330_v50  ;;  %7333 = vst [vmem:[%s13859_s20 + $0x7c0] sm:$0xff] %v7332_v13  ;;  %v7364_v44 = vld [vmem:[%s11433_s17 + $0x340] sm:$0xff]  ;;  %v7366_v53 = vld [vmem:[%s11433_s17 + $0x348] sm:$0xff] }
 0x6a1   : > { %7335 = vst [vmem:[%s13859_s20 + $0x7c8] sm:$0xff] %v7334_v11  ;;  %7337 = vst [vmem:[%s13859_s20 + $0x7d0] sm:$0xff] %v7336_v48  ;;  %v7368_v20 = vld [vmem:[%s11433_s17 + $0x350] sm:$0xff]  ;;  %v7370_v55 = vld [vmem:[%s11433_s17 + $0x358] sm:$0xff] }
 0x6a2   : > { %7339 = vst [vmem:[%s13859_s20 + $0x7d8] sm:$0xff] %v7338_v32  ;;  %7341 = vst [vmem:[%s13859_s20 + $0x7e0] sm:$0xff] %v7340_v31  ;;  %v7372_v63 = vld [vmem:[%s11433_s17 + $0x360] sm:$0xff]  ;;  %v7374_v5 = vld [vmem:[%s11433_s17 + $0x368] sm:$0xff] }
 0x6a3   : > { %7343 = vst [vmem:[%s13859_s20 + $0x7e8] sm:$0xff] %v7342_v1  ;;  %7345 = vst [vmem:[%s13859_s20 + $0x7f0] sm:$0xff] %v7344_v26  ;;  %v7376_v10 = vld [vmem:[%s11433_s17 + $0x370] sm:$0xff]  ;;  %v7378_v0 = vld [vmem:[%s11433_s17 + $0x378] sm:$0xff] }
 0x6a4   : > { %7347 = vst [vmem:[%s13859_s20 + $0x7f8] sm:$0xff] %v7346_v16  ;;  %7349 = vst [vmem:[%s13859_s20 + $0x900] sm:$0xff] %v7348_v34  ;;  %v7380_v25 = vld [vmem:[%s11433_s17 + $0x380] sm:$0xff]  ;;  %v7382_v6 = vld [vmem:[%s11433_s17 + $0x388] sm:$0xff] }
 0x6a5   : > { %7351 = vst [vmem:[%s13859_s20 + $0x908] sm:$0xff] %v7350_v2  ;;  %7353 = vst [vmem:[%s13859_s20 + $0x910] sm:$0xff] %v7352_v38  ;;  %v7384_v35 = vld [vmem:[%s11433_s17 + $0x390] sm:$0xff]  ;;  %v7386_v33 = vld [vmem:[%s11433_s17 + $0x398] sm:$0xff] }
 0x6a6   : > { %7355 = vst [vmem:[%s13859_s20 + $0x918] sm:$0xff] %v7354_v54  ;;  %7357 = vst [vmem:[%s13859_s20 + $0x920] sm:$0xff] %v7356_v43  ;;  %v7388_v42 = vld [vmem:[%s11433_s17 + $0x3a0] sm:$0xff]  ;;  %v7390_v46 = vld [vmem:[%s11433_s17 + $0x3a8] sm:$0xff] }
 0x6a7   : > { %7359 = vst [vmem:[%s13859_s20 + $0x928] sm:$0xff] %v7358_v40  ;;  %7361 = vst [vmem:[%s13859_s20 + $0x930] sm:$0xff] %v7360_v21  ;;  %v7392_v45 = vld [vmem:[%s11433_s17 + $0x3b0] sm:$0xff]  ;;  %v7394_v57 = vld [vmem:[%s11433_s17 + $0x3b8] sm:$0xff] }
 0x6a8   : > { %7363 = vst [vmem:[%s13859_s20 + $0x938] sm:$0xff] %v7362_v28  ;;  %7365 = vst [vmem:[%s13859_s20 + $0x940] sm:$0xff] %v7364_v44  ;;  %v7396_v17 = vld [vmem:[%s11433_s17 + $0x3c0] sm:$0xff]  ;;  %v7398_v22 = vld [vmem:[%s11433_s17 + $0x3c8] sm:$0xff] }
 0x6a9   : > { %7367 = vst [vmem:[%s13859_s20 + $0x948] sm:$0xff] %v7366_v53  ;;  %7369 = vst [vmem:[%s13859_s20 + $0x950] sm:$0xff] %v7368_v20  ;;  %v7400_v41 = vld [vmem:[%s11433_s17 + $0x3d0] sm:$0xff]  ;;  %v7402_v19 = vld [vmem:[%s11433_s17 + $0x3d8] sm:$0xff] }
 0x6aa   : > { %7371 = vst [vmem:[%s13859_s20 + $0x958] sm:$0xff] %v7370_v55  ;;  %7373 = vst [vmem:[%s13859_s20 + $0x960] sm:$0xff] %v7372_v63  ;;  %v7404_v47 = vld [vmem:[%s11433_s17 + $0x3e0] sm:$0xff]  ;;  %v7406_v9 = vld [vmem:[%s11433_s17 + $0x3e8] sm:$0xff] }
 0x6ab   : > { %7375 = vst [vmem:[%s13859_s20 + $0x968] sm:$0xff] %v7374_v5  ;;  %7377 = vst [vmem:[%s13859_s20 + $0x970] sm:$0xff] %v7376_v10  ;;  %v7408_v61 = vld [vmem:[%s11433_s17 + $0x3f0] sm:$0xff]  ;;  %v7410_v36 = vld [vmem:[%s11433_s17 + $0x3f8] sm:$0xff] }
 0x6ac   : > { %7379 = vst [vmem:[%s13859_s20 + $0x978] sm:$0xff] %v7378_v0  ;;  %7381 = vst [vmem:[%s13859_s20 + $0xa80] sm:$0xff] %v7380_v25 }
 0x6ad   : > { %7383 = vst [vmem:[%s13859_s20 + $0xa88] sm:$0xff] %v7382_v6  ;;  %7385 = vst [vmem:[%s13859_s20 + $0xa90] sm:$0xff] %v7384_v35 }
 0x6ae   : > { %7387 = vst [vmem:[%s13859_s20 + $0xa98] sm:$0xff] %v7386_v33  ;;  %7389 = vst [vmem:[%s13859_s20 + $0xaa0] sm:$0xff] %v7388_v42 }
 0x6af   : > { %7391 = vst [vmem:[%s13859_s20 + $0xaa8] sm:$0xff] %v7390_v46  ;;  %7393 = vst [vmem:[%s13859_s20 + $0xab0] sm:$0xff] %v7392_v45 }
 0x6b0   : > { %7395 = vst [vmem:[%s13859_s20 + $0xab8] sm:$0xff] %v7394_v57  ;;  %7397 = vst [vmem:[%s13859_s20 + $0xac0] sm:$0xff] %v7396_v17 }
 0x6b1   : > { %7399 = vst [vmem:[%s13859_s20 + $0xac8] sm:$0xff] %v7398_v22  ;;  %7401 = vst [vmem:[%s13859_s20 + $0xad0] sm:$0xff] %v7400_v41 }
 0x6b2   : > { %7403 = vst [vmem:[%s13859_s20 + $0xad8] sm:$0xff] %v7402_v19  ;;  %7405 = vst [vmem:[%s13859_s20 + $0xae0] sm:$0xff] %v7404_v47 }
 0x6b3   : > { %7407 = vst [vmem:[%s13859_s20 + $0xae8] sm:$0xff] %v7406_v9  ;;  %7409 = vst [vmem:[%s13859_s20 + $0xaf0] sm:$0xff] %v7408_v61 }
 0x6b4   : > { %7411 = vst [vmem:[%s13859_s20 + $0xaf8] sm:$0xff] %v7410_v36 }
 0x6b5 PF: > { %s14_s23 = sadd.s32 1, %s9355_s23   ;;  %s14448_s19 = sld [smem:[#allocation6_spill]] }
 0x6b6   : > { %p11_p1 = scmp.ge.s32.totalorder %s14_s23, 8   ;;  %s14449_s27 = sld [smem:[#allocation7_spill]] }
 0x6b7   : > { %s14450_s15 = smov %s9327_s16  ;;  %s14451_s16 = smov %s9468_s14 }
 0x6b8   : > { %s14452_s17 = smov %s9335_s18  ;;  %s14453_s18 = smov %s9465_s13 }
 0x6b9   : > { %s14454_s20 = smov %s9351_s22  ;;  %s14455_s21 = smov %s14458_s25 }
 0x6ba   :  { %13 = sbr.rel (!%p11_p1) target bundleno = 5 (0x5), region = 169 }
 0x6bc   : > { %s14456_s22 = smov %s14449_s27 }

</bundles_post_ra>
